<compile_context>
chip_gen: v5e
topology: v5e:2x2
jax: 0.10.0
libtpu: 0.0.40
codegen_flags: <defaults>
</compile_context>

<pallas_src>
import functools

import jax
import jax.numpy as jnp
import numpy as np
from jax import lax
from jax.experimental import pallas as pl
from jax.experimental.pallas import tpu as pltpu


_IM2COL_BUDGET_ELEMS = 1 << 20   # per-chunk im2col patch elements (~2 MiB in bf16)


# ---------------------------------------------------------------------------
# In-kernel helpers (operate on VMEM-resident values)
# ---------------------------------------------------------------------------
def _zero_pad1(x):
    """(H, W, C) -> (H+2, W+2, C): 1-pixel zero halo built in VMEM (no HBM pad)."""
    H, W, C = x.shape
    zr = jnp.zeros((1, W, C), x.dtype)
    x = jnp.concatenate([zr, x, zr], axis=0)
    zc = jnp.zeros((H + 2, 1, C), x.dtype)
    return jnp.concatenate([zc, x, zc], axis=1)


def _conv3x3(x, w, b):
    """Dense 3x3 'same' conv: row-chunked im2col + one big-K MXU matmul per chunk.

    x: (H, W, Cin) f32; w: (9*Cin, Cout) packed in (kh, kw, cin) row order (bf16);
    b: (1, Cout) f32.  MXU operands use w.dtype, accumulation is f32.
    """
    H, W, Cin = x.shape
    Cout = w.shape[-1]
    xp = _zero_pad1(x.astype(w.dtype))
    row_chunk = max(1, min(H, _IM2COL_BUDGET_ELEMS // max(1, W * 9 * Cin)))
    outs = []
    for r0 in range(0, H, row_chunk):
        rows = min(row_chunk, H - r0)
        taps = [xp[r0 + di:r0 + di + rows, dj:dj + W, :]
                for di in range(3) for dj in range(3)]
        patches = jnp.concatenate(taps, axis=-1).reshape(rows * W, 9 * Cin)
        o = jnp.dot(patches, w, preferred_element_type=jnp.float32) + b
        outs.append(o.reshape(rows, W, Cout))
    return outs[0] if len(outs) == 1 else jnp.concatenate(outs, axis=0)


def _dsconv_relu(x, dw, db, pw):
    """DSConv: depthwise 3x3 (+bias, f32 VPU) then pointwise 1x1 (bf16 MXU), then ReLU.

    x: (h, w, C) f32; dw: (9, C) f32; db: (1, C) f32; pw: (C, C) bf16.
    """
    h, w, C = x.shape
    xp = _zero_pad1(x)
    acc = jnp.zeros((h, w, C), jnp.float32)
    for di in range(3):
        for dj in range(3):
            k = di * 3 + dj
            acc = acc + xp[di:di + h, dj:dj + w, :] * dw[k:k + 1, :]
    acc = acc + db
    out = jnp.dot(acc.reshape(h * w, C).astype(pw.dtype), pw,
                  preferred_element_type=jnp.float32)
    return jnp.maximum(out, 0.0).reshape(h, w, C)


# ---------------------------------------------------------------------------
# Fused whole-group kernel (phase domain)
# ---------------------------------------------------------------------------
def _residual_group_kernel(u_ref, w1_ref, b1_ref, w2_ref, b2_ref,
                           dw1_ref, db1_ref, pw1_ref,
                           dw2_ref, db2_ref, pw2_ref,
                           wc_ref, bc_ref, wg_ref, bg_ref,
                           o_ref, act_ref, *, res_scale):
    blk = pl.program_id(1)

    @pl.when(blk == 0)
    def _():
        act_ref[...] = u_ref[0].astype(jnp.float32)

    u = act_ref[...]                                    # (h, w, 4C) block input, f32
    h, w, C4 = u.shape
    C = C4 // 4

    # conv3x3 -> ReLU -> conv3x3 (full-res convs, re-expressed in the phase domain)
    t = jnp.maximum(_conv3x3(u, w1_ref[0], b1_ref[0]), 0.0)
    h2 = _conv3x3(t, w2_ref[0], b2_ref[0])

    # MCSA: DSConv+ReLU, DSConv+ReLU, 1x1 conv + sigmoid (all at half resolution)
    d = _dsconv_relu(h2, dw1_ref[0], db1_ref[0], pw1_ref[0])
    d = _dsconv_relu(d, dw2_ref[0], db2_ref[0], pw2_ref[0])
    wc = wc_ref[0]
    s = jnp.dot(d.reshape(h * w, C4).astype(wc.dtype), wc,
                preferred_element_type=jnp.float32) + bc_ref[0]
    s = pl.reciprocal(1.0 + jnp.exp(-s), approx=True)   # sigmoid: exp + rcp on the EUP
    s = s.reshape(h, w, C)

    # Bilinear 2x upsample (align_corners=False) per output phase, fused with the
    # attention multiply against the matching phase of h2 (phase order ee, oe, eo, oo).
    s_up = jnp.concatenate([s[:1], s[:-1]], axis=0)     # clamped previous row
    s_dn = jnp.concatenate([s[1:], s[-1:]], axis=0)     # clamped next row
    r_even = 0.25 * s_up + 0.75 * s                     # output rows 2i
    r_odd = 0.75 * s + 0.25 * s_dn                      # output rows 2i+1

    def _cols(r):
        r_l = jnp.concatenate([r[:, :1], r[:, :-1]], axis=1)
        r_r = jnp.concatenate([r[:, 1:], r[:, -1:]], axis=1)
        return 0.25 * r_l + 0.75 * r, 0.75 * r + 0.25 * r_r

    y_ee, y_eo = _cols(r_even)
    y_oe, y_oo = _cols(r_odd)

    res = jnp.concatenate([
        h2[..., 0:C] * y_ee,
        h2[..., C:2 * C] * y_oe,
        h2[..., 2 * C:3 * C] * y_eo,
        h2[..., 3 * C:4 * C] * y_oo,
    ], axis=-1)

    out = res * res_scale + u                           # per-block residual
    act_ref[...] = out                                  # carried to the next block step

    @pl.when(blk == pl.num_programs(1) - 1)
    def _():
        # trailing group conv3x3 (phase domain) + group residual -> single HBM store
        gres = _conv3x3(out, wg_ref[...], bg_ref[...])
        o_ref[...] = (gres + u_ref[0].astype(jnp.float32))[None].astype(o_ref.dtype)


# ---------------------------------------------------------------------------
# Weight re-packing: full-res 3x3 conv -> equivalent 3x3 conv on the phase tensor
# ---------------------------------------------------------------------------
def _repack_conv3x3_phase(w):
    """(3,3,Cin,Cout) HWIO 'same' conv weight -> (9*4*Cin, 4*Cout) phase-domain weight.

    Phase index = row_parity + 2*col_parity, matching the torch.cat order (ee,oe,eo,oo).
    Unused taps stay zero; 1-px zero pad of the phase tensor reproduces the full-res pad.
    """
    Cin, Cout = w.shape[2], w.shape[3]
    wp = jnp.zeros((3, 3, 4 * Cin, 4 * Cout), w.dtype)
    for so in range(2):            # output col parity
        for ro in range(2):        # output row parity
            q = ro + 2 * so
            for di in range(3):
                for dj in range(3):
                    rr, cc = ro + di - 1, so + dj - 1
                    ti, pr = rr // 2 + 1, rr % 2
                    tj, pc = cc // 2 + 1, cc % 2
                    pin = pr + 2 * pc
                    wp = wp.at[ti, tj, pin * Cin:(pin + 1) * Cin,
                               q * Cout:(q + 1) * Cout].set(w[di, dj])
    return wp.reshape(9 * 4 * Cin, 4 * Cout)


def _phase_bias(b):
    return jnp.tile(b, 4).reshape(1, -1)


# ---------------------------------------------------------------------------
# Glue (single reshape+transpose XLA ops, once per group) + wrapper
# ---------------------------------------------------------------------------
def pixel_unshuffle_cat(x):
    # matches torch.cat((x[..,::2,::2], x[..,1::2,::2], x[..,::2,1::2], x[..,1::2,1::2]), 1)
    N, H, W, C = x.shape
    h, w = H // 2, W // 2
    x6 = x.reshape(N, h, 2, w, 2, C)              # (N, h, ri, w, rj, C)
    x6 = jnp.transpose(x6, (0, 1, 3, 4, 2, 5))    # (N, h, w, rj, ri, C)
    return x6.reshape(N, h, w, 4 * C)


def pixel_shuffle_back(p, C):
    N, h, w, _ = p.shape
    p6 = p.reshape(N, h, w, 2, 2, C)              # (N, h, w, rj, ri, C)
    p6 = jnp.transpose(p6, (0, 1, 4, 2, 3, 5))    # (N, h, ri, w, rj, C)
    return p6.reshape(N, 2 * h, 2 * w, C)


def _vmem_limit_bytes(h, w, c4):
    act = h * w * c4 * 4
    est = 16 * act + (8 << 20)                    # activations/intermediates + weights
    return int(min(max(est, 32 << 20), 64 << 20))


def residual_group_forward_nhwc(x, params, res_scale=1.0):
    N, H, W, C = x.shape
    h, w, C4 = H // 2, W // 2, 4 * C
    nb = len(params["blocks"])

    u = pixel_unshuffle_cat(x)                    # (N, h, w, 4C), once per group

    bf16 = jnp.bfloat16
    blks = params["blocks"]

    def stack(fn):
        return jnp.stack([fn(b) for b in blks])

    w1 = stack(lambda b: _repack_conv3x3_phase(b["w1"]).astype(bf16))
    b1 = stack(lambda b: _phase_bias(b["b1"]))
    w2 = stack(lambda b: _repack_conv3x3_phase(b["w2"]).astype(bf16))
    b2 = stack(lambda b: _phase_bias(b["b2"]))
    dw1 = stack(lambda b: b["dw1"].reshape(9, C4))
    db1 = stack(lambda b: b["db1"].reshape(1, C4))
    pw1 = stack(lambda b: b["pw1"].astype(bf16))
    dw2 = stack(lambda b: b["dw2"].reshape(9, C4))
    db2 = stack(lambda b: b["db2"].reshape(1, C4))
    pw2 = stack(lambda b: b["pw2"].astype(bf16))
    wc = stack(lambda b: b["wc"].astype(bf16))
    bc = stack(lambda b: b["bc"].reshape(1, C))
    wg = _repack_conv3x3_phase(params["wg"]).astype(bf16)
    bg = _phase_bias(params["bg"])

    act_spec = pl.BlockSpec((1, h, w, C4), lambda n, b: (n, 0, 0, 0))

    def blk_spec(shape):
        zeros = (0,) * len(shape)
        return pl.BlockSpec((1,) + shape, lambda n, b, _z=zeros: (b,) + _z)

    def const_spec(shape):
        zeros = (0,) * len(shape)
        return pl.BlockSpec(shape, lambda n, b, _z=zeros: _z)

    out = pl.pallas_call(
        functools.partial(_residual_group_kernel, res_scale=res_scale),
        out_shape=jax.ShapeDtypeStruct((N, h, w, C4), x.dtype),
        grid=(N, nb),
        in_specs=[
            act_spec,
            blk_spec((9 * C4, C4)), blk_spec((1, C4)),
            blk_spec((9 * C4, C4)), blk_spec((1, C4)),
            blk_spec((9, C4)), blk_spec((1, C4)), blk_spec((C4, C4)),
            blk_spec((9, C4)), blk_spec((1, C4)), blk_spec((C4, C4)),
            blk_spec((C4, C)), blk_spec((1, C)),
            const_spec((9 * C4, C4)), const_spec((1, C4)),
        ],
        out_specs=act_spec,
        scratch_shapes=[pltpu.VMEM((h, w, C4), jnp.float32)],
        compiler_params=pltpu.CompilerParams(
            dimension_semantics=("parallel", "arbitrary"),
            vmem_limit_bytes=_vmem_limit_bytes(h, w, C4),
        ),
    )(u, w1, b1, w2, b2, dw1, db1, pw1, dw2, db2, pw2, wc, bc, wg, bg)

    return pixel_shuffle_back(out, C)


def residual_group_forward(x_nchw, params, res_scale=1.0):
    # NCHW in / NCHW out (PyTorch convention); compute happens in phase-domain NHWC.
    x = jnp.transpose(x_nchw, (0, 2, 3, 1))
    y = residual_group_forward_nhwc(x, params, res_scale)
    return jnp.transpose(y, (0, 3, 1, 2))


# ---------------------------------------------------------------------------
# Deterministic parameter init (synthetic, HWIO / (Cin,Cout) layouts)
# ---------------------------------------------------------------------------
def init_params(key, num_feat, num_block):
    C, C4 = num_feat, 4 * num_feat

    def nrm(k, shape, scale=0.1):
        return scale * jax.random.normal(k, shape, jnp.float32)

    blocks = []
    for b in range(num_block):
        ks = jax.random.split(jax.random.fold_in(key, b), 12)
        blocks.append(dict(
            w1=nrm(ks[0], (3, 3, C, C)), b1=nrm(ks[1], (C,)),
            w2=nrm(ks[2], (3, 3, C, C)), b2=nrm(ks[3], (C,)),
            dw1=nrm(ks[4], (3, 3, C4)), db1=nrm(ks[5], (C4,)), pw1=nrm(ks[6], (C4, C4)),
            dw2=nrm(ks[7], (3, 3, C4)), db2=nrm(ks[8], (C4,)), pw2=nrm(ks[9], (C4, C4)),
            wc=nrm(ks[10], (C4, C)), bc=nrm(ks[11], (C,)),
        ))
    kg = jax.random.split(jax.random.fold_in(key, num_block), 2)
    return dict(blocks=blocks, wg=nrm(kg[0], (3, 3, C, C)), bg=nrm(kg[1], (C,)))


# ---------------------------------------------------------------------------
# Pure-JAX reference (lax.conv based) for correctness checking
# ---------------------------------------------------------------------------
def _ref_conv(x, w, b, padding, groups=1):
    out = lax.conv_general_dilated(x, w, (1, 1), padding,
                                   dimension_numbers=("NHWC", "HWIO", "NHWC"),
                                   feature_group_count=groups)
    if b is not None:
        out = out + b
    return out


def _ref_unshuffle(x):
    return jnp.concatenate([x[:, ::2, ::2, :], x[:, 1::2, ::2, :],
                            x[:, ::2, 1::2, :], x[:, 1::2, 1::2, :]], axis=-1)


def _ref_upsample2x(x):
    # bilinear, align_corners=False, scale_factor=2 (PyTorch semantics)
    N, h, w, C = x.shape

    def idx(out_size, in_size):
        i = jnp.arange(out_size)
        src = jnp.maximum((i + 0.5) / 2.0 - 0.5, 0.0)
        i0 = jnp.clip(jnp.floor(src).astype(jnp.int32), 0, in_size - 1)
        i1 = jnp.minimum(i0 + 1, in_size - 1)
        lam = src - i0.astype(jnp.float32)
        return i0, i1, lam

    r0, r1, rl = idx(2 * h, h)
    c0, c1, cl = idx(2 * w, w)
    xr = x[:, r0] * (1 - rl)[None, :, None, None] + x[:, r1] * rl[None, :, None, None]
    return xr[:, :, c0] * (1 - cl)[None, None, :, None] + xr[:, :, c1] * cl[None, None, :, None]


def _ref_rcab(x, p):
    C4 = 4 * x.shape[-1]
    h1 = jax.nn.relu(_ref_conv(x, p["w1"], p["b1"], ((1, 1), (1, 1))))
    h2 = _ref_conv(h1, p["w2"], p["b2"], ((1, 1), (1, 1)))
    u = _ref_unshuffle(h2)
    d1 = _ref_conv(u, p["dw1"].reshape(3, 3, 1, C4), p["db1"], ((1, 1), (1, 1)), groups=C4)
    d1 = jax.nn.relu(_ref_conv(d1, p["pw1"].reshape(1, 1, C4, C4), None, ((0, 0), (0, 0))))
    d2 = _ref_conv(d1, p["dw2"].reshape(3, 3, 1, C4), p["db2"], ((1, 1), (1, 1)), groups=C4)
    d2 = jax.nn.relu(_ref_conv(d2, p["pw2"].reshape(1, 1, C4, C4), None, ((0, 0), (0, 0))))
    s = jax.nn.sigmoid(_ref_conv(d2, p["wc"].reshape(1, 1, C4, -1), p["bc"], ((0, 0), (0, 0))))
    y = _ref_upsample2x(s)
    return h2 * y + x


def _ref_residual_group(x, params):
    out = x
    for blk in params["blocks"]:
        out = _ref_rcab(out, blk)
    res = _ref_conv(out, params["wg"], params["bg"], ((1, 1), (1, 1)))
    return res + x


# ---------------------------------------------------------------------------
if __name__ == "__main__":
    num_feat, num_block = 4, 2
    N, H, W = 2, 16, 16

    key = jax.random.PRNGKey(0)
    kx, kp = jax.random.split(key)
    x_nchw = jax.random.normal(kx, (N, num_feat, H, W), jnp.float32)
    params = init_params(kp, num_feat, num_block)

    out = jax.jit(residual_group_forward)(x_nchw, params)
    out = jax.block_until_ready(out)

    ref = _ref_residual_group(jnp.transpose(x_nchw, (0, 2, 3, 1)), params)
    ref = jnp.transpose(ref, (0, 3, 1, 2))
    # bf16 MXU operands (f32 accumulation) + approx-reciprocal sigmoid => looser tolerance
    np.testing.assert_allclose(np.asarray(out), np.asarray(ref), rtol=2e-2, atol=2e-2)

    print("KERNEL_OK")
</pallas_src>

<mosaic_0001>
module attributes {stable_mosaic.version = 11 : i64} {
  func.func @_residual_group_kernel(%arg0: i32, %arg1: i32, %arg2: memref<1x8x8x16xf32, #tpu.memory_space<vmem>>, %arg3: memref<1x144x16xbf16, #tpu.memory_space<vmem>>, %arg4: memref<1x1x16xf32, #tpu.memory_space<vmem>>, %arg5: memref<1x144x16xbf16, #tpu.memory_space<vmem>>, %arg6: memref<1x1x16xf32, #tpu.memory_space<vmem>>, %arg7: memref<1x9x16xf32, #tpu.memory_space<vmem>>, %arg8: memref<1x1x16xf32, #tpu.memory_space<vmem>>, %arg9: memref<1x16x16xbf16, #tpu.memory_space<vmem>>, %arg10: memref<1x9x16xf32, #tpu.memory_space<vmem>>, %arg11: memref<1x1x16xf32, #tpu.memory_space<vmem>>, %arg12: memref<1x16x16xbf16, #tpu.memory_space<vmem>>, %arg13: memref<1x16x4xbf16, #tpu.memory_space<vmem>>, %arg14: memref<1x1x4xf32, #tpu.memory_space<vmem>>, %arg15: memref<144x16xbf16, #tpu.memory_space<vmem>>, %arg16: memref<1x16xf32, #tpu.memory_space<vmem>>, %arg17: memref<1x8x8x16xf32, #tpu.memory_space<vmem>>, %arg18: memref<8x8x16xf32, #tpu.memory_space<vmem>>) attributes {dimension_semantics = [#tpu.dimension_semantics<parallel>, #tpu.dimension_semantics<arbitrary>], iteration_bounds = array<i64: 2, 2>, scalar_prefetch = 0 : i64, scratch_operands = 1 : i64, tpu.core_type = #tpu.core_type<tc>, window_params = [{transform_indices = @transform_0, window_bounds = array<i64: 1, 8, 8, 16>}, {transform_indices = @transform_1, window_bounds = array<i64: 1, 144, 16>}, {transform_indices = @transform_2, window_bounds = array<i64: 1, 1, 16>}, {transform_indices = @transform_3, window_bounds = array<i64: 1, 144, 16>}, {transform_indices = @transform_4, window_bounds = array<i64: 1, 1, 16>}, {transform_indices = @transform_5, window_bounds = array<i64: 1, 9, 16>}, {transform_indices = @transform_6, window_bounds = array<i64: 1, 1, 16>}, {transform_indices = @transform_7, window_bounds = array<i64: 1, 16, 16>}, {transform_indices = @transform_8, window_bounds = array<i64: 1, 9, 16>}, {transform_indices = @transform_9, window_bounds = array<i64: 1, 1, 16>}, {transform_indices = @transform_10, window_bounds = array<i64: 1, 16, 16>}, {transform_indices = @transform_11, window_bounds = array<i64: 1, 16, 4>}, {transform_indices = @transform_12, window_bounds = array<i64: 1, 1, 4>}, {pipeline_mode = #tpu.pipeline_mode<synchronous>, transform_indices = @transform_13, window_bounds = array<i64: 144, 16>}, {pipeline_mode = #tpu.pipeline_mode<synchronous>, transform_indices = @transform_14, window_bounds = array<i64: 1, 16>}, {transform_indices = @transform_15, window_bounds = array<i64: 1, 8, 8, 16>}]} {
    %c0_i32 = arith.constant 0 : i32
    %0 = arith.cmpi eq, %arg1, %c0_i32 : i32
    %1 = arith.extui %0 : i1 to i32
    %c0_i32_0 = arith.constant 0 : i32
    %2 = arith.cmpi ne, %1, %c0_i32_0 : i32
    scf.if %2 {
      %c0_75 = arith.constant 0 : index
      %c0_76 = arith.constant 0 : index
      %c0_77 = arith.constant 0 : index
      %c0_78 = arith.constant 0 : index
      %282 = vector.load %arg2[%c0_75, %c0_76, %c0_77, %c0_78] : memref<1x8x8x16xf32, #tpu.memory_space<vmem>>, vector<1x8x8x16xf32>
      %283 = vector.shape_cast %282 : vector<1x8x8x16xf32> to vector<8x8x16xf32>
      %c0_79 = arith.constant 0 : index
      %c0_80 = arith.constant 0 : index
      %c0_81 = arith.constant 0 : index
      %284 = vector.load %arg18[%c0_79, %c0_80, %c0_81] : memref<8x8x16xf32, #tpu.memory_space<vmem>>, vector<8x8x16xf32>
      tpu.vector_store %arg18[%c0_79, %c0_80, %c0_81], %283 {strides = array<i32>} : memref<8x8x16xf32, #tpu.memory_space<vmem>>, vector<8x8x16xf32>,
    } else {
    }
    %c0 = arith.constant 0 : index
    %c0_1 = arith.constant 0 : index
    %c0_2 = arith.constant 0 : index
    %3 = vector.load %arg18[%c0, %c0_1, %c0_2] : memref<8x8x16xf32, #tpu.memory_space<vmem>>, vector<8x8x16xf32>
    %c0_3 = arith.constant 0 : index
    %c0_4 = arith.constant 0 : index
    %c0_5 = arith.constant 0 : index
    %4 = vector.load %arg3[%c0_3, %c0_4, %c0_5] : memref<1x144x16xbf16, #tpu.memory_space<vmem>>, vector<1x144x16xbf16>
    %5 = vector.shape_cast %4 : vector<1x144x16xbf16> to vector<144x16xbf16>
    %c0_6 = arith.constant 0 : index
    %c0_7 = arith.constant 0 : index
    %c0_8 = arith.constant 0 : index
    %6 = vector.load %arg4[%c0_6, %c0_7, %c0_8] : memref<1x1x16xf32, #tpu.memory_space<vmem>>, vector<1x1x16xf32>
    %7 = vector.shape_cast %6 : vector<1x1x16xf32> to vector<1x16xf32>
    %8 = arith.truncf %3 : vector<8x8x16xf32> to vector<8x8x16xbf16>
    %cst = arith.constant 0.000000e+00 : bf16
    %9 = vector.broadcast %cst : bf16 to vector<1x8x16xbf16>
    %10 = tpu.concatenate %9, %8, %9 in 0 : vector<1x8x16xbf16>, vector<8x8x16xbf16>, vector<1x8x16xbf16> -> vector<10x8x16xbf16>
    %cst_9 = arith.constant 0.000000e+00 : bf16
    %11 = vector.broadcast %cst_9 : bf16 to vector<10x1x16xbf16>
    %12 = tpu.concatenate %11, %10, %11 in 1 : vector<10x1x16xbf16>, vector<10x8x16xbf16>, vector<10x1x16xbf16> -> vector<10x10x16xbf16>
    %13 = vector.extract_strided_slice %12 {offsets = [0, 0, 0], sizes = [8, 8, 16], strides = [1, 1, 1]} : vector<10x10x16xbf16> to vector<8x8x16xbf16>
    %14 = vector.extract_strided_slice %12 {offsets = [0, 1, 0], sizes = [8, 8, 16], strides = [1, 1, 1]} : vector<10x10x16xbf16> to vector<8x8x16xbf16>
    %15 = vector.extract_strided_slice %12 {offsets = [0, 2, 0], sizes = [8, 8, 16], strides = [1, 1, 1]} : vector<10x10x16xbf16> to vector<8x8x16xbf16>
    %16 = vector.extract_strided_slice %12 {offsets = [1, 0, 0], sizes = [8, 8, 16], strides = [1, 1, 1]} : vector<10x10x16xbf16> to vector<8x8x16xbf16>
    %17 = vector.extract_strided_slice %12 {offsets = [1, 1, 0], sizes = [8, 8, 16], strides = [1, 1, 1]} : vector<10x10x16xbf16> to vector<8x8x16xbf16>
    %18 = vector.extract_strided_slice %12 {offsets = [1, 2, 0], sizes = [8, 8, 16], strides = [1, 1, 1]} : vector<10x10x16xbf16> to vector<8x8x16xbf16>
    %19 = vector.extract_strided_slice %12 {offsets = [2, 0, 0], sizes = [8, 8, 16], strides = [1, 1, 1]} : vector<10x10x16xbf16> to vector<8x8x16xbf16>
    %20 = vector.extract_strided_slice %12 {offsets = [2, 1, 0], sizes = [8, 8, 16], strides = [1, 1, 1]} : vector<10x10x16xbf16> to vector<8x8x16xbf16>
    %21 = vector.extract_strided_slice %12 {offsets = [2, 2, 0], sizes = [8, 8, 16], strides = [1, 1, 1]} : vector<10x10x16xbf16> to vector<8x8x16xbf16>
    %22 = tpu.concatenate %13, %14, %15, %16, %17, %18, %19, %20, %21 in 2 : vector<8x8x16xbf16>, vector<8x8x16xbf16>, vector<8x8x16xbf16>, vector<8x8x16xbf16>, vector<8x8x16xbf16>, vector<8x8x16xbf16>, vector<8x8x16xbf16>, vector<8x8x16xbf16>, vector<8x8x16xbf16> -> vector<8x8x144xbf16>
    %23 = vector.shape_cast %22 : vector<8x8x144xbf16> to vector<64x144xbf16>
    %cst_10 = arith.constant dense<0.000000e+00> : vector<64x16xf32>
    %24 = tpu.matmul %23, %5, %cst_10 {dimension_numbers = #tpu.dot_dimension_numbers<[1], [0], [0], [1], [0, 0, 1, 1], [], []>} : vector<64x144xbf16>, vector<144x16xbf16>, vector<64x16xf32> -> vector<64x16xf32>
    %25 = vector.broadcast %7 : vector<1x16xf32> to vector<64x16xf32>
    %26 = arith.addf %24, %25 : vector<64x16xf32>
    %27 = vector.shape_cast %26 : vector<64x16xf32> to vector<8x8x16xf32>
    %cst_11 = arith.constant 0.000000e+00 : f32
    %28 = vector.broadcast %cst_11 : f32 to vector<8x8x16xf32>
    %29 = arith.maximumf %27, %28 : vector<8x8x16xf32>
    %c0_12 = arith.constant 0 : index
    %c0_13 = arith.constant 0 : index
    %c0_14 = arith.constant 0 : index
    %30 = vector.load %arg5[%c0_12, %c0_13, %c0_14] : memref<1x144x16xbf16, #tpu.memory_space<vmem>>, vector<1x144x16xbf16>
    %31 = vector.shape_cast %30 : vector<1x144x16xbf16> to vector<144x16xbf16>
    %c0_15 = arith.constant 0 : index
    %c0_16 = arith.constant 0 : index
    %c0_17 = arith.constant 0 : index
    %32 = vector.load %arg6[%c0_15, %c0_16, %c0_17] : memref<1x1x16xf32, #tpu.memory_space<vmem>>, vector<1x1x16xf32>
    %33 = vector.shape_cast %32 : vector<1x1x16xf32> to vector<1x16xf32>
    %34 = arith.truncf %29 : vector<8x8x16xf32> to vector<8x8x16xbf16>
    %cst_18 = arith.constant 0.000000e+00 : bf16
    %35 = vector.broadcast %cst_18 : bf16 to vector<1x8x16xbf16>
    %36 = tpu.concatenate %35, %34, %35 in 0 : vector<1x8x16xbf16>, vector<8x8x16xbf16>, vector<1x8x16xbf16> -> vector<10x8x16xbf16>
    %cst_19 = arith.constant 0.000000e+00 : bf16
    %37 = vector.broadcast %cst_19 : bf16 to vector<10x1x16xbf16>
    %38 = tpu.concatenate %37, %36, %37 in 1 : vector<10x1x16xbf16>, vector<10x8x16xbf16>, vector<10x1x16xbf16> -> vector<10x10x16xbf16>
    %39 = vector.extract_strided_slice %38 {offsets = [0, 0, 0], sizes = [8, 8, 16], strides = [1, 1, 1]} : vector<10x10x16xbf16> to vector<8x8x16xbf16>
    %40 = vector.extract_strided_slice %38 {offsets = [0, 1, 0], sizes = [8, 8, 16], strides = [1, 1, 1]} : vector<10x10x16xbf16> to vector<8x8x16xbf16>
    %41 = vector.extract_strided_slice %38 {offsets = [0, 2, 0], sizes = [8, 8, 16], strides = [1, 1, 1]} : vector<10x10x16xbf16> to vector<8x8x16xbf16>
    %42 = vector.extract_strided_slice %38 {offsets = [1, 0, 0], sizes = [8, 8, 16], strides = [1, 1, 1]} : vector<10x10x16xbf16> to vector<8x8x16xbf16>
    %43 = vector.extract_strided_slice %38 {offsets = [1, 1, 0], sizes = [8, 8, 16], strides = [1, 1, 1]} : vector<10x10x16xbf16> to vector<8x8x16xbf16>
    %44 = vector.extract_strided_slice %38 {offsets = [1, 2, 0], sizes = [8, 8, 16], strides = [1, 1, 1]} : vector<10x10x16xbf16> to vector<8x8x16xbf16>
    %45 = vector.extract_strided_slice %38 {offsets = [2, 0, 0], sizes = [8, 8, 16], strides = [1, 1, 1]} : vector<10x10x16xbf16> to vector<8x8x16xbf16>
    %46 = vector.extract_strided_slice %38 {offsets = [2, 1, 0], sizes = [8, 8, 16], strides = [1, 1, 1]} : vector<10x10x16xbf16> to vector<8x8x16xbf16>
    %47 = vector.extract_strided_slice %38 {offsets = [2, 2, 0], sizes = [8, 8, 16], strides = [1, 1, 1]} : vector<10x10x16xbf16> to vector<8x8x16xbf16>
    %48 = tpu.concatenate %39, %40, %41, %42, %43, %44, %45, %46, %47 in 2 : vector<8x8x16xbf16>, vector<8x8x16xbf16>, vector<8x8x16xbf16>, vector<8x8x16xbf16>, vector<8x8x16xbf16>, vector<8x8x16xbf16>, vector<8x8x16xbf16>, vector<8x8x16xbf16>, vector<8x8x16xbf16> -> vector<8x8x144xbf16>
    %49 = vector.shape_cast %48 : vector<8x8x144xbf16> to vector<64x144xbf16>
    %cst_20 = arith.constant dense<0.000000e+00> : vector<64x16xf32>
    %50 = tpu.matmul %49, %31, %cst_20 {dimension_numbers = #tpu.dot_dimension_numbers<[1], [0], [0], [1], [0, 0, 1, 1], [], []>} : vector<64x144xbf16>, vector<144x16xbf16>, vector<64x16xf32> -> vector<64x16xf32>
    %51 = vector.broadcast %33 : vector<1x16xf32> to vector<64x16xf32>
    %52 = arith.addf %50, %51 : vector<64x16xf32>
    %53 = vector.shape_cast %52 : vector<64x16xf32> to vector<8x8x16xf32>
    %c0_21 = arith.constant 0 : index
    %c0_22 = arith.constant 0 : index
    %c0_23 = arith.constant 0 : index
    %54 = vector.load %arg7[%c0_21, %c0_22, %c0_23] : memref<1x9x16xf32, #tpu.memory_space<vmem>>, vector<1x9x16xf32>
    %55 = vector.shape_cast %54 : vector<1x9x16xf32> to vector<9x16xf32>
    %c0_24 = arith.constant 0 : index
    %c0_25 = arith.constant 0 : index
    %c0_26 = arith.constant 0 : index
    %56 = vector.load %arg8[%c0_24, %c0_25, %c0_26] : memref<1x1x16xf32, #tpu.memory_space<vmem>>, vector<1x1x16xf32>
    %57 = vector.shape_cast %56 : vector<1x1x16xf32> to vector<1x16xf32>
    %c0_27 = arith.constant 0 : index
    %c0_28 = arith.constant 0 : index
    %c0_29 = arith.constant 0 : index
    %58 = vector.load %arg9[%c0_27, %c0_28, %c0_29] : memref<1x16x16xbf16, #tpu.memory_space<vmem>>, vector<1x16x16xbf16>
    %59 = vector.shape_cast %58 : vector<1x16x16xbf16> to vector<16x16xbf16>
    %cst_30 = arith.constant 0.000000e+00 : f32
    %60 = vector.broadcast %cst_30 : f32 to vector<1x8x16xf32>
    %61 = tpu.concatenate %60, %53, %60 in 0 : vector<1x8x16xf32>, vector<8x8x16xf32>, vector<1x8x16xf32> -> vector<10x8x16xf32>
    %cst_31 = arith.constant 0.000000e+00 : f32
    %62 = vector.broadcast %cst_31 : f32 to vector<10x1x16xf32>
    %63 = tpu.concatenate %62, %61, %62 in 1 : vector<10x1x16xf32>, vector<10x8x16xf32>, vector<10x1x16xf32> -> vector<10x10x16xf32>
    %cst_32 = arith.constant 0.000000e+00 : f32
    %64 = vector.broadcast %cst_32 : f32 to vector<8x8x16xf32>
    %65 = vector.extract_strided_slice %63 {offsets = [0, 0, 0], sizes = [8, 8, 16], strides = [1, 1, 1]} : vector<10x10x16xf32> to vector<8x8x16xf32>
    %66 = vector.extract_strided_slice %55 {offsets = [0, 0], sizes = [1, 16], strides = [1, 1]} : vector<9x16xf32> to vector<1x16xf32>
    %67 = vector.shape_cast %66 : vector<1x16xf32> to vector<1x1x16xf32>
    %68 = vector.broadcast %67 : vector<1x1x16xf32> to vector<8x8x16xf32>
    %69 = arith.mulf %65, %68 : vector<8x8x16xf32>
    %70 = arith.addf %64, %69 : vector<8x8x16xf32>
    %71 = vector.extract_strided_slice %63 {offsets = [0, 1, 0], sizes = [8, 8, 16], strides = [1, 1, 1]} : vector<10x10x16xf32> to vector<8x8x16xf32>
    %72 = vector.extract_strided_slice %55 {offsets = [1, 0], sizes = [1, 16], strides = [1, 1]} : vector<9x16xf32> to vector<1x16xf32>
    %73 = vector.shape_cast %72 : vector<1x16xf32> to vector<1x1x16xf32>
    %74 = vector.broadcast %73 : vector<1x1x16xf32> to vector<8x8x16xf32>
    %75 = arith.mulf %71, %74 : vector<8x8x16xf32>
    %76 = arith.addf %70, %75 : vector<8x8x16xf32>
    %77 = vector.extract_strided_slice %63 {offsets = [0, 2, 0], sizes = [8, 8, 16], strides = [1, 1, 1]} : vector<10x10x16xf32> to vector<8x8x16xf32>
    %78 = vector.extract_strided_slice %55 {offsets = [2, 0], sizes = [1, 16], strides = [1, 1]} : vector<9x16xf32> to vector<1x16xf32>
    %79 = vector.shape_cast %78 : vector<1x16xf32> to vector<1x1x16xf32>
    %80 = vector.broadcast %79 : vector<1x1x16xf32> to vector<8x8x16xf32>
    %81 = arith.mulf %77, %80 : vector<8x8x16xf32>
    %82 = arith.addf %76, %81 : vector<8x8x16xf32>
    %83 = vector.extract_strided_slice %63 {offsets = [1, 0, 0], sizes = [8, 8, 16], strides = [1, 1, 1]} : vector<10x10x16xf32> to vector<8x8x16xf32>
    %84 = vector.extract_strided_slice %55 {offsets = [3, 0], sizes = [1, 16], strides = [1, 1]} : vector<9x16xf32> to vector<1x16xf32>
    %85 = vector.shape_cast %84 : vector<1x16xf32> to vector<1x1x16xf32>
    %86 = vector.broadcast %85 : vector<1x1x16xf32> to vector<8x8x16xf32>
    %87 = arith.mulf %83, %86 : vector<8x8x16xf32>
    %88 = arith.addf %82, %87 : vector<8x8x16xf32>
    %89 = vector.extract_strided_slice %63 {offsets = [1, 1, 0], sizes = [8, 8, 16], strides = [1, 1, 1]} : vector<10x10x16xf32> to vector<8x8x16xf32>
    %90 = vector.extract_strided_slice %55 {offsets = [4, 0], sizes = [1, 16], strides = [1, 1]} : vector<9x16xf32> to vector<1x16xf32>
    %91 = vector.shape_cast %90 : vector<1x16xf32> to vector<1x1x16xf32>
    %92 = vector.broadcast %91 : vector<1x1x16xf32> to vector<8x8x16xf32>
    %93 = arith.mulf %89, %92 : vector<8x8x16xf32>
    %94 = arith.addf %88, %93 : vector<8x8x16xf32>
    %95 = vector.extract_strided_slice %63 {offsets = [1, 2, 0], sizes = [8, 8, 16], strides = [1, 1, 1]} : vector<10x10x16xf32> to vector<8x8x16xf32>
    %96 = vector.extract_strided_slice %55 {offsets = [5, 0], sizes = [1, 16], strides = [1, 1]} : vector<9x16xf32> to vector<1x16xf32>
    %97 = vector.shape_cast %96 : vector<1x16xf32> to vector<1x1x16xf32>
    %98 = vector.broadcast %97 : vector<1x1x16xf32> to vector<8x8x16xf32>
    %99 = arith.mulf %95, %98 : vector<8x8x16xf32>
    %100 = arith.addf %94, %99 : vector<8x8x16xf32>
    %101 = vector.extract_strided_slice %63 {offsets = [2, 0, 0], sizes = [8, 8, 16], strides = [1, 1, 1]} : vector<10x10x16xf32> to vector<8x8x16xf32>
    %102 = vector.extract_strided_slice %55 {offsets = [6, 0], sizes = [1, 16], strides = [1, 1]} : vector<9x16xf32> to vector<1x16xf32>
    %103 = vector.shape_cast %102 : vector<1x16xf32> to vector<1x1x16xf32>
    %104 = vector.broadcast %103 : vector<1x1x16xf32> to vector<8x8x16xf32>
    %105 = arith.mulf %101, %104 : vector<8x8x16xf32>
    %106 = arith.addf %100, %105 : vector<8x8x16xf32>
    %107 = vector.extract_strided_slice %63 {offsets = [2, 1, 0], sizes = [8, 8, 16], strides = [1, 1, 1]} : vector<10x10x16xf32> to vector<8x8x16xf32>
    %108 = vector.extract_strided_slice %55 {offsets = [7, 0], sizes = [1, 16], strides = [1, 1]} : vector<9x16xf32> to vector<1x16xf32>
    %109 = vector.shape_cast %108 : vector<1x16xf32> to vector<1x1x16xf32>
    %110 = vector.broadcast %109 : vector<1x1x16xf32> to vector<8x8x16xf32>
    %111 = arith.mulf %107, %110 : vector<8x8x16xf32>
    %112 = arith.addf %106, %111 : vector<8x8x16xf32>
    %113 = vector.extract_strided_slice %63 {offsets = [2, 2, 0], sizes = [8, 8, 16], strides = [1, 1, 1]} : vector<10x10x16xf32> to vector<8x8x16xf32>
    %114 = vector.extract_strided_slice %55 {offsets = [8, 0], sizes = [1, 16], strides = [1, 1]} : vector<9x16xf32> to vector<1x16xf32>
    %115 = vector.shape_cast %114 : vector<1x16xf32> to vector<1x1x16xf32>
    %116 = vector.broadcast %115 : vector<1x1x16xf32> to vector<8x8x16xf32>
    %117 = arith.mulf %113, %116 : vector<8x8x16xf32>
    %118 = arith.addf %112, %117 : vector<8x8x16xf32>
    %119 = vector.shape_cast %57 : vector<1x16xf32> to vector<1x1x16xf32>
    %120 = vector.broadcast %119 : vector<1x1x16xf32> to vector<8x8x16xf32>
    %121 = arith.addf %118, %120 : vector<8x8x16xf32>
    %122 = vector.shape_cast %121 : vector<8x8x16xf32> to vector<64x16xf32>
    %123 = arith.truncf %122 : vector<64x16xf32> to vector<64x16xbf16>
    %cst_33 = arith.constant dense<0.000000e+00> : vector<64x16xf32>
    %124 = tpu.matmul %123, %59, %cst_33 {dimension_numbers = #tpu.dot_dimension_numbers<[1], [0], [0], [1], [0, 0, 1, 1], [], []>} : vector<64x16xbf16>, vector<16x16xbf16>, vector<64x16xf32> -> vector<64x16xf32>
    %cst_34 = arith.constant 0.000000e+00 : f32
    %125 = vector.broadcast %cst_34 : f32 to vector<64x16xf32>
    %126 = arith.maximumf %124, %125 : vector<64x16xf32>
    %127 = vector.shape_cast %126 : vector<64x16xf32> to vector<8x8x16xf32>
    %c0_35 = arith.constant 0 : index
    %c0_36 = arith.constant 0 : index
    %c0_37 = arith.constant 0 : index
    %128 = vector.load %arg10[%c0_35, %c0_36, %c0_37] : memref<1x9x16xf32, #tpu.memory_space<vmem>>, vector<1x9x16xf32>
    %129 = vector.shape_cast %128 : vector<1x9x16xf32> to vector<9x16xf32>
    %c0_38 = arith.constant 0 : index
    %c0_39 = arith.constant 0 : index
    %c0_40 = arith.constant 0 : index
    %130 = vector.load %arg11[%c0_38, %c0_39, %c0_40] : memref<1x1x16xf32, #tpu.memory_space<vmem>>, vector<1x1x16xf32>
    %131 = vector.shape_cast %130 : vector<1x1x16xf32> to vector<1x16xf32>
    %c0_41 = arith.constant 0 : index
    %c0_42 = arith.constant 0 : index
    %c0_43 = arith.constant 0 : index
    %132 = vector.load %arg12[%c0_41, %c0_42, %c0_43] : memref<1x16x16xbf16, #tpu.memory_space<vmem>>, vector<1x16x16xbf16>
    %133 = vector.shape_cast %132 : vector<1x16x16xbf16> to vector<16x16xbf16>
    %cst_44 = arith.constant 0.000000e+00 : f32
    %134 = vector.broadcast %cst_44 : f32 to vector<1x8x16xf32>
    %135 = tpu.concatenate %134, %127, %134 in 0 : vector<1x8x16xf32>, vector<8x8x16xf32>, vector<1x8x16xf32> -> vector<10x8x16xf32>
    %cst_45 = arith.constant 0.000000e+00 : f32
    %136 = vector.broadcast %cst_45 : f32 to vector<10x1x16xf32>
    %137 = tpu.concatenate %136, %135, %136 in 1 : vector<10x1x16xf32>, vector<10x8x16xf32>, vector<10x1x16xf32> -> vector<10x10x16xf32>
    %cst_46 = arith.constant 0.000000e+00 : f32
    %138 = vector.broadcast %cst_46 : f32 to vector<8x8x16xf32>
    %139 = vector.extract_strided_slice %137 {offsets = [0, 0, 0], sizes = [8, 8, 16], strides = [1, 1, 1]} : vector<10x10x16xf32> to vector<8x8x16xf32>
    %140 = vector.extract_strided_slice %129 {offsets = [0, 0], sizes = [1, 16], strides = [1, 1]} : vector<9x16xf32> to vector<1x16xf32>
    %141 = vector.shape_cast %140 : vector<1x16xf32> to vector<1x1x16xf32>
    %142 = vector.broadcast %141 : vector<1x1x16xf32> to vector<8x8x16xf32>
    %143 = arith.mulf %139, %142 : vector<8x8x16xf32>
    %144 = arith.addf %138, %143 : vector<8x8x16xf32>
    %145 = vector.extract_strided_slice %137 {offsets = [0, 1, 0], sizes = [8, 8, 16], strides = [1, 1, 1]} : vector<10x10x16xf32> to vector<8x8x16xf32>
    %146 = vector.extract_strided_slice %129 {offsets = [1, 0], sizes = [1, 16], strides = [1, 1]} : vector<9x16xf32> to vector<1x16xf32>
    %147 = vector.shape_cast %146 : vector<1x16xf32> to vector<1x1x16xf32>
    %148 = vector.broadcast %147 : vector<1x1x16xf32> to vector<8x8x16xf32>
    %149 = arith.mulf %145, %148 : vector<8x8x16xf32>
    %150 = arith.addf %144, %149 : vector<8x8x16xf32>
    %151 = vector.extract_strided_slice %137 {offsets = [0, 2, 0], sizes = [8, 8, 16], strides = [1, 1, 1]} : vector<10x10x16xf32> to vector<8x8x16xf32>
    %152 = vector.extract_strided_slice %129 {offsets = [2, 0], sizes = [1, 16], strides = [1, 1]} : vector<9x16xf32> to vector<1x16xf32>
    %153 = vector.shape_cast %152 : vector<1x16xf32> to vector<1x1x16xf32>
    %154 = vector.broadcast %153 : vector<1x1x16xf32> to vector<8x8x16xf32>
    %155 = arith.mulf %151, %154 : vector<8x8x16xf32>
    %156 = arith.addf %150, %155 : vector<8x8x16xf32>
    %157 = vector.extract_strided_slice %137 {offsets = [1, 0, 0], sizes = [8, 8, 16], strides = [1, 1, 1]} : vector<10x10x16xf32> to vector<8x8x16xf32>
    %158 = vector.extract_strided_slice %129 {offsets = [3, 0], sizes = [1, 16], strides = [1, 1]} : vector<9x16xf32> to vector<1x16xf32>
    %159 = vector.shape_cast %158 : vector<1x16xf32> to vector<1x1x16xf32>
    %160 = vector.broadcast %159 : vector<1x1x16xf32> to vector<8x8x16xf32>
    %161 = arith.mulf %157, %160 : vector<8x8x16xf32>
    %162 = arith.addf %156, %161 : vector<8x8x16xf32>
    %163 = vector.extract_strided_slice %137 {offsets = [1, 1, 0], sizes = [8, 8, 16], strides = [1, 1, 1]} : vector<10x10x16xf32> to vector<8x8x16xf32>
    %164 = vector.extract_strided_slice %129 {offsets = [4, 0], sizes = [1, 16], strides = [1, 1]} : vector<9x16xf32> to vector<1x16xf32>
    %165 = vector.shape_cast %164 : vector<1x16xf32> to vector<1x1x16xf32>
    %166 = vector.broadcast %165 : vector<1x1x16xf32> to vector<8x8x16xf32>
    %167 = arith.mulf %163, %166 : vector<8x8x16xf32>
    %168 = arith.addf %162, %167 : vector<8x8x16xf32>
    %169 = vector.extract_strided_slice %137 {offsets = [1, 2, 0], sizes = [8, 8, 16], strides = [1, 1, 1]} : vector<10x10x16xf32> to vector<8x8x16xf32>
    %170 = vector.extract_strided_slice %129 {offsets = [5, 0], sizes = [1, 16], strides = [1, 1]} : vector<9x16xf32> to vector<1x16xf32>
    %171 = vector.shape_cast %170 : vector<1x16xf32> to vector<1x1x16xf32>
    %172 = vector.broadcast %171 : vector<1x1x16xf32> to vector<8x8x16xf32>
    %173 = arith.mulf %169, %172 : vector<8x8x16xf32>
    %174 = arith.addf %168, %173 : vector<8x8x16xf32>
    %175 = vector.extract_strided_slice %137 {offsets = [2, 0, 0], sizes = [8, 8, 16], strides = [1, 1, 1]} : vector<10x10x16xf32> to vector<8x8x16xf32>
    %176 = vector.extract_strided_slice %129 {offsets = [6, 0], sizes = [1, 16], strides = [1, 1]} : vector<9x16xf32> to vector<1x16xf32>
    %177 = vector.shape_cast %176 : vector<1x16xf32> to vector<1x1x16xf32>
    %178 = vector.broadcast %177 : vector<1x1x16xf32> to vector<8x8x16xf32>
    %179 = arith.mulf %175, %178 : vector<8x8x16xf32>
    %180 = arith.addf %174, %179 : vector<8x8x16xf32>
    %181 = vector.extract_strided_slice %137 {offsets = [2, 1, 0], sizes = [8, 8, 16], strides = [1, 1, 1]} : vector<10x10x16xf32> to vector<8x8x16xf32>
    %182 = vector.extract_strided_slice %129 {offsets = [7, 0], sizes = [1, 16], strides = [1, 1]} : vector<9x16xf32> to vector<1x16xf32>
    %183 = vector.shape_cast %182 : vector<1x16xf32> to vector<1x1x16xf32>
    %184 = vector.broadcast %183 : vector<1x1x16xf32> to vector<8x8x16xf32>
    %185 = arith.mulf %181, %184 : vector<8x8x16xf32>
    %186 = arith.addf %180, %185 : vector<8x8x16xf32>
    %187 = vector.extract_strided_slice %137 {offsets = [2, 2, 0], sizes = [8, 8, 16], strides = [1, 1, 1]} : vector<10x10x16xf32> to vector<8x8x16xf32>
    %188 = vector.extract_strided_slice %129 {offsets = [8, 0], sizes = [1, 16], strides = [1, 1]} : vector<9x16xf32> to vector<1x16xf32>
    %189 = vector.shape_cast %188 : vector<1x16xf32> to vector<1x1x16xf32>
    %190 = vector.broadcast %189 : vector<1x1x16xf32> to vector<8x8x16xf32>
    %191 = arith.mulf %187, %190 : vector<8x8x16xf32>
    %192 = arith.addf %186, %191 : vector<8x8x16xf32>
    %193 = vector.shape_cast %131 : vector<1x16xf32> to vector<1x1x16xf32>
    %194 = vector.broadcast %193 : vector<1x1x16xf32> to vector<8x8x16xf32>
    %195 = arith.addf %192, %194 : vector<8x8x16xf32>
    %196 = vector.shape_cast %195 : vector<8x8x16xf32> to vector<64x16xf32>
    %197 = arith.truncf %196 : vector<64x16xf32> to vector<64x16xbf16>
    %cst_47 = arith.constant dense<0.000000e+00> : vector<64x16xf32>
    %198 = tpu.matmul %197, %133, %cst_47 {dimension_numbers = #tpu.dot_dimension_numbers<[1], [0], [0], [1], [0, 0, 1, 1], [], []>} : vector<64x16xbf16>, vector<16x16xbf16>, vector<64x16xf32> -> vector<64x16xf32>
    %cst_48 = arith.constant 0.000000e+00 : f32
    %199 = vector.broadcast %cst_48 : f32 to vector<64x16xf32>
    %200 = arith.maximumf %198, %199 : vector<64x16xf32>
    %201 = vector.shape_cast %200 : vector<64x16xf32> to vector<8x8x16xf32>
    %c0_49 = arith.constant 0 : index
    %c0_50 = arith.constant 0 : index
    %c0_51 = arith.constant 0 : index
    %202 = vector.load %arg13[%c0_49, %c0_50, %c0_51] : memref<1x16x4xbf16, #tpu.memory_space<vmem>>, vector<1x16x4xbf16>
    %203 = vector.shape_cast %202 : vector<1x16x4xbf16> to vector<16x4xbf16>
    %204 = vector.shape_cast %201 : vector<8x8x16xf32> to vector<64x16xf32>
    %205 = arith.truncf %204 : vector<64x16xf32> to vector<64x16xbf16>
    %cst_52 = arith.constant dense<0.000000e+00> : vector<64x4xf32>
    %206 = tpu.matmul %205, %203, %cst_52 {dimension_numbers = #tpu.dot_dimension_numbers<[1], [0], [0], [1], [0, 0, 1, 1], [], []>} : vector<64x16xbf16>, vector<16x4xbf16>, vector<64x4xf32> -> vector<64x4xf32>
    %c0_53 = arith.constant 0 : index
    %c0_54 = arith.constant 0 : index
    %c0_55 = arith.constant 0 : index
    %207 = vector.load %arg14[%c0_53, %c0_54, %c0_55] : memref<1x1x4xf32, #tpu.memory_space<vmem>>, vector<1x1x4xf32>
    %208 = vector.shape_cast %207 : vector<1x1x4xf32> to vector<1x4xf32>
    %209 = vector.broadcast %208 : vector<1x4xf32> to vector<64x4xf32>
    %210 = arith.addf %206, %209 : vector<64x4xf32>
    %cst_56 = arith.constant 0.000000e+00 : f32
    %211 = vector.broadcast %cst_56 : f32 to vector<64x4xf32>
    %212 = arith.subf %211, %210 : vector<64x4xf32>
    %213 = math.exp %212 : vector<64x4xf32>
    %cst_57 = arith.constant 1.000000e+00 : f32
    %214 = vector.broadcast %cst_57 : f32 to vector<64x4xf32>
    %215 = arith.addf %214, %213 : vector<64x4xf32>
    %216 = tpu.reciprocal %215 {approx = true} : vector<64x4xf32> -> vector<64x4xf32>
    %217 = vector.shape_cast %216 : vector<64x4xf32> to vector<8x8x4xf32>
    %218 = vector.extract_strided_slice %217 {offsets = [0, 0, 0], sizes = [1, 8, 4], strides = [1, 1, 1]} : vector<8x8x4xf32> to vector<1x8x4xf32>
    %219 = vector.extract_strided_slice %217 {offsets = [0, 0, 0], sizes = [7, 8, 4], strides = [1, 1, 1]} : vector<8x8x4xf32> to vector<7x8x4xf32>
    %220 = tpu.concatenate %218, %219 in 0 : vector<1x8x4xf32>, vector<7x8x4xf32> -> vector<8x8x4xf32>
    %221 = vector.extract_strided_slice %217 {offsets = [1, 0, 0], sizes = [7, 8, 4], strides = [1, 1, 1]} : vector<8x8x4xf32> to vector<7x8x4xf32>
    %222 = vector.extract_strided_slice %217 {offsets = [7, 0, 0], sizes = [1, 8, 4], strides = [1, 1, 1]} : vector<8x8x4xf32> to vector<1x8x4xf32>
    %223 = tpu.concatenate %221, %222 in 0 : vector<7x8x4xf32>, vector<1x8x4xf32> -> vector<8x8x4xf32>
    %cst_58 = arith.constant 2.500000e-01 : f32
    %224 = vector.broadcast %cst_58 : f32 to vector<8x8x4xf32>
    %225 = arith.mulf %224, %220 : vector<8x8x4xf32>
    %cst_59 = arith.constant 7.500000e-01 : f32
    %226 = vector.broadcast %cst_59 : f32 to vector<8x8x4xf32>
    %227 = arith.mulf %226, %217 : vector<8x8x4xf32>
    %228 = arith.addf %225, %227 : vector<8x8x4xf32>
    %cst_60 = arith.constant 7.500000e-01 : f32
    %229 = vector.broadcast %cst_60 : f32 to vector<8x8x4xf32>
    %230 = arith.mulf %229, %217 : vector<8x8x4xf32>
    %cst_61 = arith.constant 2.500000e-01 : f32
    %231 = vector.broadcast %cst_61 : f32 to vector<8x8x4xf32>
    %232 = arith.mulf %231, %223 : vector<8x8x4xf32>
    %233 = arith.addf %230, %232 : vector<8x8x4xf32>
    %234 = vector.extract_strided_slice %228 {offsets = [0, 0, 0], sizes = [8, 1, 4], strides = [1, 1, 1]} : vector<8x8x4xf32> to vector<8x1x4xf32>
    %235 = vector.extract_strided_slice %228 {offsets = [0, 0, 0], sizes = [8, 7, 4], strides = [1, 1, 1]} : vector<8x8x4xf32> to vector<8x7x4xf32>
    %236 = tpu.concatenate %234, %235 in 1 : vector<8x1x4xf32>, vector<8x7x4xf32> -> vector<8x8x4xf32>
    %237 = vector.extract_strided_slice %228 {offsets = [0, 1, 0], sizes = [8, 7, 4], strides = [1, 1, 1]} : vector<8x8x4xf32> to vector<8x7x4xf32>
    %238 = vector.extract_strided_slice %228 {offsets = [0, 7, 0], sizes = [8, 1, 4], strides = [1, 1, 1]} : vector<8x8x4xf32> to vector<8x1x4xf32>
    %239 = tpu.concatenate %237, %238 in 1 : vector<8x7x4xf32>, vector<8x1x4xf32> -> vector<8x8x4xf32>
    %cst_62 = arith.constant 2.500000e-01 : f32
    %240 = vector.broadcast %cst_62 : f32 to vector<8x8x4xf32>
    %241 = arith.mulf %240, %236 : vector<8x8x4xf32>
    %cst_63 = arith.constant 7.500000e-01 : f32
    %242 = vector.broadcast %cst_63 : f32 to vector<8x8x4xf32>
    %243 = arith.mulf %242, %228 : vector<8x8x4xf32>
    %244 = arith.addf %241, %243 : vector<8x8x4xf32>
    %cst_64 = arith.constant 7.500000e-01 : f32
    %245 = vector.broadcast %cst_64 : f32 to vector<8x8x4xf32>
    %246 = arith.mulf %245, %228 : vector<8x8x4xf32>
    %cst_65 = arith.constant 2.500000e-01 : f32
    %247 = vector.broadcast %cst_65 : f32 to vector<8x8x4xf32>
    %248 = arith.mulf %247, %239 : vector<8x8x4xf32>
    %249 = arith.addf %246, %248 : vector<8x8x4xf32>
    %250 = vector.extract_strided_slice %233 {offsets = [0, 0, 0], sizes = [8, 1, 4], strides = [1, 1, 1]} : vector<8x8x4xf32> to vector<8x1x4xf32>
    %251 = vector.extract_strided_slice %233 {offsets = [0, 0, 0], sizes = [8, 7, 4], strides = [1, 1, 1]} : vector<8x8x4xf32> to vector<8x7x4xf32>
    %252 = tpu.concatenate %250, %251 in 1 : vector<8x1x4xf32>, vector<8x7x4xf32> -> vector<8x8x4xf32>
    %253 = vector.extract_strided_slice %233 {offsets = [0, 1, 0], sizes = [8, 7, 4], strides = [1, 1, 1]} : vector<8x8x4xf32> to vector<8x7x4xf32>
    %254 = vector.extract_strided_slice %233 {offsets = [0, 7, 0], sizes = [8, 1, 4], strides = [1, 1, 1]} : vector<8x8x4xf32> to vector<8x1x4xf32>
    %255 = tpu.concatenate %253, %254 in 1 : vector<8x7x4xf32>, vector<8x1x4xf32> -> vector<8x8x4xf32>
    %cst_66 = arith.constant 2.500000e-01 : f32
    %256 = vector.broadcast %cst_66 : f32 to vector<8x8x4xf32>
    %257 = arith.mulf %256, %252 : vector<8x8x4xf32>
    %cst_67 = arith.constant 7.500000e-01 : f32
    %258 = vector.broadcast %cst_67 : f32 to vector<8x8x4xf32>
    %259 = arith.mulf %258, %233 : vector<8x8x4xf32>
    %260 = arith.addf %257, %259 : vector<8x8x4xf32>
    %cst_68 = arith.constant 7.500000e-01 : f32
    %261 = vector.broadcast %cst_68 : f32 to vector<8x8x4xf32>
    %262 = arith.mulf %261, %233 : vector<8x8x4xf32>
    %cst_69 = arith.constant 2.500000e-01 : f32
    %263 = vector.broadcast %cst_69 : f32 to vector<8x8x4xf32>
    %264 = arith.mulf %263, %255 : vector<8x8x4xf32>
    %265 = arith.addf %262, %264 : vector<8x8x4xf32>
    %266 = vector.extract_strided_slice %53 {offsets = [0, 0, 0], sizes = [8, 8, 4], strides = [1, 1, 1]} : vector<8x8x16xf32> to vector<8x8x4xf32>
    %267 = arith.mulf %266, %244 : vector<8x8x4xf32>
    %268 = vector.extract_strided_slice %53 {offsets = [0, 0, 4], sizes = [8, 8, 4], strides = [1, 1, 1]} : vector<8x8x16xf32> to vector<8x8x4xf32>
    %269 = arith.mulf %268, %260 : vector<8x8x4xf32>
    %270 = vector.extract_strided_slice %53 {offsets = [0, 0, 8], sizes = [8, 8, 4], strides = [1, 1, 1]} : vector<8x8x16xf32> to vector<8x8x4xf32>
    %271 = arith.mulf %270, %249 : vector<8x8x4xf32>
    %272 = vector.extract_strided_slice %53 {offsets = [0, 0, 12], sizes = [8, 8, 4], strides = [1, 1, 1]} : vector<8x8x16xf32> to vector<8x8x4xf32>
    %273 = arith.mulf %272, %265 : vector<8x8x4xf32>
    %274 = tpu.concatenate %267, %269, %271, %273 in 2 : vector<8x8x4xf32>, vector<8x8x4xf32>, vector<8x8x4xf32>, vector<8x8x4xf32> -> vector<8x8x16xf32>
    %cst_70 = arith.constant 1.000000e+00 : f32
    %275 = vector.broadcast %cst_70 : f32 to vector<8x8x16xf32>
    %276 = arith.mulf %274, %275 : vector<8x8x16xf32>
    %277 = arith.addf %276, %3 : vector<8x8x16xf32>
    %c0_71 = arith.constant 0 : index
    %c0_72 = arith.constant 0 : index
    %c0_73 = arith.constant 0 : index
    %278 = vector.load %arg18[%c0_71, %c0_72, %c0_73] : memref<8x8x16xf32, #tpu.memory_space<vmem>>, vector<8x8x16xf32>
    tpu.vector_store %arg18[%c0_71, %c0_72, %c0_73], %277 {strides = array<i32>} : memref<8x8x16xf32, #tpu.memory_space<vmem>>, vector<8x8x16xf32>,
    %c1_i32 = arith.constant 1 : i32
    %279 = arith.cmpi eq, %arg1, %c1_i32 : i32
    %280 = arith.extui %279 : i1 to i32
    %c0_i32_74 = arith.constant 0 : i32
    %281 = arith.cmpi ne, %280, %c0_i32_74 : i32
    scf.if %281 {
      %c0_75 = arith.constant 0 : index
      %c0_76 = arith.constant 0 : index
      %282 = vector.load %arg15[%c0_75, %c0_76] : memref<144x16xbf16, #tpu.memory_space<vmem>>, vector<144x16xbf16>
      %c0_77 = arith.constant 0 : index
      %c0_78 = arith.constant 0 : index
      %283 = vector.load %arg16[%c0_77, %c0_78] : memref<1x16xf32, #tpu.memory_space<vmem>>, vector<1x16xf32>
      %284 = arith.truncf %277 : vector<8x8x16xf32> to vector<8x8x16xbf16>
      %cst_79 = arith.constant 0.000000e+00 : bf16
      %285 = vector.broadcast %cst_79 : bf16 to vector<1x8x16xbf16>
      %286 = tpu.concatenate %285, %284, %285 in 0 : vector<1x8x16xbf16>, vector<8x8x16xbf16>, vector<1x8x16xbf16> -> vector<10x8x16xbf16>
      %cst_80 = arith.constant 0.000000e+00 : bf16
      %287 = vector.broadcast %cst_80 : bf16 to vector<10x1x16xbf16>
      %288 = tpu.concatenate %287, %286, %287 in 1 : vector<10x1x16xbf16>, vector<10x8x16xbf16>, vector<10x1x16xbf16> -> vector<10x10x16xbf16>
      %289 = vector.extract_strided_slice %288 {offsets = [0, 0, 0], sizes = [8, 8, 16], strides = [1, 1, 1]} : vector<10x10x16xbf16> to vector<8x8x16xbf16>
      %290 = vector.extract_strided_slice %288 {offsets = [0, 1, 0], sizes = [8, 8, 16], strides = [1, 1, 1]} : vector<10x10x16xbf16> to vector<8x8x16xbf16>
      %291 = vector.extract_strided_slice %288 {offsets = [0, 2, 0], sizes = [8, 8, 16], strides = [1, 1, 1]} : vector<10x10x16xbf16> to vector<8x8x16xbf16>
      %292 = vector.extract_strided_slice %288 {offsets = [1, 0, 0], sizes = [8, 8, 16], strides = [1, 1, 1]} : vector<10x10x16xbf16> to vector<8x8x16xbf16>
      %293 = vector.extract_strided_slice %288 {offsets = [1, 1, 0], sizes = [8, 8, 16], strides = [1, 1, 1]} : vector<10x10x16xbf16> to vector<8x8x16xbf16>
      %294 = vector.extract_strided_slice %288 {offsets = [1, 2, 0], sizes = [8, 8, 16], strides = [1, 1, 1]} : vector<10x10x16xbf16> to vector<8x8x16xbf16>
      %295 = vector.extract_strided_slice %288 {offsets = [2, 0, 0], sizes = [8, 8, 16], strides = [1, 1, 1]} : vector<10x10x16xbf16> to vector<8x8x16xbf16>
      %296 = vector.extract_strided_slice %288 {offsets = [2, 1, 0], sizes = [8, 8, 16], strides = [1, 1, 1]} : vector<10x10x16xbf16> to vector<8x8x16xbf16>
      %297 = vector.extract_strided_slice %288 {offsets = [2, 2, 0], sizes = [8, 8, 16], strides = [1, 1, 1]} : vector<10x10x16xbf16> to vector<8x8x16xbf16>
      %298 = tpu.concatenate %289, %290, %291, %292, %293, %294, %295, %296, %297 in 2 : vector<8x8x16xbf16>, vector<8x8x16xbf16>, vector<8x8x16xbf16>, vector<8x8x16xbf16>, vector<8x8x16xbf16>, vector<8x8x16xbf16>, vector<8x8x16xbf16>, vector<8x8x16xbf16>, vector<8x8x16xbf16> -> vector<8x8x144xbf16>
      %299 = vector.shape_cast %298 : vector<8x8x144xbf16> to vector<64x144xbf16>
      %cst_81 = arith.constant dense<0.000000e+00> : vector<64x16xf32>
      %300 = tpu.matmul %299, %282, %cst_81 {dimension_numbers = #tpu.dot_dimension_numbers<[1], [0], [0], [1], [0, 0, 1, 1], [], []>} : vector<64x144xbf16>, vector<144x16xbf16>, vector<64x16xf32> -> vector<64x16xf32>
      %301 = vector.broadcast %283 : vector<1x16xf32> to vector<64x16xf32>
      %302 = arith.addf %300, %301 : vector<64x16xf32>
      %303 = vector.shape_cast %302 : vector<64x16xf32> to vector<8x8x16xf32>
      %c0_82 = arith.constant 0 : index
      %c0_83 = arith.constant 0 : index
      %c0_84 = arith.constant 0 : index
      %c0_85 = arith.constant 0 : index
      %304 = vector.load %arg2[%c0_82, %c0_83, %c0_84, %c0_85] : memref<1x8x8x16xf32, #tpu.memory_space<vmem>>, vector<1x8x8x16xf32>
      %305 = vector.shape_cast %304 : vector<1x8x8x16xf32> to vector<8x8x16xf32>
      %306 = arith.addf %303, %305 : vector<8x8x16xf32>
      %307 = vector.shape_cast %306 : vector<8x8x16xf32> to vector<1x8x8x16xf32>
      %c0_86 = arith.constant 0 : index
      %c0_87 = arith.constant 0 : index
      %c0_88 = arith.constant 0 : index
      %c0_89 = arith.constant 0 : index
      %308 = vector.load %arg17[%c0_86, %c0_87, %c0_88, %c0_89] : memref<1x8x8x16xf32, #tpu.memory_space<vmem>>, vector<1x8x8x16xf32>
      tpu.vector_store %arg17[%c0_86, %c0_87, %c0_88, %c0_89], %307 {strides = array<i32>} : memref<1x8x8x16xf32, #tpu.memory_space<vmem>>, vector<1x8x8x16xf32>,
    } else {
    }
    return
  }
  func.func @transform_0(%arg0: i32, %arg1: i32) -> (i32, i32, i32, i32) {
    %c0_i32 = arith.constant 0 : i32
    %c0_i32_0 = arith.constant 0 : i32
    %c0_i32_1 = arith.constant 0 : i32
    %c0_i32_2 = arith.constant 0 : i32
    return %arg0, %c0_i32, %c0_i32_0, %c0_i32_1 : i32, i32, i32, i32
  }
  func.func @transform_1(%arg0: i32, %arg1: i32) -> (i32, i32, i32) {
    %c0_i32 = arith.constant 0 : i32
    %c0_i32_0 = arith.constant 0 : i32
    %c0_i32_1 = arith.constant 0 : i32
    return %arg1, %c0_i32, %c0_i32_0 : i32, i32, i32
  }
  func.func @transform_2(%arg0: i32, %arg1: i32) -> (i32, i32, i32) {
    %c0_i32 = arith.constant 0 : i32
    %c0_i32_0 = arith.constant 0 : i32
    %c0_i32_1 = arith.constant 0 : i32
    return %arg1, %c0_i32, %c0_i32_0 : i32, i32, i32
  }
  func.func @transform_3(%arg0: i32, %arg1: i32) -> (i32, i32, i32) {
    %c0_i32 = arith.constant 0 : i32
    %c0_i32_0 = arith.constant 0 : i32
    %c0_i32_1 = arith.constant 0 : i32
    return %arg1, %c0_i32, %c0_i32_0 : i32, i32, i32
  }
  func.func @transform_4(%arg0: i32, %arg1: i32) -> (i32, i32, i32) {
    %c0_i32 = arith.constant 0 : i32
    %c0_i32_0 = arith.constant 0 : i32
    %c0_i32_1 = arith.constant 0 : i32
    return %arg1, %c0_i32, %c0_i32_0 : i32, i32, i32
  }
  func.func @transform_5(%arg0: i32, %arg1: i32) -> (i32, i32, i32) {
    %c0_i32 = arith.constant 0 : i32
    %c0_i32_0 = arith.constant 0 : i32
    %c0_i32_1 = arith.constant 0 : i32
    return %arg1, %c0_i32, %c0_i32_0 : i32, i32, i32
  }
  func.func @transform_6(%arg0: i32, %arg1: i32) -> (i32, i32, i32) {
    %c0_i32 = arith.constant 0 : i32
    %c0_i32_0 = arith.constant 0 : i32
    %c0_i32_1 = arith.constant 0 : i32
    return %arg1, %c0_i32, %c0_i32_0 : i32, i32, i32
  }
  func.func @transform_7(%arg0: i32, %arg1: i32) -> (i32, i32, i32) {
    %c0_i32 = arith.constant 0 : i32
    %c0_i32_0 = arith.constant 0 : i32
    %c0_i32_1 = arith.constant 0 : i32
    return %arg1, %c0_i32, %c0_i32_0 : i32, i32, i32
  }
  func.func @transform_8(%arg0: i32, %arg1: i32) -> (i32, i32, i32) {
    %c0_i32 = arith.constant 0 : i32
    %c0_i32_0 = arith.constant 0 : i32
    %c0_i32_1 = arith.constant 0 : i32
    return %arg1, %c0_i32, %c0_i32_0 : i32, i32, i32
  }
  func.func @transform_9(%arg0: i32, %arg1: i32) -> (i32, i32, i32) {
    %c0_i32 = arith.constant 0 : i32
    %c0_i32_0 = arith.constant 0 : i32
    %c0_i32_1 = arith.constant 0 : i32
    return %arg1, %c0_i32, %c0_i32_0 : i32, i32, i32
  }
  func.func @transform_10(%arg0: i32, %arg1: i32) -> (i32, i32, i32) {
    %c0_i32 = arith.constant 0 : i32
    %c0_i32_0 = arith.constant 0 : i32
    %c0_i32_1 = arith.constant 0 : i32
    return %arg1, %c0_i32, %c0_i32_0 : i32, i32, i32
  }
  func.func @transform_11(%arg0: i32, %arg1: i32) -> (i32, i32, i32) {
    %c0_i32 = arith.constant 0 : i32
    %c0_i32_0 = arith.constant 0 : i32
    %c0_i32_1 = arith.constant 0 : i32
    return %arg1, %c0_i32, %c0_i32_0 : i32, i32, i32
  }
  func.func @transform_12(%arg0: i32, %arg1: i32) -> (i32, i32, i32) {
    %c0_i32 = arith.constant 0 : i32
    %c0_i32_0 = arith.constant 0 : i32
    %c0_i32_1 = arith.constant 0 : i32
    return %arg1, %c0_i32, %c0_i32_0 : i32, i32, i32
  }
  func.func @transform_13(%arg0: i32, %arg1: i32) -> (i32, i32) {
    %c0_i32 = arith.constant 0 : i32
    %c0_i32_0 = arith.constant 0 : i32
    %c0_i32_1 = arith.constant 0 : i32
    return %c0_i32, %c0_i32_0 : i32, i32
  }
  func.func @transform_14(%arg0: i32, %arg1: i32) -> (i32, i32) {
    %c0_i32 = arith.constant 0 : i32
    %c0_i32_0 = arith.constant 0 : i32
    %c0_i32_1 = arith.constant 0 : i32
    return %c0_i32, %c0_i32_0 : i32, i32
  }
  func.func @transform_15(%arg0: i32, %arg1: i32) -> (i32, i32, i32, i32) {
    %c0_i32 = arith.constant 0 : i32
    %c0_i32_0 = arith.constant 0 : i32
    %c0_i32_1 = arith.constant 0 : i32
    %c0_i32_2 = arith.constant 0 : i32
    return %arg0, %c0_i32, %c0_i32_0, %c0_i32_1 : i32, i32, i32, i32
  }
}

</mosaic_0001>

<bundles_post_ra>
// kernel: tile.32
= control target key start
LH: loop header
LB: loop body
LE: loop exit
PB: predicated region body
PF: predicated region fallthrough
CT: control target
= control target key end

     0   :  { %s22_s0 = inlined_call_operand.vmem [shape: f32[4], index: 0, kind: input, shape index: {}]   ;;  %s23_s1 = inlined_call_operand.vmem [shape: f32[4,4], index: 1, kind: output, shape index: {}]  }
   0x1   :  { %v4_v0 = vld [vmem:[%s22_s0] ss:$0 sm:$0xff] }
   0x2   :  { %5 = vst [vmem:[%s23_s1] sm:$0xf] %v4_v0 }

// kernel: tile.34
= control target key start
LH: loop header
LB: loop body
LE: loop exit
PB: predicated region body
PF: predicated region fallthrough
CT: control target
= control target key end

     0   :  { %s37_s8 = smov 4   ;;  %s38_s9 = smov 8   ;;  %vm7_vm0 = vcmask 31744   ;;  %vm13_vm1 = vcmask 130144   ;;  %vm19_vm2 = vcmask 97344   ;;  %vm25_vm3 = vcmask 64544   ;;  %s55_s0 = inlined_call_operand.vmem [shape: f32[4,4], index: 0, kind: input, shape index: {}]   ;;  %s56_s1 = inlined_call_operand.vmem [shape: f32[1,1,16], index: 1, kind: output, shape index: {}]  }
   0x1   :  { %v4_v0 = vld [vmem:[%s55_s0] sm:$0xf]  ;;  %s36_s0 = smov 12  }
   0x2   :  { %5 = vst [vmem:[#allocation1] sm:$0xf] %v4_v0 }
   0x9   :  { %v10_v1 = vld [vmem:[#allocation1 + $0x3] sm:$0x1]   ;;  %v22_v2 = vld [vmem:[#allocation1 + $0x1] sm:$0x1]   ;;  %v16_v3 = vld [vmem:[#allocation1 + $0x2] sm:$0x1]  }
   0xa   :  { %11 = vrot.lane.b32.xlu0 %v10_v1, %s36_s0  ;;  %23 = vrot.lane.b32.xlu1 %v22_v2, %s37_s8  ;;  %v6_v4 = vld [vmem:[#allocation1] sm:$0x1]  }
   0xb   :  { %8 = vst.msk [vmem:[#allocation0] sm:$0x1] %vm7_vm0, %v6_v4  }
  0x12   :  { %17 = vrot.lane.b32.xlu0 %v16_v3, %s38_s9 }
  0x7c   :  { %v12_v5 = vpop.permute.xlu0 %11   ;;  %v24_v6 = vpop.permute.xlu1 %23  }
  0x7d   :  { %14 = vst.msk [vmem:[#allocation0] sm:$0x1] %vm13_vm1, %v12_v5  }
  0x84   :  { %v18_v7 = vpop.permute.xlu0 %17  }
  0x85   :  { %20 = vst.msk [vmem:[#allocation0] sm:$0x1] %vm19_vm2, %v18_v7  }
  0x86   :  { %26 = vst.msk [vmem:[#allocation0] sm:$0x1] %vm25_vm3, %v24_v6  }
  0x8d   :  { %v29_v8 = vld [vmem:[#allocation0] sm:$0x1] }
  0x8e   :  { %32 = vst [vmem:[%s56_s1] sm:$0x1] %v29_v8 }

// kernel: tile.49
= control target key start
LH: loop header
LB: loop body
LE: loop exit
PB: predicated region body
PF: predicated region fallthrough
CT: control target
= control target key end

     0   :  { %s37_s8 = smov 4   ;;  %s38_s9 = smov 8   ;;  %vm7_vm0 = vcmask 31744   ;;  %vm13_vm1 = vcmask 130144   ;;  %vm19_vm2 = vcmask 97344   ;;  %vm25_vm3 = vcmask 64544   ;;  %s55_s0 = inlined_call_operand.vmem [shape: f32[4,4], index: 0, kind: input, shape index: {}]   ;;  %s56_s1 = inlined_call_operand.vmem [shape: f32[1,16], index: 1, kind: output, shape index: {}]  }
   0x1   :  { %v4_v0 = vld [vmem:[%s55_s0] sm:$0xf]  ;;  %s36_s0 = smov 12  }
   0x2   :  { %5 = vst [vmem:[#allocation1] sm:$0xf] %v4_v0 }
   0x9   :  { %v10_v1 = vld [vmem:[#allocation1 + $0x3] sm:$0x1]   ;;  %v22_v2 = vld [vmem:[#allocation1 + $0x1] sm:$0x1]   ;;  %v16_v3 = vld [vmem:[#allocation1 + $0x2] sm:$0x1]  }
   0xa   :  { %11 = vrot.lane.b32.xlu0 %v10_v1, %s36_s0  ;;  %23 = vrot.lane.b32.xlu1 %v22_v2, %s37_s8  ;;  %v6_v4 = vld [vmem:[#allocation1] sm:$0x1]  }
   0xb   :  { %8 = vst.msk [vmem:[#allocation0] sm:$0x1] %vm7_vm0, %v6_v4  }
  0x12   :  { %17 = vrot.lane.b32.xlu0 %v16_v3, %s38_s9 }
  0x7c   :  { %v12_v5 = vpop.permute.xlu0 %11   ;;  %v24_v6 = vpop.permute.xlu1 %23  }
  0x7d   :  { %14 = vst.msk [vmem:[#allocation0] sm:$0x1] %vm13_vm1, %v12_v5  }
  0x84   :  { %v18_v7 = vpop.permute.xlu0 %17  }
  0x85   :  { %20 = vst.msk [vmem:[#allocation0] sm:$0x1] %vm19_vm2, %v18_v7  }
  0x86   :  { %26 = vst.msk [vmem:[#allocation0] sm:$0x1] %vm25_vm3, %v24_v6  }
  0x8d   :  { %v29_v8 = vld [vmem:[#allocation0] sm:$0x1] }
  0x8e   :  { %32 = vst [vmem:[%s56_s1] sm:$0x1] %v29_v8 }

// kernel: residual_group_forward.1
= control target key start
LH: loop header
LB: loop body
LE: loop exit
PB: predicated region body
PF: predicated region fallthrough
CT: control target
= control target key end

     0   :  { %s4856_s18 = smov 0   ;;  %s4858_s19 = smov 0   ;;  %s6807_s0 = inlined_call_operand.vmem [shape: f32[2,8,8,16], index: 0, kind: input, shape index: {}]   ;;  %s6808_s1 = inlined_call_operand.vmem [shape: bf16[2,144,16], index: 1, kind: input, shape index: {}]   ;;  %s6809_s2 = inlined_call_operand.vmem [shape: f32[2,1,16], index: 2, kind: input, shape index: {}]   ;;  %s6810_s3 = inlined_call_operand.vmem [shape: bf16[2,144,16], index: 3, kind: input, shape index: {}]   ;;  %s6811_s4 = inlined_call_operand.vmem [shape: f32[2,1,16], index: 4, kind: input, shape index: {}]   ;;  %s6812_s5 = inlined_call_operand.vmem [shape: f32[2,9,16], index: 5, kind: input, shape index: {}]   ;;  %s6813_s6 = inlined_call_operand.vmem [shape: f32[2,1,16], index: 6, kind: input, shape index: {}]   ;;  %s6814_s7 = inlined_call_operand.vmem [shape: bf16[2,16,16], index: 7, kind: input, shape index: {}]   ;;  %s6815_s8 = inlined_call_operand.vmem [shape: f32[2,9,16], index: 8, kind: input, shape index: {}]   ;;  %s6816_s9 = inlined_call_operand.vmem [shape: f32[2,1,16], index: 9, kind: input, shape index: {}]   ;;  %s6817_s10 = inlined_call_operand.vmem [shape: bf16[2,16,16], index: 10, kind: input, shape index: {}]   ;;  %s6818_s11 = inlined_call_operand.vmem [shape: bf16[2,16,4], index: 11, kind: input, shape index: {}]   ;;  %s6819_s12 = inlined_call_operand.vmem [shape: f32[2,1,4], index: 12, kind: input, shape index: {}]   ;;  %s6820_s13 = inlined_call_operand.vmem [shape: bf16[144,16], index: 13, kind: input, shape index: {}]   ;;  %s6821_s14 = inlined_call_operand.vmem [shape: f32[1,16], index: 14, kind: input, shape index: {}]   ;;  %s6822_s15 = inlined_call_operand.vmem [shape: f32[2,8,8,16], index: 15, kind: output, shape index: {}]  }
   0x1   :  { %6830 = sst [smem:[#allocation10_spill]] %s6807_s0  ;;  %s4860_s20 = smov 0  }
   0x2   :  { %6831 = sst [smem:[#allocation11_spill]] %s6808_s1  ;;  %s4862_s21 = smov 0  }
   0x3   :  { %6832 = sst [smem:[#allocation12_spill]] %s6810_s3  ;;  %s4864_s22 = smov 0  }
   0x4   :  { %6833 = sst [smem:[#allocation13_spill]] %s6811_s4 }
   0x5   :  { %6834 = sst [smem:[#allocation14_spill]] %s6812_s5 }
   0x6   :  { %6835 = sst [smem:[#allocation15_spill]] %s6813_s6 }
   0x7   :  { %6836 = sst [smem:[#allocation16_spill]] %s6820_s13 }
   0x8   :  { %6837 = sst [smem:[#allocation17_spill]] %s6821_s14 }
   0x9 LB: > { %6838 = sst [smem:[#allocation3_spill]] %s4739_s18  ;;  %s34_s23 = sadd.s32 1, %s4747_s20  ;;  %s4755_s22 = sphi %s4864_s22, %s25_s22   ;;  %s4751_s21 = sphi %s4862_s21, %s6875_s21   ;;  %s4747_s20 = sphi %s4860_s20, %s6874_s20   ;;  %s4743_s19 = sphi %s4858_s19, %s6873_s19   ;;  %s4739_s18 = sphi %s4856_s18, %s6872_s18  }
   0xa   : > { %6839 = sst [smem:[#allocation4_spill]] %s4747_s20  ;;  %s37_s24 = sadd.s32 1, %s4751_s21 }
   0xb   : > { %6840 = sst [smem:[#allocation5_spill]] %s4751_s21  ;;  %p35_p0 = scmp.ge.s32.totalorder %s34_s23, 2 }
   0xc   : > { %6841 = sst [smem:[#allocation6_spill]] %s4755_s22  ;;  %p4390_p1 = scmp.ge.s32.totalorder %s4755_s22, 1 }
   0xd   : > { %p559_p2 = scmp.lt.s32.totalorder %s4755_s22, 5  ;;  %s6877_s23 = smov (%p35_p0, %s34_s23), 0 }
   0xe   : > { %6842 = sst [smem:[#allocation7_spill]] %s6877_s23  ;;  %s6879_s24 = smov (!%p35_p0, %s37_s24), %s4751_s21 }
   0xf   : > { %p560_p3 = pnand %p4390_p1, %p559_p2  ;;  %p39_p4 = scmp.ge.s32.totalorder %s6879_s24, 2 }
  0x11   : > { %s6881_s24 = smov (%p39_p4, %s6879_s24), 0  ;;  %563 = sbr.rel (%p560_p3) target bundleno = 1893 (0x765), region = 80 }
  0x12   : > { %6843 = sst [smem:[#allocation8_spill]] %s6881_s24 }
  0x16   : > { %p657_p5 = scmp.lt.s32.totalorder %s4743_s19, 1  ;;  %p662_p6 = scmp.lt.s32.totalorder %s4739_s18, 1 }
  0x17   : > { %s6844_s0 = sld [smem:[#allocation10_spill]] }
  0x18   : > { %s6883_s19 = smov (!%p657_p5, %s4743_s19), 1  ;;  %s6847_s1 = sld [smem:[#allocation11_spill]] }
  0x19   : > { %s4890_s25 = scalar_select %p662_p6, %s4739_s18, 1 }
  0x1a   : > { %s4555_s26 = sshll.u32 %s6883_s19, 6  ;;  %s6848_s3 = sld [smem:[#allocation12_spill]] }
  0x1b   : > { %s4609_s30 = smul.u32 72, %s4890_s25  ;;  %s4556_s28 = sshll.u32 %s4890_s25, 4 }
  0x1c   : > { %s6850_s5 = sld [smem:[#allocation14_spill]]  ;;  %s4927_s23 = sshll.u32 %s4890_s25, 3 }
  0x1d   : > { %s4895_s29 = scalar_lea.vmem %s6844_s0, %s4555_s26  ;;  %s4936_s20 = scalar_lea.vmem %s6815_s8, %s4556_s28 }
  0x1e   : > { %6845 = sst [smem:[#allocation9_spill]] %s4895_s29  ;;  %s4909_s13 = scalar_lea.vmem %s6847_s1, %s4609_s30 }
  0x1f   : > { %s698_s24 = scalar_lea.vmem %s6816_s9, %s4890_s25  ;;  %s703_s1 = scalar_lea.vmem %s6817_s10, %s4927_s23 }
  0x20   : > { %s4914_s27 = scalar_lea.vmem %s6848_s3, %s4609_s30  ;;  %s708_s14 = scalar_lea.vmem %s6818_s11, %s4927_s23 }
  0x21   : > { %s711_s18 = scalar_lea.vmem %s6819_s12, %s4890_s25  ;;  %s6851_s19 = sld [smem:[#allocation3_spill]] }
  0x22   : > { %s4924_s21 = scalar_lea.vmem %s6850_s5, %s4556_s28  ;;  %s4957_s28 = scalar_lea.vmem %s6822_s15, %s4555_s26 }
  0x27   : > { %p4407_p7 = scmp.ne.s32.totalorder %s6851_s19, 0 }
  0x28   : > { %s6852_s0 = sld [smem:[#allocation9_spill]] (!%p4407_p7) }
  0x29   : > { %721 = sbr.rel (%p4407_p7) target bundleno = 55 (0x37), region = 84 }
  0x2e   : > { %v722_v0 = vld [vmem:[%s6852_s0] sm:$0xff]  ;;  %vm730_vm0 = vcmask 130048   ;;  %v723_v1 = vld [vmem:[%s6852_s0 + $0x8] sm:$0xff]  ;;  %v724_v2 = vld [vmem:[%s6852_s0 + $0x10] sm:$0xff] }
  0x2f   : > { %731 = vst.msk [vmem:[#allocation2] sm:$0xff] %vm730_vm0, %v722_v0  ;;  %v725_v3 = vld [vmem:[%s6852_s0 + $0x18] sm:$0xff]  ;;  %v726_v4 = vld [vmem:[%s6852_s0 + $0x20] sm:$0xff]  ;;  %v727_v5 = vld [vmem:[%s6852_s0 + $0x28] sm:$0xff] }
  0x30   : > { %732 = vst.msk [vmem:[#allocation2 + $0x8] sm:$0xff] %vm730_vm0, %v723_v1  ;;  %v728_v6 = vld [vmem:[%s6852_s0 + $0x30] sm:$0xff]  ;;  %v729_v7 = vld [vmem:[%s6852_s0 + $0x38] sm:$0xff] }
  0x31   : > { %733 = vst.msk [vmem:[#allocation2 + $0x10] sm:$0xff] %vm730_vm0, %v724_v2 }
  0x32   : > { %734 = vst.msk [vmem:[#allocation2 + $0x18] sm:$0xff] %vm730_vm0, %v725_v3 }
  0x33   : > { %735 = vst.msk [vmem:[#allocation2 + $0x20] sm:$0xff] %vm730_vm0, %v726_v4 }
  0x34   : > { %736 = vst.msk [vmem:[#allocation2 + $0x28] sm:$0xff] %vm730_vm0, %v727_v5 }
  0x35   : > { %737 = vst.msk [vmem:[#allocation2 + $0x30] sm:$0xff] %vm730_vm0, %v728_v6 }
  0x36   : > { %738 = vst.msk [vmem:[#allocation2 + $0x38] sm:$0xff] %vm730_vm0, %v729_v7 }
  0x37 PF: > { %vm846_vm1 = vcmask 1040384   ;;  %vm847_vm2 = vsmask.f32 256  ;;  %vm858_vm3 = vcmask 1044480   ;;  %v4757_v8 = vmov 0   ;;  %v739_v11 = vld [vmem:[#allocation2] sm:$0xff]  ;;  %s6857_s22 = scalar_lea.vmem %s6809_s2, %s4890_s25  ;;  %s6858_s19 = scalar_lea.vmem %s6814_s7, %s4927_s23 }
  0x38   : > { %v777_v9 = vrot.slane %v4757_v8, 7  ;;  %vm4969_vm4 = vmand %vm846_vm1, %vm847_vm2  ;;  %vm859_vm5 = vsmask.f32 4352  ;;  %v740_v12 = vld [vmem:[#allocation2 + $0x8] sm:$0xff]  ;;  %v766_v14 = vpack.c.bf16 %v739_v11, %v739_v11  ;;  %v741_v16 = vld [vmem:[#allocation2 + $0x10] sm:$0xff]  ;;  %s4758_s3 = smov 32  }
  0x39   : > { %vm4973_vm6 = vmand %vm858_vm3, %vm859_vm5  ;;  %v767_v15 = vpack.c.bf16 %v740_v12, %v740_v12  ;;  %v768_v18 = vpack.c.bf16 %v741_v16, %v741_v16  ;;  %s4759_s4 = smov 16   ;;  %s4760_s5 = smov 48   ;;  %v742_v53 = vld [vmem:[#allocation2 + $0x18] sm:$0xff]  ;;  %vm1063_vm7 = vcmask 130048   ;;  %vm1080_vm8 = vcmask 261120  }
  0x3a   : > { %v849_v17 = vsel %vm4969_vm4, 0, %v777_v9  ;;  %v782_v20 = vshrl.u32 %v766_v14, 16  ;;  %v785_v21 = vshll.u32 %v766_v14, 16  ;;  %s4761_s6 = smov 64   ;;  %s4762_s26 = smov 80   ;;  %v769_v57 = vpack.c.bf16 %v742_v53, %v742_v53  ;;  %v743_v63 = vld [vmem:[#allocation2 + $0x20] sm:$0xff] }
  0x3b   : > { %v4981_v19 = vsel %vm4973_vm6, %v849_v17, 0  ;;  %v789_v22 = vshrl.u32 %v767_v15, 16  ;;  %v792_v26 = vshll.u32 %v767_v15, 16  ;;  %v796_v33 = vshrl.u32 %v768_v18, 16  ;;  %s4763_s16 = smov 96   ;;  %s4764_s29 = smov 112  }
  0x3c   : > { %v950_v23 = vrot.slane %v4981_v19, 1  ;;  %v871_v24 = vshrl.u32 %v4981_v19, 16  ;;  %v873_v25 = vshll.u32 %v4981_v19, 16  ;;  %v784_v27 = vrot.slane %v782_v20, 7  ;;  %v744_v16 = vld [vmem:[#allocation2 + $0x28] sm:$0xff] }
  0x3d   : > { %v791_v28 = vrot.slane %v789_v22, 7  ;;  %v798_v42 = vrot.slane %v796_v33, 7  ;;  %v799_v43 = vshll.u32 %v768_v18, 16  ;;  %v803_v59 = vshrl.u32 %v769_v57, 16 }
  0x3e   : > { %958 = vrot.lane.b32.xlu1 %v950_v23, %s4758_s3  ;;  %v875_v29 = vrot.slane %v873_v25, 1  ;;  %v787_v30 = vor.u32 %v785_v21, %v784_v27  ;;  %v806_v61 = vshll.u32 %v769_v57, 16  ;;  %v770_v1 = vpack.c.bf16 %v743_v63, %v743_v63  ;;  %v4567_v57 = vld [vmem:[%s4909_s13 + $0x28] sm:$0xff]  ;;  %v4566_v63 = vld [vmem:[%s4909_s13 + $0x20] sm:$0xff] }
  0x3f   : > { %v794_v31 = vor.u32 %v792_v26, %v791_v28  ;;  %v801_v48 = vor.u32 %v799_v43, %v798_v42  ;;  %v805_v60 = vrot.slane %v803_v59, 7  ;;  %v771_v18 = vpack.c.bf16 %v744_v16, %v744_v16 }
  0x40   : > { %v4989_v32 = vor.u32 %v875_v29, %v871_v24  ;;  %v850_v34 = vsel %vm4969_vm4, 0, %v787_v30  ;;  %v810_v4 = vshrl.u32 %v770_v1, 16  ;;  %v813_v7 = vshll.u32 %v770_v1, 16  ;;  %v745_v30 = vld [vmem:[#allocation2 + $0x30] sm:$0xff] }
  0x41   : > { %v851_v35 = vsel %vm4969_vm4, 0, %v794_v31  ;;  %v4999_v36 = vsel %vm4973_vm6, %v850_v34, 0  ;;  %v852_v50 = vsel %vm4969_vm4, 0, %v801_v48  ;;  %v808_v62 = vor.u32 %v806_v61, %v805_v60 }
  0x42   : > { %926 = vrot.lane.b32.xlu0 %v4989_v32, %s4759_s4  ;;  %v5003_v37 = vsel %vm4973_vm6, %v851_v35, 0  ;;  %v951_v38 = vrot.slane %v4999_v36, 1  ;;  %v878_v39 = vshrl.u32 %v4999_v36, 16  ;;  %v880_v40 = vshll.u32 %v4999_v36, 16  ;;  %975 = vrot.lane.b32.xlu2 %v4999_v36, %s4760_s5 }
  0x43   : > { %v887_v41 = vshll.u32 %v5003_v37, 16  ;;  %v885_v45 = vshrl.u32 %v5003_v37, 16  ;;  %v5021_v51 = vsel %vm4973_vm6, %v852_v50, 0  ;;  %v5029_v54 = vrot.slane %v5003_v37, 1 }
  0x44   : > { %v882_v44 = vrot.slane %v880_v40, 1  ;;  %v894_v52 = vshll.u32 %v5021_v51, 16  ;;  %v892_v55 = vshrl.u32 %v5021_v51, 16  ;;  %v853_v0 = vsel %vm4969_vm4, 0, %v808_v62 }
  0x45   : > { %v889_v46 = vrot.slane %v887_v41, 1  ;;  %v5044_v2 = vrot.slane %v5021_v51, 1  ;;  %v5049_v3 = vsel %vm4973_vm6, %v853_v0, 0  ;;  %v812_v6 = vrot.slane %v810_v4, 7  ;;  %v4565_v4 = vld [vmem:[%s4909_s13 + $0x18] sm:$0xff] }
  0x46   : > { %960 = vrot.lane.b32.xlu1 %v951_v38, %s4758_s3  ;;  %v883_v47 = vor.u32 %v882_v44, %v878_v39  ;;  %v896_v56 = vrot.slane %v894_v52, 1  ;;  %v901_v5 = vshll.u32 %v5049_v3, 16  ;;  %v899_v8 = vshrl.u32 %v5049_v3, 16  ;;  %v4568_v52 = vld [vmem:[%s4909_s13 + $0x30] sm:$0xff] }
  0x47   : > { %v890_v49 = vor.u32 %v889_v46, %v885_v45  ;;  %v815_v11 = vor.u32 %v813_v7, %v812_v6  ;;  %v5063_v14 = vrot.slane %v5049_v3, 1  ;;  %v817_v21 = vshrl.u32 %v771_v18, 16  ;;  %v4569_v45 = vld [vmem:[%s4909_s13 + $0x38] sm:$0xff]  ;;  %v4564_v7 = vld [vmem:[%s4909_s13 + $0x10] sm:$0xff] }
  0x48   : > { %v897_v58 = vor.u32 %v896_v56, %v892_v55  ;;  %v903_v9 = vrot.slane %v901_v5, 1  ;;  %v820_v26 = vshll.u32 %v771_v18, 16  ;;  %v772_v33 = vpack.c.bf16 %v745_v30, %v745_v30  ;;  %v746_v46 = vld [vmem:[#allocation2 + $0x38] sm:$0xff]  ;;  %1287 = vmatpush.bf16.msra.mxu0 %v4569_v45  ;;  %4592 = vmatpush.bf16.msra.mxu2 %v4569_v45  ;;  %v4562_v18 = vld [vmem:[%s4909_s13] sm:$0xff] }
  0x49   : > { %v854_v15 = vsel %vm4969_vm4, 0, %v815_v11  ;;  %v819_v25 = vrot.slane %v817_v21, 7  ;;  %v773_v48 = vpack.c.bf16 %v746_v46, %v746_v46  ;;  %v4563_v11 = vld [vmem:[%s4909_s13 + $0x8] sm:$0xff]  ;;  %vm1097_vm9 = vcmask 392192  }
  0x4a   : > { %928 = vrot.lane.b32.xlu0 %v883_v47, %s4759_s4  ;;  %977 = vrot.lane.b32.xlu2 %v5003_v37, %s4760_s5  ;;  %v904_v12 = vor.u32 %v903_v9, %v899_v8  ;;  %v5070_v17 = vsel %vm4973_vm6, %v854_v15, 0  ;;  %v827_v42 = vshll.u32 %v772_v33, 16  ;;  %vm1114_vm10 = vcmask 523264  }
  0x4b   : > { %v908_v20 = vshll.u32 %v5070_v17, 16  ;;  %v906_v22 = vshrl.u32 %v5070_v17, 16  ;;  %v822_v28 = vor.u32 %v820_v26, %v819_v25  ;;  %v5084_v29 = vrot.slane %v5070_v17, 1 }
  0x4c   : > { %1288 = vmatpush.bf16.msra.mxu0 %v4568_v52  ;;  %v831_v55 = vshrl.u32 %v773_v48, 16  ;;  %4593 = vmatpush.bf16.msra.mxu2 %v4568_v52  ;;  %v834_v59 = vshll.u32 %v773_v48, 16  ;;  %v1191_v26 = vunpack.c.l.b16 %v5029_v54  ;;  %vm1131_vm11 = vcmask 654336  }
  0x4d   : > { %v910_v24 = vrot.slane %v908_v20, 1  ;;  %v855_v31 = vsel %vm4969_vm4, 0, %v822_v28  ;;  %vm1165_vm12 = vcmask 916480   ;;  %vm1148_vm13 = vcmask 785408  }
  0x4e   : > { %1000 = vrot.lane.b32.xlu1 %v890_v49, %s4761_s6  ;;  %v5093_v34 = vsel %vm4973_vm6, %v855_v31, 0  ;;  %vm2005_vm14 = vcmask 1046528   ;;  %vm2079_vm15 = vcmask 1045504   ;;  %vm3578_vm0 = vcmask 64512  }
  0x4f   : > { %v911_v27 = vor.u32 %v910_v24, %v906_v22  ;;  %v915_v35 = vshll.u32 %v5093_v34, 16  ;;  %v913_v39 = vshrl.u32 %v5093_v34, 16  ;;  %v4570_v24 = vld [vmem:[%s4909_s13 + $0x40] sm:$0xff]  ;;  %vm3587_vm2 = vcmask 97280  }
  0x50   : > { %1289 = vmatpush.bf16.msra.mxu0 %v4567_v57  ;;  %4594 = vmatpush.bf16.msra.mxu2 %v4567_v57 }
  0x51   : > { %v917_v40 = vrot.slane %v915_v35, 1  ;;  %1323 = vmatpush.bf16.msra.mxu1 %v4570_v24 }
  0x52   : > { %998 = vrot.lane.b32.xlu0 %v883_v47, %s4761_s6  ;;  %1015 = vrot.lane.b32.xlu2 %v951_v38, %s4762_s26  ;;  %v824_v38 = vshrl.u32 %v772_v33, 16  ;;  %v5106_v47 = vrot.slane %v5093_v34, 1 }
  0x53   : > { %v918_v43 = vor.u32 %v917_v40, %v913_v39 }
  0x54   : > { %v826_v41 = vrot.slane %v824_v38, 7  ;;  %1290 = vmatpush.bf16.msra.mxu0 %v4566_v63  ;;  %4595 = vmatpush.bf16.msra.mxu2 %v4566_v63 }
  0x56   : > { %1031 = vrot.lane.b32.xlu1 %v5003_v37, %s4763_s16  ;;  %v829_v44 = vor.u32 %v827_v42, %v826_v41 }
  0x58   : > { %1291 = vmatpush.bf16.msra.mxu0 %v4565_v4  ;;  %4596 = vmatpush.bf16.msra.mxu2 %v4565_v4 }
  0x5a   : > { %1017 = vrot.lane.b32.xlu0 %v5029_v54, %s4762_s26  ;;  %1033 = vrot.lane.b32.xlu2 %v5021_v51, %s4763_s16 }
  0x5c   : > { %1292 = vmatpush.bf16.msra.mxu0 %v4564_v7  ;;  %4597 = vmatpush.bf16.msra.mxu2 %v4564_v7  ;;  %v1197_v7 = vunpack.c.l.b16 %v5084_v29 }
  0x5e   : > { %1049 = vrot.lane.b32.xlu1 %v897_v58, %s4764_s29 }
  0x60   : > { %1293 = vmatpush.bf16.msra.mxu0 %v4563_v11  ;;  %4598 = vmatpush.bf16.msra.mxu2 %v4563_v11 }
  0x62   : > { %1047 = vrot.lane.b32.xlu0 %v890_v49, %s4764_s29  ;;  %930 = vrot.lane.b32.xlu2 %v890_v49, %s4759_s4  ;;  %v856_v49 = vsel %vm4969_vm4, 0, %v829_v44 }
  0x63   : > { %v5118_v53 = vsel %vm4973_vm6, %v856_v49, 0 }
  0x64   : > { %v922_v56 = vshll.u32 %v5118_v53, 16  ;;  %v920_v60 = vshrl.u32 %v5118_v53, 16  ;;  %v5154_v20 = vrot.slane %v5118_v53, 1  ;;  %1294 = vmatpush.bf16.msra.mxu0 %v4562_v18  ;;  %4599 = vmatpush.bf16.msra.mxu2 %v4562_v18 }
  0x66   : > { %962 = vrot.lane.b32.xlu1 %v5029_v54, %s4758_s3  ;;  %v924_v61 = vrot.slane %v922_v56, 1 }
  0x68   : > { %v925_v1 = vor.u32 %v924_v61, %v920_v60 }
  0x6a   : > { %932 = vrot.lane.b32.xlu0 %v897_v58, %s4759_s4  ;;  %964 = vrot.lane.b32.xlu2 %v5044_v2, %s4758_s3 }
  0x6e   : > { %981 = vrot.lane.b32.xlu1 %v5049_v3, %s4760_s5 }
  0x72   : > { %979 = vrot.lane.b32.xlu0 %v5021_v51, %s4760_s5  ;;  %1002 = vrot.lane.b32.xlu2 %v897_v58, %s4761_s6  ;;  %v833_v58 = vrot.slane %v831_v55, 7 }
  0x74   : > { %v836_v0 = vor.u32 %v834_v59, %v833_v58 }
  0x76   : > { %1019 = vrot.lane.b32.xlu1 %v5044_v2, %s4762_s26  ;;  %v857_v5 = vsel %vm4969_vm4, 0, %v836_v0 }
  0x77   : > { %v5143_v8 = vsel %vm4973_vm6, %v857_v5, 0  ;;  %v1195_v5 = vunpack.c.l.b16 %v5063_v14 }
  0x78   : > { %v992_v21 = vshrl.u32 %v5143_v8, 16  ;;  %v1014_v39 = vrot.slane %v5143_v8, 1 }
  0x7a   : > { %1004 = vrot.lane.b32.xlu0 %v904_v12, %s4761_s6  ;;  %1021 = vrot.lane.b32.xlu2 %v5063_v14, %s4762_s26 }
  0x7e   : > { %1037 = vrot.lane.b32.xlu1 %v5070_v17, %s4763_s16 }
  0x82   : > { %1035 = vrot.lane.b32.xlu0 %v5049_v3, %s4763_s16  ;;  %1051 = vrot.lane.b32.xlu2 %v904_v12, %s4764_s29 }
  0x86   : > { %934 = vrot.lane.b32.xlu1 %v904_v12, %s4759_s4  ;;  %v994_v12 = vshll.u32 %v5143_v8, 16 }
  0x88   : > { %v996_v22 = vrot.slane %v994_v12, 1 }
  0x8a   : > { %1053 = vrot.lane.b32.xlu0 %v911_v27, %s4764_s29  ;;  %936 = vrot.lane.b32.xlu2 %v911_v27, %s4759_s4  ;;  %v997_v28 = vor.u32 %v996_v22, %v992_v21 }
  0x8e   : > { %968 = vrot.lane.b32.xlu1 %v5084_v29, %s4758_s3 }
  0x92   : > { %966 = vrot.lane.b32.xlu0 %v5063_v14, %s4758_s3  ;;  %983 = vrot.lane.b32.xlu2 %v5070_v17, %s4760_s5 }
  0x96   : > { %1006 = vrot.lane.b32.xlu1 %v911_v27, %s4761_s6  ;;  %v1193_v27 = vunpack.c.l.b16 %v5044_v2 }
  0x98   : > { %v1210_v30 = vpack.c.b16 %v1193_v27, %v1191_v26 }
  0x9a   : > { %985 = vrot.lane.b32.xlu0 %v5093_v34, %s4760_s5  ;;  %1008 = vrot.lane.b32.xlu2 %v918_v43, %s4761_s6 }
  0x9b   : > { %4444 = vmatmul.msk.bf16.vlgmr.msra.gmra.mxu1 %vm1063_vm7, %v1210_v30 }
  0x9c   : > { %v5111_v50 = vpop.permute.xlu2 %975 }
  0x9e   : > { %1025 = vrot.lane.b32.xlu1 %v5106_v47, %s4762_s26 }
  0xa2   : > { %1023 = vrot.lane.b32.xlu0 %v5084_v29, %s4762_s26  ;;  %1039 = vrot.lane.b32.xlu2 %v5093_v34, %s4763_s16 }
  0xa4   : > { %v5127_v62 = vpop.permute.xlu2 %977 }
  0xa6   : > { %1055 = vrot.lane.b32.xlu1 %v918_v43, %s4764_s29 }
  0xaa   : > { %1041 = vrot.lane.b32.xlu0 %v5118_v53, %s4763_s16  ;;  %1057 = vrot.lane.b32.xlu2 %v925_v1, %s4764_s29 }
  0xac   : > { %v5137_v6 = vpop.permute.xlu2 %1015 }
  0xae   : > { %940 = vrot.lane.b32.xlu1 %v925_v1, %s4759_s4 }
  0xb0   : > { %v959_v9 = vpop.permute.xlu1 %958 }
  0xb2   : > { %938 = vrot.lane.b32.xlu0 %v918_v43, %s4759_s4  ;;  %970 = vrot.lane.b32.xlu2 %v5106_v47, %s4758_s3 }
  0xb4   : > { %v927_v15 = vpop.permute.xlu0 %926  ;;  %v1034_v16 = vpop.permute.xlu2 %1033 }
  0xb5   : > { %v1065_v42 = vsel %vm1063_vm7, %v4981_v19, %v927_v15 }
  0xb6   : > { %987 = vrot.lane.b32.xlu1 %v5118_v53, %s4760_s5  ;;  %v5185_v43 = vsel %vm1080_vm8, %v1065_v42, %v959_v9  ;;  %v1199_v42 = vunpack.c.l.b16 %v5106_v47 }
  0xb7   : > { %v1099_v46 = vsel %vm1097_vm9, %v5185_v43, %v5111_v50 }
  0xb8   : > { %v961_v25 = vpop.permute.xlu1 %960 }
  0xba   : > { %972 = vrot.lane.b32.xlu0 %v5154_v20, %s4758_s3  ;;  %989 = vrot.lane.b32.xlu2 %v5143_v8, %s4760_s5 }
  0xbc   : > { %v929_v31 = vpop.permute.xlu0 %928  ;;  %v931_v33 = vpop.permute.xlu2 %930 }
  0xbd   : > { %v1067_v35 = vsel %vm1063_vm7, %v4999_v36, %v929_v31  ;;  %v1069_v21 = vsel %vm1063_vm7, %v5003_v37, %v931_v33 }
  0xbe   : > { %1012 = vrot.lane.b32.xlu1 %v997_v28, %s4761_s6  ;;  %v1084_v40 = vsel %vm1080_vm8, %v1067_v35, %v961_v25 }
  0xbf   : > { %v1101_v36 = vsel %vm1097_vm9, %v1084_v40, %v5127_v62 }
  0xc0   : > { %v1001_v54 = vpop.permute.xlu1 %1000 }
  0xc1   : > { %v1118_v45 = vsel %vm1114_vm10, %v1101_v36, %v1001_v54  ;;  %v1201_v36 = vunpack.c.l.b16 %v5154_v20 }
  0xc2   : > { %1010 = vrot.lane.b32.xlu0 %v925_v1, %s4761_s6  ;;  %1027 = vrot.lane.b32.xlu2 %v5154_v20, %s4762_s26 }
  0xc4   : > { %v999_v2 = vpop.permute.xlu0 %998  ;;  %v965_v38 = vpop.permute.xlu2 %964 }
  0xc5   : > { %v1116_v52 = vsel %vm1114_vm10, %v1099_v46, %v999_v2 }
  0xc6   : > { %1043 = vrot.lane.b32.xlu1 %v5143_v8, %s4763_s16  ;;  %v1133_v57 = vsel %vm1131_vm11, %v1116_v52, %v5137_v6  ;;  %v1212_v6 = vpack.c.b16 %v1197_v7, %v1195_v5 }
  0xc8   : > { %v1032_v41 = vpop.permute.xlu1 %1031  ;;  %4445 = vmatmul.msk.bf16.gmra.mxu1 %vm1063_vm7, %v1212_v6 }
  0xc9   : > { %v1150_v58 = vsel %vm1148_vm13, %v1133_v57, %v1032_v41 }
  0xca   : > { %1029 = vrot.lane.b32.xlu0 %v1014_v39, %s4762_s26  ;;  %1045 = vrot.lane.b32.xlu2 %v4981_v19, %s4763_s16 }
  0xcc   : > { %v1018_v44 = vpop.permute.xlu0 %1017  ;;  %v1003_v49 = vpop.permute.xlu2 %1002 }
  0xcd   : > { %v1135_v48 = vsel %vm1131_vm11, %v1118_v45, %v1018_v44 }
  0xce   : > { %1061 = vrot.lane.b32.xlu1 %v4989_v32, %s4764_s29  ;;  %v1152_v56 = vsel %vm1148_vm13, %v1135_v48, %v1034_v16  ;;  %v1214_v48 = vpack.c.b16 %v1201_v36, %v1199_v42 }
  0xd0   : > { %v1050_v55 = vpop.permute.xlu1 %1049 }
  0xd1   : > { %v1169_v32 = vsel %vm1165_vm12, %v1152_v56, %v1050_v55 }
  0xd2   : > { %1059 = vrot.lane.b32.xlu0 %v997_v28, %s4764_s29  ;;  %v1192_v60 = vunpack.c.l.b16 %v1169_v32 }
  0xd4   : > { %v1048_v50 = vpop.permute.xlu0 %1047  ;;  %v1022_v0 = vpop.permute.xlu2 %1021 }
  0xd5   : > { %v1167_v59 = vsel %vm1165_vm12, %v1150_v58, %v1048_v50 }
  0xd6   : > { %v1190_v61 = vunpack.c.l.b16 %v1167_v59 }
  0xd8   : > { %v963_v62 = vpop.permute.xlu1 %962  ;;  %v1209_v63 = vpack.c.b16 %v1192_v60, %v1190_v61  ;;  %4446 = vmatmul.msk.bf16.gmra.mxu1 %vm1063_vm7, %v1214_v48  ;;  %v5275_v48 = vld [vmem:[%s6857_s22] ss:$0 sm:$0xff]  ;;  %s4768_s22 = smov 4  }
  0xd9   : > { %v1086_v22 = vsel %vm1080_vm8, %v1069_v21, %v963_v62 }
  0xda   : > { %1295 = vmatmul.bf16.vlgmr.msra.gmra.mxu0 %v1209_v63 }
  0xdc   : > { %v933_v1 = vpop.permute.xlu0 %932  ;;  %v1052_v9 = vpop.permute.xlu2 %1051 }
  0xdd   : > { %v1071_v24 = vsel %vm1063_vm7, %v5021_v51, %v933_v1 }
  0xde   : > { %v1088_v25 = vsel %vm1080_vm8, %v1071_v24, %v965_v38 }
  0xe0   : > { %v982_v4 = vpop.permute.xlu1 %981 }
  0xe1   : > { %v1105_v27 = vsel %vm1097_vm9, %v1088_v25, %v982_v4 }
  0xe4   : > { %v980_v11 = vpop.permute.xlu0 %979  ;;  %v937_v16 = vpop.permute.xlu2 %936 }
  0xe5   : > { %v1103_v14 = vsel %vm1097_vm9, %v1086_v22, %v980_v11  ;;  %v1075_v20 = vsel %vm1063_vm7, %v5070_v17, %v937_v16  ;;  %v5242_v22 = vunpack.c.l.b16 %v950_v23 }
  0xe6   : > { %v1120_v26 = vsel %vm1114_vm10, %v1103_v14, %v1003_v49  ;;  %v1203_v14 = vunpack.c.l.b16 %v1014_v39 }
  0xe8   : > { %v1020_v12 = vpop.permute.xlu1 %1019  ;;  %v1216_v25 = vpack.c.b16 %v5242_v22, %v1203_v14 }
  0xe9   : > { %v1137_v28 = vsel %vm1131_vm11, %v1120_v26, %v1020_v12 }
  0xea   : > { %4447 = vmatmul.msk.bf16.gmra.mxu1 %vm1063_vm7, %v1216_v25 }
  0xec   : > { %v1005_v15 = vpop.permute.xlu0 %1004  ;;  %v984_v30 = vpop.permute.xlu2 %983 }
  0xed   : > { %v1122_v31 = vsel %vm1114_vm10, %v1105_v27, %v1005_v15 }
  0xee   : > { %v1139_v54 = vsel %vm1131_vm11, %v1122_v31, %v1022_v0 }
  0xf0   : > { %v1038_v18 = vpop.permute.xlu1 %1037 }
  0xf1   : > { %v1156_v2 = vsel %vm1148_vm13, %v1139_v54, %v1038_v18 }
  0xf4   : > { %v1036_v29 = vpop.permute.xlu0 %1035  ;;  %v1009_v46 = vpop.permute.xlu2 %1008 }
  0xf5   : > { %v1154_v37 = vsel %vm1148_vm13, %v1137_v28, %v1036_v29 }
  0xf6   : > { %v1171_v51 = vsel %vm1165_vm12, %v1154_v37, %v1052_v9 }
  0xf7   : > { %v1194_v40 = vunpack.c.l.b16 %v1171_v51 }
  0xf8   : > { %v935_v33 = vpop.permute.xlu1 %934 }
  0xf9   : > { %v1073_v32 = vsel %vm1063_vm7, %v5049_v3, %v935_v33 }
  0xfc   : > { %v1054_v35 = vpop.permute.xlu0 %1053  ;;  %v1040_v55 = vpop.permute.xlu2 %1039 }
  0xfd   : > { %v1173_v38 = vsel %vm1165_vm12, %v1156_v2, %v1054_v35 }
  0xfe   : > { %v1196_v41 = vunpack.c.l.b16 %v1173_v38 }
 0x100   : > { %v969_v44 = vpop.permute.xlu1 %968  ;;  %v1211_v45 = vpack.c.b16 %v1196_v41, %v1194_v40 }
 0x101   : > { %v1092_v60 = vsel %vm1080_vm8, %v1075_v20, %v969_v44 }
 0x102   : > { %1300 = vmatmul.bf16.gmra.mxu0 %v1211_v45 }
 0x104   : > { %v967_v49 = vpop.permute.xlu0 %966  ;;  %v1058_v50 = vpop.permute.xlu2 %1057 }
 0x105   : > { %v1090_v58 = vsel %vm1080_vm8, %v1073_v32, %v967_v49 }
 0x106   : > { %v1107_v59 = vsel %vm1097_vm9, %v1090_v58, %v984_v30 }
 0x108   : > { %v1007_v52 = vpop.permute.xlu1 %1006 }
 0x109   : > { %v1124_v61 = vsel %vm1114_vm10, %v1107_v59, %v1007_v52 }
 0x10c   : > { %v986_v56 = vpop.permute.xlu0 %985  ;;  %v971_v6 = vpop.permute.xlu2 %970 }
 0x10d   : > { %v1109_v62 = vsel %vm1097_vm9, %v1092_v60, %v986_v56 }
 0x10e   : > { %v1126_v3 = vsel %vm1114_vm10, %v1109_v62, %v1009_v46 }
 0x110   : > { %v1026_v57 = vpop.permute.xlu1 %1025 }
 0x111   : > { %v1143_v4 = vsel %vm1131_vm11, %v1126_v3, %v1026_v57 }
 0x114   : > { %v1024_v47 = vpop.permute.xlu0 %1023  ;;  %v990_v21 = vpop.permute.xlu2 %989 }
 0x115   : > { %v1141_v63 = vsel %vm1131_vm11, %v1124_v61, %v1024_v47 }
 0x116   : > { %v1158_v1 = vsel %vm1148_vm13, %v1141_v63, %v1040_v55 }
 0x118   : > { %v1056_v0 = vpop.permute.xlu1 %1055  ;;  %v1325_v52 = vpop.f32.mrf.mxu1 }
 0x119   : > { %v1175_v5 = vsel %vm1165_vm12, %v1158_v1, %v1056_v0 }
 0x11a   : > { %v1198_v11 = vunpack.c.l.b16 %v1175_v5 }
 0x11c   : > { %v1042_v17 = vpop.permute.xlu0 %1041  ;;  %v1028_v28 = vpop.permute.xlu2 %1027 }
 0x11d   : > { %v1160_v7 = vsel %vm1148_vm13, %v1143_v4, %v1042_v17 }
 0x11e   : > { %v1177_v9 = vsel %vm1165_vm12, %v1160_v7, %v1058_v50  ;;  %v4579_v7 = vld [vmem:[%s4914_s27 + $0x40] sm:$0xff] }
 0x11f   : > { %v1200_v12 = vunpack.c.l.b16 %v1177_v9  ;;  %1882 = vmatpush.bf16.msra.mxu3 %v4579_v7 }
 0x120   : > { %v941_v15 = vpop.permute.xlu1 %940  ;;  %v1327_v1 = vpop.f32.mrf.mxu1 }
 0x121   : > { %v1213_v16 = vpack.c.b16 %v1200_v12, %v1198_v11  ;;  %v1079_v27 = vsel %vm1063_vm7, %v5118_v53, %v941_v15 }
 0x123   : > { %1305 = vmatmul.bf16.vlgmr.msra.gmra.mxu2 %v1213_v16 }
 0x124   : > { %v939_v18 = vpop.permute.xlu0 %938  ;;  %v5257_v54 = vpop.permute.xlu2 %1045 }
 0x125   : > { %v1077_v30 = vsel %vm1063_vm7, %v5093_v34, %v939_v18 }
 0x126   : > { %v1094_v31 = vsel %vm1080_vm8, %v1077_v30, %v971_v6 }
 0x128   : > { %v988_v24 = vpop.permute.xlu1 %987 }
 0x129   : > { %v1111_v37 = vsel %vm1097_vm9, %v1094_v31, %v988_v24 }
 0x12c   : > { %v973_v29 = vpop.permute.xlu0 %972 }
 0x12d   : > { %v1096_v19 = vsel %vm1080_vm8, %v1079_v27, %v973_v29 }
 0x12e   : > { %v1113_v8 = vsel %vm1097_vm9, %v1096_v19, %v990_v21 }
 0x130   : > { %v1013_v26 = vpop.permute.xlu1 %1012 }
 0x131   : > { %v1130_v33 = vsel %vm1114_vm10, %v1113_v8, %v1013_v26 }
 0x134   : > { %v1011_v23 = vpop.permute.xlu0 %1010 }
 0x135   : > { %v1128_v53 = vsel %vm1114_vm10, %v1111_v37, %v1011_v23 }
 0x136   : > { %v1145_v35 = vsel %vm1131_vm11, %v1128_v53, %v1028_v28 }
 0x138   : > { %v1044_v39 = vpop.permute.xlu1 %1043 }
 0x139   : > { %v1162_v41 = vsel %vm1148_vm13, %v1145_v35, %v1044_v39 }
 0x13c   : > { %v1030_v51 = vpop.permute.xlu0 %1029 }
 0x13d   : > { %v1147_v34 = vsel %vm1131_vm11, %v1130_v33, %v1030_v51 }
 0x13e   : > { %v1164_v2 = vsel %vm1148_vm13, %v1147_v34, %v5257_v54 }
 0x140   : > { %v5264_v38 = vpop.permute.xlu1 %1061 }
 0x141   : > { %v1181_v40 = vsel %vm1165_vm12, %v1164_v2, %v5264_v38 }
 0x142   : > { %v1204_v42 = vunpack.c.l.b16 %v1181_v40 }
 0x144   : > { %v1060_v36 = vpop.permute.xlu0 %1059 }
 0x145   : > { %v1179_v44 = vsel %vm1165_vm12, %v1162_v41, %v1060_v36  ;;  %v1330_v15 = vpop.f32.mrf.mxu1 }
 0x146   : > { %v1202_v45 = vunpack.c.l.b16 %v1179_v44 }
 0x148   : > { %v1215_v46 = vpack.c.b16 %v1204_v42, %v1202_v45 }
 0x14a   : > { %1310 = vmatmul.bf16.gmra.mxu2 %v1215_v46 }
 0x14d   : > { %v1332_v2 = vpop.f32.mrf.mxu1 }
 0x157   : > { %v1296_v49 = vpop.f32.mrf.mxu0 }
 0x158   : > { %v1297_v55 = vadd.f32 %v5275_v48, %v1296_v49  ;;  %v1335_v49 = vpop.f32.mrf.mxu1 }
 0x15a   : > { %v1326_v56 = vadd.f32 %v1325_v52, %v1297_v55 }
 0x15c   : > { %v1345_v57 = vmax.f32 %v1326_v56, 0.0 }
 0x15e   : > { %v1372_v32 = vpack.c.bf16 %v1345_v57, %v1345_v57 }
 0x15f   : > { %v1298_v62 = vpop.f32.mrf.mxu0 }
 0x160   : > { %v1381_v58 = vshrl.u32 %v1372_v32, 16  ;;  %v1384_v50 = vshll.u32 %v1372_v32, 16  ;;  %v1299_v0 = vadd.f32 %v5275_v48, %v1298_v62  ;;  %v1337_v7 = vpop.f32.mrf.mxu1 }
 0x162   : > { %v1383_v47 = vrot.slane %v1381_v58, 7  ;;  %v1328_v5 = vadd.f32 %v1327_v1, %v1299_v0 }
 0x164   : > { %v1386_v20 = vor.u32 %v1384_v50, %v1383_v47  ;;  %v1346_v6 = vmax.f32 %v1328_v5, 0.0 }
 0x166   : > { %v1444_v59 = vsel %vm4969_vm4, 0, %v1386_v20  ;;  %v1373_v9 = vpack.c.bf16 %v1346_v6, %v1346_v6 }
 0x167   : > { %v5282_v60 = vsel %vm4973_vm6, %v1444_v59, 0 }
 0x168   : > { %1552 = vrot.lane.b32.xlu1 %v5282_v60, %s4760_s5  ;;  %v1530_v61 = vrot.slane %v5282_v60, 1  ;;  %v1463_v63 = vshll.u32 %v5282_v60, 16  ;;  %v1461_v4 = vshrl.u32 %v5282_v60, 16  ;;  %v1388_v11 = vshrl.u32 %v1373_v9, 16 }
 0x169   : > { %v1391_v21 = vshll.u32 %v1373_v9, 16 }
 0x16a   : > { %1592 = vrot.lane.b32.xlu2 %v1530_v61, %s4762_s26  ;;  %1537 = vrot.lane.b32.xlu0 %v1530_v61, %s4758_s3  ;;  %v1465_v3 = vrot.slane %v1463_v63, 1  ;;  %v1390_v16 = vrot.slane %v1388_v11, 7 }
 0x16c   : > { %v1466_v17 = vor.u32 %v1465_v3, %v1461_v4  ;;  %v1393_v14 = vor.u32 %v1391_v21, %v1390_v16 }
 0x16e   : > { %v1445_v26 = vsel %vm4969_vm4, 0, %v1393_v14 }
 0x16f   : > { %v5300_v19 = vsel %vm4973_vm6, %v1445_v26, 0 }
 0x170   : > { %v5305_v8 = vrot.slane %v5300_v19, 1  ;;  %v1468_v26 = vshrl.u32 %v5300_v19, 16 }
 0x172   : > { %1575 = vrot.lane.b32.xlu0 %v1466_v17, %s4761_s6  ;;  %1509 = vrot.lane.b32.xlu2 %v1466_v17, %s4759_s4  ;;  %v1751_v53 = vunpack.c.l.b16 %v5305_v8 }
 0x17f   : > { %v1301_v12 = vpop.f32.mrf.mxu0 }
 0x180   : > { %v1302_v18 = vadd.f32 %v5275_v48, %v1301_v12 }
 0x182   : > { %v1331_v24 = vadd.f32 %v1330_v15, %v1302_v18 }
 0x184   : > { %v1347_v29 = vmax.f32 %v1331_v24, 0.0  ;;  %v1470_v24 = vshll.u32 %v5300_v19, 16 }
 0x186   : > { %v1374_v25 = vpack.c.bf16 %v1347_v29, %v1347_v29  ;;  %v1472_v29 = vrot.slane %v1470_v24, 1 }
 0x187   : > { %v1303_v37 = vpop.f32.mrf.mxu0 }
 0x188   : > { %v1395_v27 = vshrl.u32 %v1374_v25, 16  ;;  %v1398_v30 = vshll.u32 %v1374_v25, 16  ;;  %v1304_v34 = vadd.f32 %v5275_v48, %v1303_v37 }
 0x18a   : > { %v1397_v28 = vrot.slane %v1395_v27, 7  ;;  %v1333_v40 = vadd.f32 %v1332_v2, %v1304_v34 }
 0x18c   : > { %v1400_v23 = vor.u32 %v1398_v30, %v1397_v28  ;;  %v1348_v41 = vmax.f32 %v1333_v40, 0.0  ;;  %v1340_v30 = vpop.f32.mrf.mxu1 }
 0x18e   : > { %v1446_v31 = vsel %vm4969_vm4, 0, %v1400_v23  ;;  %v1375_v42 = vpack.c.bf16 %v1348_v41, %v1348_v41  ;;  %v1473_v23 = vor.u32 %v1472_v29, %v1468_v26 }
 0x18f   : > { %v5309_v39 = vsel %vm4973_vm6, %v1446_v31, 0 }
 0x190   : > { %v5312_v33 = vrot.slane %v5309_v39, 1  ;;  %v1402_v36 = vshrl.u32 %v1375_v42, 16  ;;  %v1405_v52 = vshll.u32 %v1375_v42, 16 }
 0x192   : > { %v1753_v51 = vunpack.c.l.b16 %v5312_v33  ;;  %v1404_v45 = vrot.slane %v1402_v36, 7 }
 0x194   : > { %v1769_v35 = vpack.c.b16 %v1753_v51, %v1751_v53  ;;  %v1407_v56 = vor.u32 %v1405_v52, %v1404_v45  ;;  %v1342_v40 = vpop.f32.mrf.mxu1 }
 0x196   : > { %4484 = vmatmul.msk.bf16.vlgmr.msra.gmra.mxu3 %vm1063_vm7, %v1769_v35  ;;  %v1447_v58 = vsel %vm4969_vm4, 0, %v1407_v56 }
 0x197   : > { %v5323_v59 = vsel %vm4973_vm6, %v1447_v58, 0 }
 0x198   : > { %v5328_v0 = vrot.slane %v5323_v59, 1 }
 0x19a   : > { %v1755_v5 = vunpack.c.l.b16 %v5328_v0 }
 0x1a6   : > { %v1306_v44 = vpop.f32.mrf.mxu2 }
 0x1a7   : > { %v1307_v46 = vadd.f32 %v5275_v48, %v1306_v44 }
 0x1a9   : > { %v1336_v55 = vadd.f32 %v1335_v49, %v1307_v46 }
 0x1ab   : > { %v1349_v57 = vmax.f32 %v1336_v55, 0.0 }
 0x1ad   : > { %v1376_v32 = vpack.c.bf16 %v1349_v57, %v1349_v57 }
 0x1ae   : > { %v1308_v62 = vpop.f32.mrf.mxu2 }
 0x1af   : > { %v1409_v47 = vshrl.u32 %v1376_v32, 16  ;;  %v1412_v20 = vshll.u32 %v1376_v32, 16  ;;  %v1309_v1 = vadd.f32 %v5275_v48, %v1308_v62 }
 0x1b1   : > { %v1411_v50 = vrot.slane %v1409_v47, 7  ;;  %v1338_v6 = vadd.f32 %v1337_v7, %v1309_v1 }
 0x1b3   : > { %v1414_v61 = vor.u32 %v1412_v20, %v1411_v50  ;;  %v1350_v12 = vmax.f32 %v1338_v6, 0.0  ;;  %v1477_v50 = vshll.u32 %v5309_v39, 16 }
 0x1b5   : > { %v1448_v63 = vsel %vm4969_vm4, 0, %v1414_v61  ;;  %v1377_v16 = vpack.c.bf16 %v1350_v12, %v1350_v12  ;;  %v1475_v12 = vshrl.u32 %v5309_v39, 16 }
 0x1b6   : > { %v5332_v3 = vsel %vm4973_vm6, %v1448_v63, 0 }
 0x1b7   : > { %1560 = vrot.lane.b32.xlu2 %v5332_v3, %s4760_s5  ;;  %1614 = vrot.lane.b32.xlu1 %v5332_v3, %s4763_s16  ;;  %v1534_v4 = vrot.slane %v5332_v3, 1  ;;  %v1491_v11 = vshll.u32 %v5332_v3, 16  ;;  %v1489_v18 = vshrl.u32 %v5332_v3, 16  ;;  %v1416_v14 = vshrl.u32 %v1377_v16, 16 }
 0x1b8   : > { %v1419_v27 = vshll.u32 %v1377_v16, 16 }
 0x1b9   : > { %1600 = vrot.lane.b32.xlu0 %v1534_v4, %s4762_s26  ;;  %v1757_v17 = vunpack.c.l.b16 %v1534_v4  ;;  %v1493_v15 = vrot.slane %v1491_v11, 1  ;;  %v1418_v25 = vrot.slane %v1416_v14, 7 }
 0x1bb   : > { %v1771_v9 = vpack.c.b16 %v1757_v17, %v1755_v5  ;;  %v1494_v21 = vor.u32 %v1493_v15, %v1489_v18  ;;  %v1421_v37 = vor.u32 %v1419_v27, %v1418_v25  ;;  %v1479_v5 = vrot.slane %v1477_v50, 1 }
 0x1bd   : > { %4485 = vmatmul.msk.bf16.gmra.mxu3 %vm1063_vm7, %v1771_v9  ;;  %v1449_v34 = vsel %vm4969_vm4, 0, %v1421_v37 }
 0x1be   : > { %v5365_v36 = vsel %vm4973_vm6, %v1449_v34, 0 }
 0x1bf   : > { %1554 = vrot.lane.b32.xlu2 %v5300_v19, %s4760_s5  ;;  %1608 = vrot.lane.b32.xlu1 %v5300_v19, %s4763_s16  ;;  %v1498_v15 = vshll.u32 %v5365_v36, 16  ;;  %v1496_v29 = vshrl.u32 %v5365_v36, 16 }
 0x1c1   : > { %1594 = vrot.lane.b32.xlu0 %v5305_v8, %s4762_s26  ;;  %v1500_v14 = vrot.slane %v1498_v15, 1 }
 0x1c3   : > { %v1501_v26 = vor.u32 %v1500_v14, %v1496_v29 }
 0x1c4   : > { %v1593_v9 = vpop.permute.xlu2 %1592 }
 0x1c7   : > { %1545 = vrot.lane.b32.xlu1 %v1534_v4, %s4758_s3  ;;  %1517 = vrot.lane.b32.xlu2 %v1494_v21, %s4759_s4 }
 0x1c9   : > { %1628 = vrot.lane.b32.xlu0 %v1494_v21, %s4764_s29 }
 0x1cc   : > { %v1510_v34 = vpop.permute.xlu2 %1509 }
 0x1cd   : > { %v1311_v28 = vpop.f32.mrf.mxu2  ;;  %v1637_v29 = vsel %vm1063_vm7, %v5282_v60, %v1510_v34 }
 0x1ce   : > { %v1312_v31 = vadd.f32 %v5275_v48, %v1311_v28  ;;  %v1484_v28 = vshll.u32 %v5323_v59, 16 }
 0x1cf   : > { %1539 = vrot.lane.b32.xlu1 %v5305_v8, %s4758_s3  ;;  %1511 = vrot.lane.b32.xlu2 %v1473_v23, %s4759_s4 }
 0x1d0   : > { %v1341_v53 = vadd.f32 %v1340_v30, %v1312_v31  ;;  %v1486_v30 = vrot.slane %v1484_v28, 1 }
 0x1d1   : > { %1622 = vrot.lane.b32.xlu0 %v1473_v23, %s4764_s29 }
 0x1d2   : > { %v1351_v51 = vmax.f32 %v1341_v53, 0.0 }
 0x1d4   : > { %v1378_v2 = vpack.c.bf16 %v1351_v51, %v1351_v51 }
 0x1d5   : > { %v1313_v35 = vpop.f32.mrf.mxu2 }
 0x1d6   : > { %v1423_v41 = vshrl.u32 %v1378_v2, 16  ;;  %v1426_v42 = vshll.u32 %v1378_v2, 16  ;;  %v1314_v8 = vadd.f32 %v5275_v48, %v1313_v35  ;;  %v1535_v48 = vrot.slane %v5365_v36, 1 }
 0x1d7   : > { %1583 = vrot.lane.b32.xlu1 %v1494_v21, %s4761_s6  ;;  %1616 = vrot.lane.b32.xlu2 %v5365_v36, %s4763_s16  ;;  %v1480_v21 = vor.u32 %v1479_v5, %v1475_v12 }
 0x1d8   : > { %v1425_v44 = vrot.slane %v1423_v41, 7  ;;  %v1343_v45 = vadd.f32 %v1342_v40, %v1314_v8  ;;  %v1759_v61 = vunpack.c.l.b16 %v1535_v48 }
 0x1d9   : > { %1562 = vrot.lane.b32.xlu0 %v5365_v36, %s4760_s5 }
 0x1da   : > { %v1428_v46 = vor.u32 %v1426_v42, %v1425_v44  ;;  %v1352_v49 = vmax.f32 %v1343_v45, 0.0  ;;  %v1553_v63 = vpop.permute.xlu1 %1552 }
 0x1db   : > { %v1665_v17 = vsel %vm1097_vm9, %v5185_v43, %v1553_v63  ;;  %v4575_v63 = vld [vmem:[%s4914_s27 + $0x20] sm:$0xff] }
 0x1dc   : > { %v1450_v52 = vsel %vm4969_vm4, 0, %v1428_v46  ;;  %v1379_v55 = vpack.c.bf16 %v1352_v49, %v1352_v49  ;;  %v5375_v56 = vpop.permute.xlu0 %1537  ;;  %v4578_v49 = vld [vmem:[%s4914_s27 + $0x38] sm:$0xff] }
 0x1dd   : > { %v5380_v57 = vsel %vm4973_vm6, %v1450_v52, 0  ;;  %1846 = vmatpush.bf16.msrb.mxu2 %v4578_v49 }
 0x1de   : > { %v1430_v32 = vshrl.u32 %v1379_v55, 16  ;;  %v1433_v58 = vshll.u32 %v1379_v55, 16  ;;  %v5383_v47 = vrot.slane %v5380_v57, 1  ;;  %v1503_v37 = vshrl.u32 %v5380_v57, 16 }
 0x1df   : > { %1577 = vrot.lane.b32.xlu1 %v1473_v23, %s4761_s6  ;;  %1610 = vrot.lane.b32.xlu2 %v5309_v39, %s4763_s16  ;;  %v1505_v23 = vshll.u32 %v5380_v57, 16 }
 0x1e0   : > { %v1432_v20 = vrot.slane %v1430_v32, 7  ;;  %v1761_v62 = vunpack.c.l.b16 %v5383_v47  ;;  %v4577_v32 = vld [vmem:[%s4914_s27 + $0x30] sm:$0xff] }
 0x1e1   : > { %1556 = vrot.lane.b32.xlu0 %v5309_v39, %s4760_s5  ;;  %v1507_v53 = vrot.slane %v1505_v23, 1  ;;  %1847 = vmatpush.bf16.msrb.mxu2 %v4577_v32 }
 0x1e2   : > { %v1435_v1 = vor.u32 %v1433_v58, %v1432_v20  ;;  %v1773_v4 = vpack.c.b16 %v1761_v62, %v1759_v61  ;;  %v4576_v58 = vld [vmem:[%s4914_s27 + $0x28] sm:$0xff] }
 0x1e3   : > { %v1508_v51 = vor.u32 %v1507_v53, %v1503_v37 }
 0x1e4   : > { %v1451_v7 = vsel %vm4969_vm4, 0, %v1435_v1  ;;  %4486 = vmatmul.msk.bf16.gmra.mxu3 %vm1063_vm7, %v1773_v4  ;;  %v1576_v6 = vpop.permute.xlu0 %1575  ;;  %v4574_v1 = vld [vmem:[%s4914_s27 + $0x18] sm:$0xff] }
 0x1e5   : > { %v1681_v11 = vsel %vm1114_vm10, %v1665_v17, %v1576_v6  ;;  %v1459_v18 = vsel %vm4973_vm6, %v1451_v7, 0  ;;  %1848 = vmatpush.bf16.msrb.mxu2 %v4576_v58  ;;  %v4573_v7 = vld [vmem:[%s4914_s27 + $0x10] sm:$0xff]  ;;  %v4572_v6 = vld [vmem:[%s4914_s27 + $0x8] sm:$0xff] }
 0x1e6   : > { %v5401_v16 = vsel %vm1131_vm11, %v1681_v11, %v1593_v9  ;;  %v1591_v24 = vrot.slane %v1459_v18, 1  ;;  %v1571_v35 = vshll.u32 %v1459_v18, 16  ;;  %v1569_v41 = vshrl.u32 %v1459_v18, 16  ;;  %v4571_v11 = vld [vmem:[%s4914_s27] sm:$0xff]  ;;  %s6867_s27 = sld [smem:[#allocation3_spill]] }
 0x1e7   : > { %1602 = vrot.lane.b32.xlu1 %v1535_v48, %s4762_s26  ;;  %1541 = vrot.lane.b32.xlu2 %v5312_v33, %s4758_s3 }
 0x1e8   : > { %v1763_v25 = vunpack.c.l.b16 %v1591_v24  ;;  %v1573_v42 = vrot.slane %v1571_v35, 1 }
 0x1e9   : > { %1513 = vrot.lane.b32.xlu0 %v1480_v21, %s4759_s4  ;;  %1849 = vmatpush.bf16.msrb.mxu2 %v4575_v63 }
 0x1ea   : > { %v1775_v27 = vpack.c.b16 %v5242_v22, %v1763_v25  ;;  %v1574_v8 = vor.u32 %v1573_v42, %v1569_v41  ;;  %v1651_v25 = vsel %vm1080_vm8, %v1637_v29, %v5375_v56 }
 0x1ec   : > { %p4512_p8 = scmp.ne.s32.totalorder %s6867_s27, 1 }
 0x1ed   : > { %1850 = vmatpush.bf16.msrb.mxu2 %v4574_v1  ;;  %s4769_s30 = smov (!%p4512_p8), 48   ;;  %s4771_s0 = smov (!%p4512_p8), 16  }
 0x1ef   : > { %1596 = vrot.lane.b32.xlu1 %v5312_v33, %s4762_s26  ;;  %1585 = vrot.lane.b32.xlu2 %v1501_v26, %s4761_s6  ;;  %v1482_v33 = vshrl.u32 %v5323_v59, 16 }
 0x1f1   : > { %1612 = vrot.lane.b32.xlu0 %v5323_v59, %s4763_s16  ;;  %v1487_v31 = vor.u32 %v1486_v30, %v1482_v33  ;;  %1851 = vmatpush.bf16.msrb.mxu2 %v4573_v7 }
 0x1f4   : > { %4487 = vmatmul.msk.bf16.gmra.mxu3 %vm1063_vm7, %v1775_v27 }
 0x1f5   : > { %1852 = vmatpush.bf16.msrb.mxu2 %v4572_v6 }
 0x1f7   : > { %1624 = vrot.lane.b32.xlu1 %v1480_v21, %s4764_s29  ;;  %1579 = vrot.lane.b32.xlu2 %v1480_v21, %s4761_s6 }
 0x1f9   : > { %1543 = vrot.lane.b32.xlu0 %v5328_v0, %s4758_s3  ;;  %1853 = vmatpush.bf16.msrb.mxu2 %v4571_v11 }
 0x1ff   : > { %1558 = vrot.lane.b32.xlu1 %v5323_v59, %s4760_s5  ;;  %1598 = vrot.lane.b32.xlu2 %v5328_v0, %s4762_s26 }
 0x201   : > { %1581 = vrot.lane.b32.xlu0 %v1487_v31, %s4761_s6 }
 0x207   : > { %1630 = vrot.lane.b32.xlu1 %v1501_v26, %s4764_s29  ;;  %1632 = vrot.lane.b32.xlu2 %v1508_v51, %s4764_s29 }
 0x209   : > { %1618 = vrot.lane.b32.xlu0 %v5380_v57, %s4763_s16 }
 0x20f   : > { %1521 = vrot.lane.b32.xlu1 %v1508_v51, %s4759_s4  ;;  %1626 = vrot.lane.b32.xlu2 %v1487_v31, %s4764_s29 }
 0x211   : > { %v5436_v0 = vpop.permute.xlu2 %1560  ;;  %1519 = vrot.lane.b32.xlu0 %v1501_v26, %s4759_s4 }
 0x217   : > { %1515 = vrot.lane.b32.xlu1 %v1487_v31, %s4759_s4  ;;  %1547 = vrot.lane.b32.xlu2 %v1535_v48, %s4758_s3  ;;  %s6859_s4 = sld [smem:[#allocation13_spill]] }
 0x219   : > { %v1555_v2 = vpop.permute.xlu2 %1554  ;;  %1549 = vrot.lane.b32.xlu0 %v5383_v47, %s4758_s3  ;;  %s4772_s3 = smov (!%p4512_p8), 80  }
 0x21a   : > { %v1667_v28 = vsel %vm1097_vm9, %v1651_v25, %v1555_v2 }
 0x21f   : > { %1564 = vrot.lane.b32.xlu1 %v5380_v57, %s4760_s5  ;;  %1604 = vrot.lane.b32.xlu2 %v5383_v47, %s4762_s26 }
 0x221   : > { %v1518_v40 = vpop.permute.xlu2 %1517  ;;  %1587 = vrot.lane.b32.xlu0 %v1508_v51, %s4761_s6 }
 0x222   : > { %v1645_v47 = vsel %vm1063_vm7, %v5332_v3, %v1518_v40 }
 0x227   : > { %1589 = vrot.lane.b32.xlu1 %v1574_v8, %s4761_s6  ;;  %1566 = vrot.lane.b32.xlu2 %v1459_v18, %s4760_s5  ;;  %s6860_s5 = scalar_lea.vmem %s6859_s4, %s4890_s25  ;;  %s4773_s4 = smov (!%p4512_p8), 64  }
 0x229   : > { %v5450_v44 = vpop.permute.xlu1 %1614  ;;  %v1512_v45 = vpop.permute.xlu2 %1511  ;;  %1606 = vrot.lane.b32.xlu0 %v1591_v24, %s4762_s26  ;;  %s6861_s26 = sld [smem:[#allocation15_spill]] }
 0x22a   : > { %v1639_v41 = vsel %vm1063_vm7, %v5300_v19, %v1512_v45 }
 0x22b   : > { %v5453_v46 = vpop.permute.xlu0 %1600 }
 0x22f   : > { %1620 = vrot.lane.b32.xlu1 %v1459_v18, %s4763_s16  ;;  %1634 = vrot.lane.b32.xlu2 %v1574_v8, %s4764_s29  ;;  %s6862_s16 = scalar_lea.vmem %s6861_s26, %s4890_s25  ;;  %s4766_s25 = smov 8  }
 0x231   : > { %v1609_v52 = vpop.permute.xlu1 %1608  ;;  %v5458_v55 = vpop.permute.xlu2 %1616 }
 0x232   : > { %v1713_v31 = vsel %vm1148_vm13, %v5401_v16, %v1609_v52 }
 0x233   : > { %v1595_v48 = vpop.permute.xlu0 %1594 }
 0x239   : > { %v1546_v50 = vpop.permute.xlu1 %1545  ;;  %v1611_v20 = vpop.permute.xlu2 %1610 }
 0x23a   : > { %v5465_v61 = vsel %vm1080_vm8, %v1645_v47, %v1546_v50 }
 0x23b   : > { %v1629_v62 = vpop.permute.xlu0 %1628 }
 0x241   : > { %v1540_v4 = vpop.permute.xlu1 %1539  ;;  %v1542_v5 = vpop.permute.xlu2 %1541 }
 0x242   : > { %v1653_v16 = vsel %vm1080_vm8, %v1639_v41, %v1540_v4 }
 0x243   : > { %v1623_v17 = vpop.permute.xlu0 %1622 }
 0x244   : > { %v1728_v37 = vsel %vm1165_vm12, %v1713_v31, %v1623_v17 }
 0x245   : > { %v1750_v56 = vunpack.c.l.b16 %v1728_v37 }
 0x249   : > { %v5471_v9 = vpop.permute.xlu1 %1583  ;;  %v1586_v12 = vpop.permute.xlu2 %1585 }
 0x24b   : > { %v1563_v3 = vpop.permute.xlu0 %1562 }
 0x251   : > { %v1578_v15 = vpop.permute.xlu1 %1577  ;;  %v1580_v21 = vpop.permute.xlu2 %1579 }
 0x252   : > { %v1683_v30 = vsel %vm1114_vm10, %v1667_v28, %v1578_v15 }
 0x253   : > { %v1557_v18 = vpop.permute.xlu0 %1556  ;;  %v1699_v23 = vsel %vm1131_vm11, %v1683_v30, %v1595_v48 }
 0x254   : > { %v1715_v60 = vsel %vm1148_vm13, %v1699_v23, %v1611_v20  ;;  %v1669_v8 = vsel %vm1097_vm9, %v1653_v16, %v1557_v18 }
 0x255   : > { %v1685_v32 = vsel %vm1114_vm10, %v1669_v8, %v1580_v21  ;;  %v1675_v21 = vsel %vm1097_vm9, %v5465_v61, %v1563_v3 }
 0x259   : > { %v1603_v24 = vpop.permute.xlu1 %1602  ;;  %v1599_v26 = vpop.permute.xlu2 %1598 }
 0x25b   : > { %v1514_v14 = vpop.permute.xlu0 %1513 }
 0x25c   : > { %v1641_v42 = vsel %vm1063_vm7, %v5309_v39, %v1514_v14 }
 0x25d   : > { %v1655_v52 = vsel %vm1080_vm8, %v1641_v42, %v1542_v5 }
 0x261   : > { %v1597_v27 = vpop.permute.xlu1 %1596  ;;  %v1633_v34 = vpop.permute.xlu2 %1632 }
 0x262   : > { %v1701_v47 = vsel %vm1131_vm11, %v1685_v32, %v1597_v27 }
 0x263   : > { %v1613_v33 = vpop.permute.xlu0 %1612 }
 0x264   : > { %v1717_v20 = vsel %vm1148_vm13, %v1701_v47, %v1613_v33 }
 0x269   : > { %v1625_v53 = vpop.permute.xlu1 %1624  ;;  %v1627_v45 = vpop.permute.xlu2 %1626 }
 0x26a   : > { %v1730_v51 = vsel %vm1165_vm12, %v1715_v60, %v1625_v53  ;;  %v1732_v1 = vsel %vm1165_vm12, %v1717_v20, %v1627_v45  ;;  %v4765_v45 = vmov 0.0  }
 0x26b   : > { %v1752_v35 = vunpack.c.l.b16 %v1730_v51  ;;  %v1544_v40 = vpop.permute.xlu0 %1543  ;;  %v1754_v17 = vunpack.c.l.b16 %v1732_v1 }
 0x26d   : > { %v1768_v2 = vpack.c.b16 %v1752_v35, %v1750_v56 }
 0x26f   : > { %1854 = vmatmul.bf16.vlgmr.msrb.gmra.mxu2 %v1768_v2 }
 0x271   : > { %v1559_v49 = vpop.permute.xlu1 %1558  ;;  %v1548_v18 = vpop.permute.xlu2 %1547 }
 0x272   : > { %v1671_v48 = vsel %vm1097_vm9, %v1655_v52, %v1559_v49 }
 0x273   : > { %v1582_v58 = vpop.permute.xlu0 %1581 }
 0x274   : > { %v1687_v19 = vsel %vm1114_vm10, %v1671_v48, %v1582_v58 }
 0x275   : > { %v1703_v39 = vsel %vm1131_vm11, %v1687_v19, %v1599_v26  ;;  %v1904_v19 = vld [vmem:[%s4924_s21] sm:$0xff] }
 0x276   : > { %v1719_v50 = vsel %vm1148_vm13, %v1703_v39, %v5450_v44  ;;  %v4580_v44 = vld [vmem:[%s6858_s19] sm:$0xff]  ;;  %v1918_v39 = vrot.slane %v4765_v45, 7  ;;  %v5553_v1 = vperm.slane %v1904_v19, 2  ;;  %s4770_s19 = smov (!%p4512_p8), 32  }
 0x277   : > { %v1734_v63 = vsel %vm1165_vm12, %v1719_v50, %v1629_v62  ;;  %v1691_v62 = vsel %vm1114_vm10, %v1675_v21, %v1586_v12  ;;  %2486 = vmatpush.bf16.msrb.mxu1 %v4580_v44  ;;  %v5545_v50 = vperm.slane %v1904_v19, 1  ;;  %v1884_v21 = vpop.f32.mrf.mxu3 }
 0x278   : > { %v1756_v5 = vunpack.c.l.b16 %v1734_v63  ;;  %v1707_v29 = vsel %vm1131_vm11, %v1691_v62, %v1603_v24  ;;  %v5548_v20 = vsel %vm846_vm1, 0.0, %v1918_v39  ;;  %v5551_v63 = vsel %vm846_vm1, %v1918_v39, 0.0 }
 0x279   : > { %v1631_v4 = vpop.permute.xlu1 %1630  ;;  %v1605_v30 = vpop.permute.xlu2 %1604 }
 0x27a   : > { %v1770_v6 = vpack.c.b16 %v1756_v5, %v1754_v17  ;;  %v1974_v5 = vmul.f32 %v5545_v50, %v5551_v63  ;;  %v5559_v17 = vperm.slane %v1904_v19, 0 }
 0x27b   : > { %v1619_v7 = vpop.permute.xlu0 %1618 }
 0x27c   : > { %v1723_v26 = vsel %vm1148_vm13, %v1707_v29, %v1619_v7  ;;  %v5566_v7 = vld [vmem:[%s6860_s5] ss:$0 sm:$0xff]  ;;  %v1956_v62 = vmul.f32 %v5559_v17, %v5548_v20  ;;  %s4774_s5 = smov (!%p4512_p8), 96  }
 0x27d   : > { %v1738_v24 = vsel %vm1165_vm12, %v1723_v26, %v1633_v34 }
 0x27e   : > { %v1760_v37 = vunpack.c.l.b16 %v1738_v24  ;;  %v5584_v24 = vperm.slane %v1904_v19, 3 }
 0x27f   : > { %1859 = vmatmul.bf16.gmra.mxu2 %v1770_v6 }
 0x281   : > { %v1522_v11 = vpop.permute.xlu1 %1521  ;;  %v1567_v51 = vpop.permute.xlu2 %1566 }
 0x283   : > { %v1520_v15 = vpop.permute.xlu0 %1519 }
 0x289   : > { %v1516_v14 = vpop.permute.xlu1 %1515  ;;  %v1635_v49 = vpop.permute.xlu2 %1634 }
 0x28a   : > { %v1643_v25 = vsel %vm1063_vm7, %v5323_v59, %v1516_v14 }
 0x28b   : > { %v1657_v27 = vsel %vm1080_vm8, %v1643_v25, %v1544_v40  ;;  %v1550_v28 = vpop.permute.xlu0 %1549 }
 0x28c   : > { %v1673_v61 = vsel %vm1097_vm9, %v1657_v27, %v5436_v0  ;;  %v1649_v0 = vsel %vm1063_vm7, %v5380_v57, %v1522_v11  ;;  %v2007_v11 = vrot.slane %v1974_v5, 1 }
 0x28d   : > { %v1689_v3 = vsel %vm1114_vm10, %v1673_v61, %v5471_v9  ;;  %v1663_v9 = vsel %vm1080_vm8, %v1649_v0, %v1550_v28 }
 0x28e   : > { %v1705_v12 = vsel %vm1131_vm11, %v1689_v3, %v5453_v46  ;;  %v1647_v46 = vsel %vm1063_vm7, %v5365_v36, %v1520_v15  ;;  %v2047_v15 = vmul.f32 %v5553_v1, %v5548_v20  ;;  %v5579_v3 = vperm.slane %v1904_v19, 4 }
 0x28f   : > { %v1721_v59 = vsel %vm1148_vm13, %v1705_v12, %v5458_v55  ;;  %v1679_v55 = vsel %vm1097_vm9, %v1663_v9, %v1567_v51  ;;  %v1661_v34 = vsel %vm1080_vm8, %v1647_v46, %v1548_v18  ;;  %v2048_v18 = vmul.f32 %v5553_v1, %v5551_v63 }
 0x290   : > { %v1736_v33 = vsel %vm1165_vm12, %v1721_v59, %v1631_v4  ;;  %v1973_v4 = vmul.f32 %v5545_v50, %v5548_v20  ;;  %v2080_v25 = vrot.slane %v2047_v15, 2 }
 0x291   : > { %v1565_v23 = vpop.permute.xlu1 %1564  ;;  %v1758_v31 = vunpack.c.l.b16 %v1736_v33  ;;  %v2081_v26 = vrot.slane %v2048_v18, 2 }
 0x292   : > { %v1677_v40 = vsel %vm1097_vm9, %v1661_v34, %v1565_v23  ;;  %v2006_v6 = vrot.slane %v1973_v4, 1  ;;  %v1886_v23 = vpop.f32.mrf.mxu3 }
 0x293   : > { %v1588_v53 = vpop.permute.xlu0 %1587  ;;  %v1772_v60 = vpack.c.b16 %v1760_v37, %v1758_v31  ;;  %v2082_v12 = vsel %vm2079_vm15, %v2080_v25, %v2081_v26 }
 0x294   : > { %v1693_v41 = vsel %vm1114_vm10, %v1677_v40, %v1588_v53  ;;  %v2008_v29 = vsel %vm2005_vm14, %v2006_v6, %v2007_v11 }
 0x295   : > { %1864 = vmatmul.bf16.gmra.mxu2 %v1772_v60  ;;  %v1709_v16 = vsel %vm1131_vm11, %v1693_v41, %v1605_v30  ;;  %v2038_v28 = vadd.f32 %v2008_v29, %v1956_v62  ;;  %v5581_v30 = vperm.slane %v1904_v19, 5 }
 0x297   : > { %v2112_v0 = vadd.f32 %v2082_v12, %v2038_v28 }
 0x299   : > { %v1590_v56 = vpop.permute.xlu1 %1589 }
 0x29a   : > { %v1695_v35 = vsel %vm1114_vm10, %v1679_v55, %v1590_v56  ;;  %v1889_v15 = vpop.f32.mrf.mxu3 }
 0x29b   : > { %v1607_v2 = vpop.permute.xlu0 %1606 }
 0x29c   : > { %v1711_v57 = vsel %vm1131_vm11, %v1695_v35, %v1607_v2 }
 0x29d   : > { %v1726_v42 = vsel %vm1148_vm13, %v1711_v57, %v5257_v54 }
 0x29e   : > { %v1741_v8 = vsel %vm1165_vm12, %v1726_v42, %v5264_v38 }
 0x29f   : > { %v1764_v58 = vunpack.c.l.b16 %v1741_v8 }
 0x2a1   : > { %v1621_v36 = vpop.permute.xlu1 %1620 }
 0x2a2   : > { %v1725_v52 = vsel %vm1148_vm13, %v1709_v16, %v1621_v36  ;;  %v5600_v36 = vperm.slane %v1904_v19, 7 }
 0x2a3   : > { %v1740_v48 = vsel %vm1165_vm12, %v1725_v52, %v1635_v49 }
 0x2a4   : > { %v1762_v32 = vunpack.c.l.b16 %v1740_v48 }
 0x2a6   : > { %v1774_v47 = vpack.c.b16 %v1764_v58, %v1762_v32  ;;  %v5605_v32 = vperm.slane %v1904_v19, 6 }
 0x2a8   : > { %1869 = vmatmul.bf16.gmra.mxu2 %v1774_v47 }
 0x2f2   : > { %v1855_v44 = vpop.f32.mrf.mxu2 }
 0x2f3   : > { %v1856_v14 = vadd.f32 %v5566_v7, %v1855_v44 }
 0x2f5   : > { %v5576_v27 = vadd.f32 %v1884_v21, %v1856_v14 }
 0x2f7   : > { %v1919_v61 = vrot.slane %v5576_v27, 7 }
 0x2f9   : > { %v1938_v59 = vsel %vm846_vm1, 0.0, %v1919_v61  ;;  %v1947_v33 = vsel %vm846_vm1, %v1919_v61, 0.0 }
 0x2fa   : > { %v1975_v31 = vmul.f32 %v5545_v50, %v1938_v59  ;;  %v1976_v37 = vmul.f32 %v5545_v50, %v1947_v33  ;;  %v2049_v53 = vmul.f32 %v5553_v1, %v1938_v59  ;;  %v1857_v60 = vpop.f32.mrf.mxu2  ;;  %v2050_v9 = vmul.f32 %v5553_v1, %v1947_v33 }
 0x2fb   : > { %v2139_v46 = vmul.f32 %v5579_v3, %v1947_v33  ;;  %v2212_v51 = vmul.f32 %v5581_v30, %v1947_v33  ;;  %v1858_v56 = vadd.f32 %v5566_v7, %v1857_v60  ;;  %v2121_v40 = vmul.f32 %v5584_v24, %v1938_v59  ;;  %v5632_v33 = vld [vmem:[%s4924_s21 + $0x8] ss:$0 sm:$0xff]  ;;  %s4775_s21 = smov (!%p4512_p8), 112  }
 0x2fc   : > { %v2009_v55 = vrot.slane %v1975_v31, 1  ;;  %v2010_v34 = vrot.slane %v1976_v37, 1  ;;  %v2083_v35 = vrot.slane %v2049_v53, 2  ;;  %v1957_v2 = vmul.f32 %v5559_v17, %v1938_v59 }
 0x2fd   : > { %v2084_v57 = vrot.slane %v2050_v9, 2  ;;  %v5597_v41 = vadd.f32 %v1886_v23, %v1858_v56  ;;  %v2138_v16 = vmul.f32 %v5579_v3, %v1938_v59  ;;  %v2211_v8 = vmul.f32 %v5581_v30, %v1938_v59 }
 0x2fe   : > { %v2011_v42 = vsel %vm2005_vm14, %v2009_v55, %v2010_v34  ;;  %v2171_v49 = vrot.slane %v2139_v46, 1  ;;  %v2244_v58 = vrot.slane %v2212_v51, 2  ;;  %v2129_v45 = vadd.f32 %v2121_v40, %v2112_v0 }
 0x2ff   : > { %v1920_v52 = vrot.slane %v5597_v41, 7  ;;  %v2039_v48 = vadd.f32 %v2011_v42, %v1957_v2  ;;  %v2085_v47 = vsel %vm2079_vm15, %v2083_v35, %v2084_v57  ;;  %v2170_v39 = vrot.slane %v2138_v16, 1 }
 0x300   : > { %v2243_v11 = vrot.slane %v2211_v8, 2 }
 0x301   : > { %v5609_v4 = vsel %vm846_vm1, 0.0, %v1920_v52  ;;  %v5612_v5 = vsel %vm846_vm1, %v1920_v52, 0.0  ;;  %v2113_v6 = vadd.f32 %v2085_v47, %v2039_v48  ;;  %v2172_v29 = vsel %vm2005_vm14, %v2170_v39, %v2171_v49 }
 0x302   : > { %v5616_v18 = vmul.f32 %v5545_v50, %v5612_v5  ;;  %v1860_v19 = vpop.f32.mrf.mxu2  ;;  %v2122_v21 = vmul.f32 %v5584_v24, %v5609_v4  ;;  %v2140_v44 = vmul.f32 %v5579_v3, %v5609_v4  ;;  %v2141_v62 = vmul.f32 %v5579_v3, %v5612_v5 }
 0x303   : > { %v1861_v14 = vadd.f32 %v5566_v7, %v1860_v19  ;;  %v2213_v25 = vmul.f32 %v5581_v30, %v5609_v4  ;;  %v2214_v26 = vmul.f32 %v5581_v30, %v5612_v5  ;;  %v2202_v31 = vadd.f32 %v2172_v29, %v2129_v45  ;;  %v1891_v19 = vpop.f32.mrf.mxu3 }
 0x304   : > { %v2013_v28 = vrot.slane %v5616_v18, 1  ;;  %v2130_v61 = vadd.f32 %v2122_v21, %v2113_v6  ;;  %v2173_v12 = vrot.slane %v2140_v44, 1  ;;  %v2174_v59 = vrot.slane %v2141_v62, 1 }
 0x305   : > { %v5634_v23 = vadd.f32 %v1889_v15, %v1861_v14  ;;  %v2245_v37 = vsel %vm2079_vm15, %v2243_v11, %v2244_v58  ;;  %v2246_v53 = vrot.slane %v2213_v25, 2  ;;  %v2247_v0 = vrot.slane %v2214_v26, 2 }
 0x306   : > { %v2175_v60 = vsel %vm2005_vm14, %v2173_v12, %v2174_v59  ;;  %v2284_v9 = vmul.f32 %v5605_v32, %v5609_v4  ;;  %v2301_v46 = vmul.f32 %v5600_v36, %v5609_v4  ;;  %v2275_v55 = vadd.f32 %v2245_v37, %v2202_v31 }
 0x307   : > { %v1921_v51 = vrot.slane %v5634_v23, 7  ;;  %v2203_v56 = vadd.f32 %v2175_v60, %v2130_v61  ;;  %v2302_v34 = vmul.f32 %v5600_v36, %v5612_v5  ;;  %v2248_v35 = vsel %vm2079_vm15, %v2246_v53, %v2247_v0  ;;  %v5678_v53 = vld [vmem:[%s6862_s16] ss:$0 sm:$0xff]  ;;  %s6868_s16 = sld [smem:[#allocation16_spill]] (!%p4512_p8) }
 0x308   : > { %v2333_v40 = vrot.slane %v2301_v46, 1  ;;  %v2374_v2 = vmul.f32 %v5632_v33, %v5609_v4  ;;  %v2375_v57 = vmul.f32 %v5632_v33, %v5612_v5  ;;  %v2292_v49 = vadd.f32 %v2284_v9, %v2275_v55 }
 0x309   : > { %v5651_v42 = vsel %vm846_vm1, 0.0, %v1921_v51  ;;  %v5654_v16 = vsel %vm846_vm1, %v1921_v51, 0.0  ;;  %v2276_v8 = vadd.f32 %v2248_v35, %v2203_v56  ;;  %v2334_v6 = vrot.slane %v2302_v34, 1 }
 0x30a   : > { %v1980_v52 = vmul.f32 %v5545_v50, %v5654_v16  ;;  %v1862_v48 = vpop.f32.mrf.mxu2  ;;  %v2285_v58 = vmul.f32 %v5605_v32, %v5651_v42  ;;  %v2303_v47 = vmul.f32 %v5600_v36, %v5651_v42  ;;  %v2304_v45 = vmul.f32 %v5600_v36, %v5654_v16 }
 0x30b   : > { %v1863_v39 = vadd.f32 %v5566_v7, %v1862_v48  ;;  %v2376_v11 = vmul.f32 %v5632_v33, %v5651_v42  ;;  %v2377_v15 = vmul.f32 %v5632_v33, %v5654_v16  ;;  %v2335_v25 = vsel %vm2005_vm14, %v2333_v40, %v2334_v6 }
 0x30c   : > { %v2016_v21 = vrot.slane %v1980_v52, 1  ;;  %v2293_v44 = vadd.f32 %v2285_v58, %v2276_v8  ;;  %v2336_v62 = vrot.slane %v2303_v47, 1  ;;  %v2337_v14 = vrot.slane %v2304_v45, 1 }
 0x30d   : > { %v5669_v29 = vadd.f32 %v1891_v19, %v1863_v39  ;;  %v2406_v26 = vrot.slane %v2374_v2, 2  ;;  %v2407_v61 = vrot.slane %v2375_v57, 2  ;;  %v2365_v59 = vadd.f32 %v2335_v25, %v2292_v49 }
 0x30e   : > { %v2338_v12 = vsel %vm2005_vm14, %v2336_v62, %v2337_v14  ;;  %v2409_v31 = vrot.slane %v2376_v11, 2  ;;  %v2410_v37 = vrot.slane %v2377_v15, 2  ;;  %v1958_v46 = vmul.f32 %v5559_v17, %v5609_v4 }
 0x30f   : > { %v1922_v60 = vrot.slane %v5669_v29, 7  ;;  %v2366_v0 = vadd.f32 %v2338_v12, %v2293_v44  ;;  %v2408_v9 = vsel %vm2079_vm15, %v2406_v26, %v2407_v61  ;;  %v1959_v55 = vmul.f32 %v5559_v17, %v5651_v42  ;;  %v1894_v12 = vpop.f32.mrf.mxu3 }
 0x310   : > { %v2411_v51 = vsel %vm2079_vm15, %v2409_v31, %v2410_v37  ;;  %v2438_v56 = vadd.f32 %v2408_v9, %v2365_v59  ;;  %v1977_v34 = vmul.f32 %v5545_v50, %v5609_v4  ;;  %v1979_v57 = vmul.f32 %v5545_v50, %v5651_v42 }
 0x311   : > { %v5690_v35 = vsel %vm846_vm1, 0.0, %v1922_v60  ;;  %v5693_v40 = vsel %vm846_vm1, %v1922_v60, 0.0  ;;  %v2439_v2 = vadd.f32 %v2411_v51, %v2366_v0  ;;  %v2051_v48 = vmul.f32 %v5553_v1, %v5609_v4 }
 0x312   : > { %v5699_v8 = vmul.f32 %v5545_v50, %v5693_v40  ;;  %v2449_v49 = vadd.f32 %v5678_v53, %v2438_v56  ;;  %v2012_v52 = vrot.slane %v1977_v34, 1  ;;  %v2015_v47 = vrot.slane %v1979_v57, 1 }
 0x313   : > { %v2450_v58 = vadd.f32 %v5678_v53, %v2439_v2  ;;  %v2052_v45 = vmul.f32 %v5553_v1, %v5612_v5  ;;  %v2053_v39 = vmul.f32 %v5553_v1, %v5651_v42  ;;  %v2054_v15 = vmul.f32 %v5553_v1, %v5654_v16 }
 0x314   : > { %v2019_v6 = vrot.slane %v5699_v8, 1  ;;  %v2014_v11 = vsel %vm2005_vm14, %v2012_v52, %v2013_v28  ;;  %v2086_v19 = vrot.slane %v2051_v48, 2  ;;  %v2017_v44 = vsel %vm2005_vm14, %v2015_v47, %v2016_v21 }
 0x315   : > { %v2457_v4 = vpack.c.bf16 %v2450_v58, %v2449_v49  ;;  %v2040_v62 = vadd.f32 %v2014_v11, %v1958_v46  ;;  %v2087_v14 = vrot.slane %v2052_v45, 2  ;;  %v2041_v25 = vadd.f32 %v2017_v44, %v1959_v55 }
 0x316   : > { %v2089_v5 = vrot.slane %v2053_v39, 2  ;;  %v2090_v26 = vrot.slane %v2054_v15, 2  ;;  %v2123_v61 = vmul.f32 %v5584_v24, %v5651_v42  ;;  %v2124_v28 = vmul.f32 %v5584_v24, %v5690_v35 }
 0x317   : > { %4492 = vmatmul.msk.bf16.vlgmr.msrb.gmra.mxu1 %vm1063_vm7, %v2457_v4  ;;  %v2088_v18 = vsel %vm2079_vm15, %v2086_v19, %v2087_v14  ;;  %v2142_v59 = vmul.f32 %v5579_v3, %v5651_v42  ;;  %v2143_v21 = vmul.f32 %v5579_v3, %v5654_v16  ;;  %v2144_v0 = vmul.f32 %v5579_v3, %v5690_v35 }
 0x318   : > { %v1865_v31 = vpop.f32.mrf.mxu2  ;;  %v2091_v37 = vsel %vm2079_vm15, %v2089_v5, %v2090_v26  ;;  %v2114_v60 = vadd.f32 %v2088_v18, %v2040_v62  ;;  %v2145_v9 = vmul.f32 %v5579_v3, %v5693_v40  ;;  %v2215_v49 = vmul.f32 %v5581_v30, %v5651_v42 }
 0x319   : > { %v1866_v46 = vadd.f32 %v5566_v7, %v1865_v31  ;;  %v2115_v51 = vadd.f32 %v2091_v37, %v2041_v25  ;;  %v2176_v56 = vrot.slane %v2142_v59, 1  ;;  %v2177_v55 = vrot.slane %v2143_v21, 1  ;;  %v1896_v37 = vpop.f32.mrf.mxu3 }
 0x31a   : > { %v2131_v34 = vadd.f32 %v2123_v61, %v2114_v60  ;;  %v2179_v2 = vrot.slane %v2144_v0, 1  ;;  %v2180_v57 = vrot.slane %v2145_v9, 1  ;;  %v2216_v47 = vmul.f32 %v5581_v30, %v5654_v16 }
 0x31b   : > { %v5734_v52 = vadd.f32 %v1894_v12, %v1866_v46  ;;  %v2132_v48 = vadd.f32 %v2124_v28, %v2115_v51  ;;  %v2178_v58 = vsel %vm2005_vm14, %v2176_v56, %v2177_v55  ;;  %v2217_v11 = vmul.f32 %v5581_v30, %v5690_v35 }
 0x31c   : > { %v2181_v45 = vsel %vm2005_vm14, %v2179_v2, %v2180_v57  ;;  %v2204_v39 = vadd.f32 %v2178_v58, %v2131_v34  ;;  %v2218_v15 = vmul.f32 %v5581_v30, %v5693_v40  ;;  %v2249_v4 = vrot.slane %v2215_v49, 2 }
 0x31d   : > { %v1923_v19 = vrot.slane %v5734_v52, 7  ;;  %v2205_v42 = vadd.f32 %v2181_v45, %v2132_v48  ;;  %v2250_v44 = vrot.slane %v2216_v47, 2  ;;  %v2252_v62 = vrot.slane %v2217_v11, 2 }
 0x31e   : > { %v2253_v14 = vrot.slane %v2218_v15, 2  ;;  %v2286_v25 = vmul.f32 %v5605_v32, %v5690_v35  ;;  %v2305_v16 = vmul.f32 %v5600_v36, %v5690_v35  ;;  %v2306_v12 = vmul.f32 %v5600_v36, %v5693_v40 }
 0x31f   : > { %v5750_v5 = vsel %vm846_vm1, 0.0, %v1923_v19  ;;  %v5753_v26 = vsel %vm846_vm1, %v1923_v19, 0.0  ;;  %v2251_v61 = vsel %vm2079_vm15, %v2249_v4, %v2250_v44  ;;  %v2378_v47 = vmul.f32 %v5632_v33, %v5690_v35 }
 0x320   : > { %v1984_v18 = vmul.f32 %v5545_v50, %v5753_v26  ;;  %v1867_v28 = vpop.f32.mrf.mxu2  ;;  %v2254_v59 = vsel %vm2079_vm15, %v2252_v62, %v2253_v14  ;;  %v2277_v21 = vadd.f32 %v2251_v61, %v2204_v39  ;;  %v2287_v31 = vmul.f32 %v5605_v32, %v5750_v5 }
 0x321   : > { %v1868_v60 = vadd.f32 %v5566_v7, %v1867_v28  ;;  %v2278_v0 = vadd.f32 %v2254_v59, %v2205_v42  ;;  %v2307_v9 = vmul.f32 %v5600_v36, %v5750_v5  ;;  %v2308_v46 = vmul.f32 %v5600_v36, %v5753_v26 }
 0x322   : > { %v2022_v51 = vrot.slane %v1984_v18, 1  ;;  %v2294_v56 = vadd.f32 %v2286_v25, %v2277_v21  ;;  %v2339_v55 = vrot.slane %v2305_v16, 1  ;;  %v2340_v34 = vrot.slane %v2306_v12, 1 }
 0x323   : > { %v5768_v2 = vadd.f32 %v1896_v37, %v1868_v60  ;;  %v2295_v57 = vadd.f32 %v2287_v31, %v2278_v0  ;;  %v2342_v49 = vrot.slane %v2307_v9, 1  ;;  %v2343_v48 = vrot.slane %v2308_v46, 1 }
 0x324   : > { %v2341_v58 = vsel %vm2005_vm14, %v2339_v55, %v2340_v34  ;;  %v2379_v45 = vmul.f32 %v5632_v33, %v5693_v40  ;;  %v2380_v39 = vmul.f32 %v5632_v33, %v5750_v5  ;;  %v2381_v42 = vmul.f32 %v5632_v33, %v5753_v26  ;;  %v1899_v34 = vpop.f32.mrf.mxu3 }
 0x325   : > { %v1924_v11 = vrot.slane %v5768_v2, 7  ;;  %v2344_v15 = vsel %vm2005_vm14, %v2342_v49, %v2343_v48  ;;  %v2367_v19 = vadd.f32 %v2341_v58, %v2294_v56  ;;  %v2412_v44 = vrot.slane %v2378_v47, 2 }
 0x326   : > { %v2368_v4 = vadd.f32 %v2344_v15, %v2295_v57  ;;  %v2413_v62 = vrot.slane %v2379_v45, 2  ;;  %v2415_v14 = vrot.slane %v2380_v39, 2  ;;  %v2416_v61 = vrot.slane %v2381_v42, 2 }
 0x327   : > { %v5782_v25 = vsel %vm846_vm1, 0.0, %v1924_v11  ;;  %v5785_v16 = vsel %vm846_vm1, %v1924_v11, 0.0  ;;  %v1960_v12 = vmul.f32 %v5559_v17, %v5690_v35  ;;  %v1961_v59 = vmul.f32 %v5559_v17, %v5750_v5 }
 0x328   : > { %v5791_v18 = vmul.f32 %v5545_v50, %v5785_v16  ;;  %v2414_v28 = vsel %vm2079_vm15, %v2412_v44, %v2413_v62  ;;  %v1981_v21 = vmul.f32 %v5545_v50, %v5690_v35  ;;  %v2417_v31 = vsel %vm2079_vm15, %v2415_v14, %v2416_v61 }
 0x329   : > { %v2440_v37 = vadd.f32 %v2414_v28, %v2367_v19  ;;  %v1983_v60 = vmul.f32 %v5545_v50, %v5750_v5  ;;  %v2055_v0 = vmul.f32 %v5553_v1, %v5690_v35  ;;  %v2441_v46 = vadd.f32 %v2417_v31, %v2368_v4 }
 0x32a   : > { %v2025_v9 = vrot.slane %v5791_v18, 1  ;;  %v2018_v56 = vrot.slane %v1981_v21, 1  ;;  %v2056_v55 = vmul.f32 %v5553_v1, %v5693_v40  ;;  %v2057_v58 = vmul.f32 %v5553_v1, %v5750_v5 }
 0x32b   : > { %v1870_v57 = vpop.f32.mrf.mxu2  ;;  %v2451_v49 = vadd.f32 %v5678_v53, %v2440_v37  ;;  %v2021_v48 = vrot.slane %v1983_v60, 1  ;;  %v2058_v47 = vmul.f32 %v5553_v1, %v5753_v26  ;;  %v2452_v45 = vadd.f32 %v5678_v53, %v2441_v46 }
 0x32c   : > { %v1871_v35 = vadd.f32 %v5566_v7, %v1870_v57  ;;  %v2020_v39 = vsel %vm2005_vm14, %v2018_v56, %v2019_v6  ;;  %v2092_v40 = vrot.slane %v2055_v0, 2  ;;  %v2093_v19 = vrot.slane %v2056_v55, 2 }
 0x32d   : > { %v2023_v11 = vsel %vm2005_vm14, %v2021_v48, %v2022_v51  ;;  %v2042_v15 = vadd.f32 %v2020_v39, %v1960_v12  ;;  %v2095_v42 = vrot.slane %v2057_v58, 2  ;;  %v2458_v44 = vpack.c.bf16 %v2452_v45, %v2451_v49 }
 0x32e   : > { %v5817_v4 = vadd.f32 %v1899_v34, %v1871_v35  ;;  %v2043_v62 = vadd.f32 %v2023_v11, %v1961_v59  ;;  %v2096_v14 = vrot.slane %v2058_v47, 2  ;;  %v2094_v61 = vsel %vm2079_vm15, %v2092_v40, %v2093_v19  ;;  %v1901_v11 = vpop.f32.mrf.mxu3 }
 0x32f   : > { %v2125_v28 = vmul.f32 %v5584_v24, %v5750_v5  ;;  %v2126_v8 = vmul.f32 %v5584_v24, %v5782_v25  ;;  %v2146_v6 = vmul.f32 %v5579_v3, %v5750_v5  ;;  %4493 = vmatmul.msk.bf16.gmra.mxu1 %vm1063_vm7, %v2458_v44  ;;  %v2116_v21 = vadd.f32 %v2094_v61, %v2042_v15 }
 0x330   : > { %v1925_v51 = vrot.slane %v5817_v4, 7  ;;  %v2097_v12 = vsel %vm2079_vm15, %v2095_v42, %v2096_v14  ;;  %v2147_v59 = vmul.f32 %v5579_v3, %v5753_v26  ;;  %v2148_v37 = vmul.f32 %v5579_v3, %v5782_v25 }
 0x331   : > { %v2117_v31 = vadd.f32 %v2097_v12, %v2043_v62  ;;  %v2149_v60 = vmul.f32 %v5579_v3, %v5785_v16  ;;  %v2182_v0 = vrot.slane %v2146_v6, 1  ;;  %v2133_v55 = vadd.f32 %v2125_v28, %v2116_v21 }
 0x332   : > { %v5836_v46 = vsel %vm846_vm1, 0.0, %v1925_v51  ;;  %v5839_v56 = vsel %vm846_vm1, %v1925_v51, 0.0  ;;  %v2183_v34 = vrot.slane %v2147_v59, 1  ;;  %v2185_v58 = vrot.slane %v2148_v37, 1 }
 0x333   : > { %v5843_v57 = vmul.f32 %v5545_v50, %v5839_v56  ;;  %v1872_v49 = vpop.f32.mrf.mxu2  ;;  %v2134_v48 = vadd.f32 %v2126_v8, %v2117_v31  ;;  %v2186_v47 = vrot.slane %v2149_v60, 1  ;;  %v2219_v39 = vmul.f32 %v5581_v30, %v5750_v5 }
 0x334   : > { %v1873_v35 = vadd.f32 %v5566_v7, %v1872_v49  ;;  %v2184_v45 = vsel %vm2005_vm14, %v2182_v0, %v2183_v34  ;;  %v2220_v40 = vmul.f32 %v5581_v30, %v5753_v26  ;;  %v2221_v44 = vmul.f32 %v5581_v30, %v5782_v25 }
 0x335   : > { %v2028_v15 = vrot.slane %v5843_v57, 1  ;;  %v2187_v19 = vsel %vm2005_vm14, %v2185_v58, %v2186_v47  ;;  %v2206_v42 = vadd.f32 %v2184_v45, %v2133_v55  ;;  %v2222_v14 = vmul.f32 %v5581_v30, %v5785_v16 }
 0x336   : > { %v5855_v62 = vadd.f32 %v1901_v11, %v1873_v35  ;;  %v2207_v7 = vadd.f32 %v2187_v19, %v2134_v48  ;;  %v2255_v61 = vrot.slane %v2219_v39, 2  ;;  %v2256_v5 = vrot.slane %v2220_v40, 2  ;;  %v4581_v19 = vld [vmem:[%s703_s1] sm:$0xff] }
 0x337   : > { %v2258_v28 = vrot.slane %v2221_v44, 2  ;;  %v2288_v26 = vmul.f32 %v5605_v32, %v5782_v25  ;;  %v2289_v8 = vmul.f32 %v5605_v32, %v5836_v46  ;;  %v2259_v51 = vrot.slane %v2222_v14, 2  ;;  %3090 = vmatpush.bf16.msrb.mxu3 %v4581_v19 }
 0x338   : > { %v1926_v6 = vrot.slane %v5855_v62, 7  ;;  %v2309_v12 = vmul.f32 %v5600_v36, %v5782_v25  ;;  %v2310_v21 = vmul.f32 %v5600_v36, %v5785_v16  ;;  %v2257_v59 = vsel %vm2079_vm15, %v2255_v61, %v2256_v5 }
 0x339   : > { %v2311_v31 = vmul.f32 %v5600_v36, %v5836_v46  ;;  %v2312_v37 = vmul.f32 %v5600_v36, %v5839_v56  ;;  %v2382_v60 = vmul.f32 %v5632_v33, %v5782_v25  ;;  %v2260_v34 = vsel %vm2079_vm15, %v2258_v28, %v2259_v51 }
 0x33a   : > { %v5876_v0 = vsel %vm846_vm1, 0.0, %v1926_v6  ;;  %v5879_v55 = vsel %vm846_vm1, %v1926_v6, 0.0  ;;  %v2279_v49 = vadd.f32 %v2257_v59, %v2206_v42  ;;  %v2280_v58 = vadd.f32 %v2260_v34, %v2207_v7 }
 0x33b   : > { %v5884_v48 = vmul.f32 %v5579_v3, %v5879_v55  ;;  %v2345_v47 = vrot.slane %v2309_v12, 1  ;;  %v2346_v35 = vrot.slane %v2310_v21, 1  ;;  %v2348_v39 = vrot.slane %v2311_v31, 1 }
 0x33c   : > { %v2296_v45 = vadd.f32 %v2288_v26, %v2279_v49  ;;  %v2349_v40 = vrot.slane %v2312_v37, 1  ;;  %v2383_v11 = vmul.f32 %v5632_v33, %v5785_v16  ;;  %v2297_v44 = vadd.f32 %v2289_v8, %v2280_v58 }
 0x33d   : > { %v2347_v42 = vsel %vm2005_vm14, %v2345_v47, %v2346_v35  ;;  %v2384_v14 = vmul.f32 %v5632_v33, %v5836_v46  ;;  %v2385_v7 = vmul.f32 %v5632_v33, %v5839_v56  ;;  %v2418_v28 = vrot.slane %v2382_v60, 2 }
 0x33e   : > { %v2350_v61 = vsel %vm2005_vm14, %v2348_v39, %v2349_v40  ;;  %v2369_v5 = vadd.f32 %v2347_v42, %v2296_v45  ;;  %v2419_v26 = vrot.slane %v2383_v11, 2  ;;  %v1962_v8 = vmul.f32 %v5559_v17, %v5782_v25 }
 0x33f   : > { %v2370_v6 = vadd.f32 %v2350_v61, %v2297_v44  ;;  %v2421_v51 = vrot.slane %v2384_v14, 2  ;;  %v2422_v12 = vrot.slane %v2385_v7, 2  ;;  %v1963_v59 = vmul.f32 %v5559_v17, %v5836_v46 }
 0x340   : > { %v2420_v21 = vsel %vm2079_vm15, %v2418_v28, %v2419_v26  ;;  %v1985_v31 = vmul.f32 %v5545_v50, %v5782_v25  ;;  %v1987_v37 = vmul.f32 %v5545_v50, %v5836_v46  ;;  %v2059_v49 = vmul.f32 %v5553_v1, %v5782_v25 }
 0x341   : > { %v2423_v60 = vsel %vm2079_vm15, %v2421_v51, %v2422_v12  ;;  %v2442_v34 = vadd.f32 %v2420_v21, %v2369_v5  ;;  %v2060_v58 = vmul.f32 %v5553_v1, %v5785_v16  ;;  %v2061_v17 = vmul.f32 %v5553_v1, %v5836_v46 }
 0x342   : > { %v2443_v47 = vadd.f32 %v2423_v60, %v2370_v6  ;;  %v2024_v35 = vrot.slane %v1985_v31, 1  ;;  %v2027_v45 = vrot.slane %v1987_v37, 1  ;;  %v2062_v50 = vmul.f32 %v5553_v1, %v5839_v56 }
 0x343   : > { %v2453_v39 = vadd.f32 %v5678_v53, %v2442_v34  ;;  %v2098_v40 = vrot.slane %v2059_v49, 2  ;;  %v2099_v11 = vrot.slane %v2060_v58, 2  ;;  %v2101_v44 = vrot.slane %v2061_v17, 2 }
 0x344   : > { %v2454_v19 = vadd.f32 %v5678_v53, %v2443_v47  ;;  %v2026_v25 = vsel %vm2005_vm14, %v2024_v35, %v2025_v9  ;;  %v2029_v16 = vsel %vm2005_vm14, %v2027_v45, %v2028_v15  ;;  %v2102_v61 = vrot.slane %v2062_v50, 2 }
 0x345   : > { %v2044_v42 = vadd.f32 %v2026_v25, %v1962_v8  ;;  %v2045_v14 = vadd.f32 %v2029_v16, %v1963_v59  ;;  %v2100_v7 = vsel %vm2079_vm15, %v2098_v40, %v2099_v11  ;;  %v2127_v1 = vmul.f32 %v5584_v24, %v5836_v46 }
 0x346   : > { %v2459_v5 = vpack.c.bf16 %v2454_v19, %v2453_v39  ;;  %v2128_v28 = vmul.f32 %v5584_v24, %v5876_v0  ;;  %v2150_v18 = vmul.f32 %v5579_v3, %v5836_v46  ;;  %v2103_v9 = vsel %vm2079_vm15, %v2101_v44, %v2102_v61 }
 0x347   : > { %v2118_v57 = vadd.f32 %v2100_v7, %v2044_v42  ;;  %v2151_v15 = vmul.f32 %v5579_v3, %v5839_v56  ;;  %v2152_v26 = vmul.f32 %v5579_v3, %v5876_v0  ;;  %v2119_v6 = vadd.f32 %v2103_v9, %v2045_v14 }
 0x348   : > { %4494 = vmatmul.msk.bf16.gmra.mxu1 %vm1063_vm7, %v2459_v5  ;;  %v2188_v51 = vrot.slane %v2150_v18, 1  ;;  %v2192_v12 = vrot.slane %v5884_v48, 1  ;;  %v2223_v24 = vmul.f32 %v5581_v30, %v5836_v46  ;;  %v2224_v31 = vmul.f32 %v5581_v30, %v5839_v56 }
 0x349   : > { %v2135_v8 = vadd.f32 %v2127_v1, %v2118_v57  ;;  %v2189_v21 = vrot.slane %v2151_v15, 1  ;;  %v2191_v59 = vrot.slane %v2152_v26, 1  ;;  %v2136_v37 = vadd.f32 %v2128_v28, %v2119_v6 }
 0x34a   : > { %v2225_v60 = vmul.f32 %v5581_v30, %v5876_v0  ;;  %v2226_v3 = vmul.f32 %v5581_v30, %v5879_v55  ;;  %v2261_v34 = vrot.slane %v2223_v24, 2  ;;  %v2262_v58 = vrot.slane %v2224_v31, 2  ;;  %v2516_v31 = vld [vmem:[%s4936_s20] sm:$0xff] }
 0x34b   : > { %v2190_v49 = vsel %vm2005_vm14, %v2188_v51, %v2189_v21  ;;  %v2193_v48 = vsel %vm2005_vm14, %v2191_v59, %v2192_v12  ;;  %v2290_v46 = vmul.f32 %v5605_v32, %v5876_v0  ;;  %v2291_v39 = vmul.f32 %v5605_v32, %v5548_v20 }
 0x34c   : > { %v2208_v47 = vadd.f32 %v2190_v49, %v2135_v8  ;;  %v2209_v35 = vadd.f32 %v2193_v48, %v2136_v37  ;;  %v2264_v45 = vrot.slane %v2225_v60, 2  ;;  %v2265_v56 = vrot.slane %v2226_v3, 2 }
 0x34d   : > { %v2263_v17 = vsel %vm2079_vm15, %v2261_v34, %v2262_v58  ;;  %v2313_v30 = vmul.f32 %v5600_v36, %v5876_v0  ;;  %v2314_v50 = vmul.f32 %v5600_v36, %v5879_v55  ;;  %v2315_v19 = vmul.f32 %v5600_v36, %v5548_v20 }
 0x34e   : > { %v2266_v40 = vsel %vm2079_vm15, %v2264_v45, %v2265_v56  ;;  %v2281_v11 = vadd.f32 %v2263_v17, %v2208_v47  ;;  %v2316_v25 = vmul.f32 %v5600_v36, %v5551_v63  ;;  %v2386_v32 = vmul.f32 %v5632_v33, %v5876_v0 }
 0x34f   : > { %v2282_v16 = vadd.f32 %v2266_v40, %v2209_v35  ;;  %v2351_v44 = vrot.slane %v2313_v30, 1  ;;  %v2352_v42 = vrot.slane %v2314_v50, 1  ;;  %v2354_v7 = vrot.slane %v2315_v19, 1 }
 0x350   : > { %v2298_v14 = vadd.f32 %v2290_v46, %v2281_v11  ;;  %v2355_v61 = vrot.slane %v2316_v25, 1  ;;  %v2387_v5 = vmul.f32 %v5632_v33, %v5879_v55  ;;  %v2388_v18 = vmul.f32 %v5632_v33, %v5548_v20 }
 0x351   : > { %v2299_v1 = vadd.f32 %v2291_v39, %v2282_v16  ;;  %v2353_v28 = vsel %vm2005_vm14, %v2351_v44, %v2352_v42  ;;  %v2389_v36 = vmul.f32 %v5632_v33, %v5551_v63  ;;  %v2424_v0 = vrot.slane %v2386_v32, 2 }
 0x352   : > { %v2356_v9 = vsel %vm2005_vm14, %v2354_v7, %v2355_v61  ;;  %v2371_v57 = vadd.f32 %v2353_v28, %v2298_v14  ;;  %v2425_v15 = vrot.slane %v2387_v5, 2  ;;  %v2427_v6 = vrot.slane %v2388_v18, 2 }
 0x353   : > { %v2372_v26 = vadd.f32 %v2356_v9, %v2299_v1  ;;  %v2428_v51 = vrot.slane %v2389_v36, 2  ;;  %v5979_v37 = vperm.slane %v2516_v31, 1  ;;  %v5985_v34 = vperm.slane %v2516_v31, 2 }
 0x354   : > { %v2426_v55 = vsel %vm2079_vm15, %v2424_v0, %v2425_v15  ;;  %v5987_v49 = vperm.slane %v2516_v31, 0  ;;  %v5996_v50 = vperm.slane %v2516_v31, 4  ;;  %v5998_v11 = vperm.slane %v2516_v31, 3 }
 0x355   : > { %v2429_v12 = vsel %vm2079_vm15, %v2427_v6, %v2428_v51  ;;  %v2444_v24 = vadd.f32 %v2426_v55, %v2371_v57  ;;  %v2579_v60 = vmul.f32 %v5979_v37, %v5548_v20  ;;  %v2580_v3 = vmul.f32 %v5979_v37, %v5551_v63 }
 0x356   : > { %v2445_v8 = vadd.f32 %v2429_v12, %v2372_v26  ;;  %v2653_v46 = vmul.f32 %v5985_v34, %v5551_v63  ;;  %v2562_v35 = vmul.f32 %v5987_v49, %v5548_v20  ;;  %v6007_v7 = vperm.slane %v2516_v31, 5 }
 0x357   : > { %v2455_v21 = vadd.f32 %v5678_v53, %v2444_v24  ;;  %v2611_v48 = vrot.slane %v2579_v60, 1  ;;  %v2612_v58 = vrot.slane %v2580_v3, 1 }
 0x358   : > { %v2456_v59 = vadd.f32 %v5678_v53, %v2445_v8  ;;  %v2652_v53 = vmul.f32 %v5985_v34, %v5548_v20  ;;  %v2685_v39 = vrot.slane %v2653_v46, 2 }
 0x359   : > { %v2613_v56 = vsel %vm2005_vm14, %v2611_v48, %v2612_v58 }
 0x35a   : > { %v2460_v33 = vpack.c.bf16 %v2456_v59, %v2455_v21  ;;  %v2684_v17 = vrot.slane %v2652_v53, 2  ;;  %v2643_v40 = vadd.f32 %v2613_v56, %v2562_v35  ;;  %v6021_v35 = vperm.slane %v2516_v31, 7 }
 0x35c   : > { %4495 = vmatmul.msk.bf16.gmra.mxu1 %vm1063_vm7, %v2460_v33  ;;  %v2686_v16 = vsel %vm2079_vm15, %v2684_v17, %v2685_v39 }
 0x35d   : > { %v2716_v61 = vadd.f32 %v2686_v16, %v2643_v40 }
 0x394   : > { %v2488_v47 = vpop.f32.mrf.mxu1 }
 0x395   : > { %v2508_v45 = vmax.f32 %v2488_v47, 0.0 }
 0x397   : > { %v2529_v30 = vrot.slane %v2508_v45, 7  ;;  %v6023_v45 = vperm.slane %v2516_v31, 6 }
 0x399   : > { %v2545_v19 = vsel %vm846_vm1, 0.0, %v2529_v30  ;;  %v2553_v25 = vsel %vm846_vm1, %v2529_v30, 0.0 }
 0x39a   : > { %v2581_v44 = vmul.f32 %v5979_v37, %v2545_v19  ;;  %v2582_v42 = vmul.f32 %v5979_v37, %v2553_v25  ;;  %v2742_v32 = vmul.f32 %v5996_v50, %v2545_v19  ;;  %v2743_v14 = vmul.f32 %v5996_v50, %v2553_v25 }
 0x39b   : > { %v2725_v5 = vmul.f32 %v5998_v11, %v2545_v19  ;;  %v2654_v57 = vmul.f32 %v5985_v34, %v2545_v19  ;;  %v2655_v0 = vmul.f32 %v5985_v34, %v2553_v25  ;;  %v2815_v26 = vmul.f32 %v6007_v7, %v2545_v19 }
 0x39c   : > { %v2490_v1 = vpop.f32.mrf.mxu1  ;;  %v2614_v28 = vrot.slane %v2581_v44, 1  ;;  %v2615_v18 = vrot.slane %v2582_v42, 1  ;;  %v2774_v36 = vrot.slane %v2742_v32, 1  ;;  %v2775_v9 = vrot.slane %v2743_v14, 1 }
 0x39d   : > { %v2509_v15 = vmax.f32 %v2490_v1, 0.0  ;;  %v2816_v6 = vmul.f32 %v6007_v7, %v2553_v25  ;;  %v2733_v51 = vadd.f32 %v2725_v5, %v2716_v61  ;;  %v2563_v12 = vmul.f32 %v5987_v49, %v2545_v19  ;;  %v6030_v25 = vld [vmem:[%s4936_s20 + $0x8] ss:$0 sm:$0xff] }
 0x39e   : > { %v2616_v24 = vsel %vm2005_vm14, %v2614_v28, %v2615_v18  ;;  %v2776_v8 = vsel %vm2005_vm14, %v2774_v36, %v2775_v9  ;;  %v2687_v21 = vrot.slane %v2654_v57, 2  ;;  %v2688_v59 = vrot.slane %v2655_v0, 2 }
 0x39f   : > { %v2530_v55 = vrot.slane %v2509_v15, 7  ;;  %v2847_v3 = vrot.slane %v2815_v26, 2  ;;  %v2848_v48 = vrot.slane %v2816_v6, 2  ;;  %v2644_v46 = vadd.f32 %v2616_v24, %v2563_v12 }
 0x3a0   : > { %v2806_v47 = vadd.f32 %v2776_v8, %v2733_v51  ;;  %v2689_v30 = vsel %vm2079_vm15, %v2687_v21, %v2688_v59 }
 0x3a1   : > { %v2546_v33 = vsel %vm846_vm1, 0.0, %v2530_v55  ;;  %v2554_v60 = vsel %vm846_vm1, %v2530_v55, 0.0  ;;  %v2849_v40 = vsel %vm2079_vm15, %v2847_v3, %v2848_v48  ;;  %v2717_v16 = vadd.f32 %v2689_v30, %v2644_v46 }
 0x3a2   : > { %v2583_v58 = vmul.f32 %v5979_v37, %v2546_v33  ;;  %v2584_v53 = vmul.f32 %v5979_v37, %v2554_v60  ;;  %v2744_v39 = vmul.f32 %v5996_v50, %v2546_v33  ;;  %v2745_v19 = vmul.f32 %v5996_v50, %v2554_v60 }
 0x3a3   : > { %v2879_v44 = vadd.f32 %v2849_v40, %v2806_v47  ;;  %v2906_v42 = vmul.f32 %v6021_v35, %v2554_v60  ;;  %v2656_v32 = vmul.f32 %v5985_v34, %v2546_v33  ;;  %v2657_v31 = vmul.f32 %v5985_v34, %v2554_v60 }
 0x3a4   : > { %v2617_v56 = vrot.slane %v2583_v58, 1  ;;  %v2618_v17 = vrot.slane %v2584_v53, 1  ;;  %v2888_v14 = vmul.f32 %v6023_v45, %v2546_v33  ;;  %v2905_v61 = vmul.f32 %v6021_v35, %v2546_v33 }
 0x3a5   : > { %v2726_v1 = vmul.f32 %v5998_v11, %v2546_v33  ;;  %v2777_v28 = vrot.slane %v2744_v39, 1  ;;  %v2938_v18 = vrot.slane %v2906_v42, 1  ;;  %v2778_v36 = vrot.slane %v2745_v19, 1 }
 0x3a6   : > { %v2619_v5 = vsel %vm2005_vm14, %v2617_v56, %v2618_v17  ;;  %v2979_v9 = vmul.f32 %v6030_v25, %v2554_v60  ;;  %v2937_v57 = vrot.slane %v2905_v61, 1  ;;  %v2978_v0 = vmul.f32 %v6030_v25, %v2546_v33 }
 0x3a7   : > { %v2564_v15 = vmul.f32 %v5987_v49, %v2546_v33  ;;  %v2817_v26 = vmul.f32 %v6007_v7, %v2546_v33  ;;  %v2818_v6 = vmul.f32 %v6007_v7, %v2554_v60  ;;  %v2896_v51 = vadd.f32 %v2888_v14, %v2879_v44 }
 0x3a8   : > { %v2690_v55 = vrot.slane %v2656_v32, 2  ;;  %v2691_v12 = vrot.slane %v2657_v31, 2  ;;  %v2939_v8 = vsel %vm2005_vm14, %v2937_v57, %v2938_v18  ;;  %v2734_v59 = vadd.f32 %v2726_v1, %v2717_v16 }
 0x3a9   : > { %v2645_v21 = vadd.f32 %v2619_v5, %v2564_v15  ;;  %v2779_v48 = vsel %vm2005_vm14, %v2777_v28, %v2778_v36  ;;  %v3011_v58 = vrot.slane %v2979_v9, 2  ;;  %v3010_v53 = vrot.slane %v2978_v0, 2  ;;  %v6061_v5 = vld [vmem:[%s698_s24] ss:$0 sm:$0xff] }
 0x3aa   : > { %v2850_v46 = vrot.slane %v2817_v26, 2  ;;  %v2851_v47 = vrot.slane %v2818_v6, 2  ;;  %v2969_v33 = vadd.f32 %v2939_v8, %v2896_v51  ;;  %v2692_v60 = vsel %vm2079_vm15, %v2690_v55, %v2691_v12 }
 0x3ab   : > { %v2718_v17 = vadd.f32 %v2692_v60, %v2645_v21  ;;  %v2807_v39 = vadd.f32 %v2779_v48, %v2734_v59  ;;  %v3012_v42 = vsel %vm2079_vm15, %v3010_v53, %v3011_v58 }
 0x3ac   : > { %v2493_v24 = vpop.f32.mrf.mxu1  ;;  %v2852_v32 = vsel %vm2079_vm15, %v2850_v46, %v2851_v47  ;;  %v3042_v61 = vadd.f32 %v3012_v42, %v2969_v33 }
 0x3ad   : > { %v2510_v3 = vmax.f32 %v2493_v24, 0.0  ;;  %v2880_v55 = vadd.f32 %v2852_v32, %v2807_v39 }
 0x3ae   : > { %v6073_v59 = vadd.f32 %v6061_v5, %v3042_v61 }
 0x3af   : > { %v2531_v56 = vrot.slane %v2510_v3, 7 }
 0x3b1   : > { %v2547_v30 = vsel %vm846_vm1, 0.0, %v2531_v56  ;;  %v2555_v40 = vsel %vm846_vm1, %v2531_v56, 0.0 }
 0x3b2   : > { %v2585_v19 = vmul.f32 %v5979_v37, %v2547_v30  ;;  %v2586_v16 = vmul.f32 %v5979_v37, %v2555_v40  ;;  %v2658_v44 = vmul.f32 %v5985_v34, %v2547_v30  ;;  %v2659_v31 = vmul.f32 %v5985_v34, %v2555_v40 }
 0x3b3   : > { %v2747_v14 = vmul.f32 %v5996_v50, %v2555_v40  ;;  %v6064_v18 = vmul.f32 %v6007_v7, %v2555_v40  ;;  %v2908_v36 = vmul.f32 %v6021_v35, %v2555_v40  ;;  %v2565_v57 = vmul.f32 %v5987_v49, %v2547_v30 }
 0x3b4   : > { %v2620_v1 = vrot.slane %v2585_v19, 1  ;;  %v2621_v28 = vrot.slane %v2586_v16, 1  ;;  %v2495_v9 = vpop.f32.mrf.mxu1  ;;  %v2693_v0 = vrot.slane %v2658_v44, 2  ;;  %v2694_v15 = vrot.slane %v2659_v31, 2 }
 0x3b5   : > { %v2981_v26 = vmul.f32 %v6030_v25, %v2555_v40  ;;  %v2511_v51 = vmax.f32 %v2495_v9, 0.0  ;;  %v2889_v12 = vmul.f32 %v6023_v45, %v2547_v30  ;;  %v2781_v8 = vrot.slane %v2747_v14, 1 }
 0x3b6   : > { %v2622_v6 = vsel %vm2005_vm14, %v2620_v1, %v2621_v28  ;;  %v2907_v21 = vmul.f32 %v6021_v35, %v2547_v30  ;;  %v2854_v3 = vrot.slane %v6064_v18, 2  ;;  %v2941_v48 = vrot.slane %v2908_v36, 1 }
 0x3b7   : > { %v2646_v24 = vadd.f32 %v2622_v6, %v2565_v57  ;;  %v2532_v58 = vrot.slane %v2511_v51, 7  ;;  %v2980_v53 = vmul.f32 %v6030_v25, %v2547_v30  ;;  %v2695_v46 = vsel %vm2079_vm15, %v2693_v0, %v2694_v15 }
 0x3b8   : > { %v3014_v47 = vrot.slane %v2981_v26, 2  ;;  %v2727_v56 = vmul.f32 %v5998_v11, %v2547_v30  ;;  %v2746_v33 = vmul.f32 %v5996_v50, %v2547_v30  ;;  %v2897_v19 = vadd.f32 %v2889_v12, %v2880_v55 }
 0x3b9   : > { %v2719_v60 = vadd.f32 %v2695_v46, %v2646_v24  ;;  %v2548_v39 = vsel %vm846_vm1, 0.0, %v2532_v58  ;;  %v2556_v40 = vsel %vm846_vm1, %v2532_v58, 0.0  ;;  %v2940_v32 = vrot.slane %v2907_v21, 1 }
 0x3ba   : > { %v2587_v16 = vmul.f32 %v5979_v37, %v2548_v39  ;;  %v2588_v44 = vmul.f32 %v5979_v37, %v2556_v40  ;;  %v2660_v42 = vmul.f32 %v5985_v34, %v2548_v39  ;;  %v2661_v31 = vmul.f32 %v5985_v34, %v2556_v40 }
 0x3bb   : > { %v2749_v14 = vmul.f32 %v5996_v50, %v2556_v40  ;;  %v2822_v61 = vmul.f32 %v6007_v7, %v2556_v40  ;;  %v3013_v1 = vrot.slane %v2980_v53, 2  ;;  %v2566_v28 = vmul.f32 %v5987_v49, %v2548_v39 }
 0x3bc   : > { %v2735_v18 = vadd.f32 %v2727_v56, %v2718_v17  ;;  %v2780_v36 = vrot.slane %v2746_v33, 1  ;;  %v2819_v9 = vmul.f32 %v6007_v7, %v2547_v30  ;;  %v2623_v57 = vrot.slane %v2587_v16, 1 }
 0x3bd   : > { %v2624_v0 = vrot.slane %v2588_v44, 1  ;;  %v2696_v15 = vrot.slane %v2660_v42, 2  ;;  %v2910_v26 = vmul.f32 %v6021_v35, %v2556_v40  ;;  %v2697_v6 = vrot.slane %v2661_v31, 2 }
 0x3be   : > { %v2784_v51 = vrot.slane %v2749_v14, 1  ;;  %v2983_v55 = vmul.f32 %v6030_v25, %v2556_v40  ;;  %v2942_v12 = vsel %vm2005_vm14, %v2940_v32, %v2941_v48  ;;  %v2857_v24 = vrot.slane %v2822_v61, 2 }
 0x3bf   : > { %v2970_v21 = vadd.f32 %v2942_v12, %v2897_v19  ;;  %v3015_v58 = vsel %vm2079_vm15, %v3013_v1, %v3014_v47  ;;  %v2728_v17 = vmul.f32 %v5998_v11, %v2548_v39  ;;  %v2748_v53 = vmul.f32 %v5996_v50, %v2548_v39 }
 0x3c0   : > { %v2782_v30 = vsel %vm2005_vm14, %v2780_v36, %v2781_v8  ;;  %v2821_v46 = vmul.f32 %v6007_v7, %v2548_v39  ;;  %v2853_v56 = vrot.slane %v2819_v9, 2  ;;  %v2625_v33 = vsel %vm2005_vm14, %v2623_v57, %v2624_v0 }
 0x3c1   : > { %v3043_v16 = vadd.f32 %v3015_v58, %v2970_v21  ;;  %v2736_v44 = vadd.f32 %v2728_v17, %v2719_v60  ;;  %v2808_v40 = vadd.f32 %v2782_v30, %v2735_v18  ;;  %v2944_v42 = vrot.slane %v2910_v26, 1 }
 0x3c2   : > { %v2783_v48 = vrot.slane %v2748_v53, 1  ;;  %v2855_v19 = vsel %vm2079_vm15, %v2853_v56, %v2854_v3  ;;  %v2890_v47 = vmul.f32 %v6023_v45, %v2548_v39  ;;  %v2909_v8 = vmul.f32 %v6021_v35, %v2548_v39 }
 0x3c3   : > { %v3054_v31 = vadd.f32 %v6061_v5, %v3043_v16  ;;  %v2881_v14 = vadd.f32 %v2855_v19, %v2808_v40  ;;  %v2982_v61 = vmul.f32 %v6030_v25, %v2548_v39  ;;  %v2647_v1 = vadd.f32 %v2625_v33, %v2566_v28 }
 0x3c4   : > { %v2785_v9 = vsel %vm2005_vm14, %v2783_v48, %v2784_v51  ;;  %v2856_v60 = vrot.slane %v2821_v46, 2  ;;  %v2943_v0 = vrot.slane %v2909_v8, 1  ;;  %v2698_v12 = vsel %vm2079_vm15, %v2696_v15, %v2697_v6 }
 0x3c5   : > { %v2498_v32 = vpop.f32.mrf.mxu1  ;;  %v3061_v18 = vpack.c.bf16 %v3054_v31, %v6073_v59  ;;  %v2809_v57 = vadd.f32 %v2785_v9, %v2736_v44  ;;  %v2898_v26 = vadd.f32 %v2890_v47, %v2881_v14  ;;  %v3017_v21 = vrot.slane %v2983_v55, 2 }
 0x3c6   : > { %v2512_v36 = vmax.f32 %v2498_v32, 0.0  ;;  %v2945_v58 = vsel %vm2005_vm14, %v2943_v0, %v2944_v42  ;;  %v3016_v17 = vrot.slane %v2982_v61, 2  ;;  %v2720_v39 = vadd.f32 %v2698_v12, %v2647_v1 }
 0x3c7   : > { %4500 = vmatmul.msk.bf16.vlgmr.msrb.gmra.mxu3 %vm1063_vm7, %v3061_v18  ;;  %v2858_v59 = vsel %vm2079_vm15, %v2856_v60, %v2857_v24  ;;  %v2971_v33 = vadd.f32 %v2945_v58, %v2898_v26 }
 0x3c8   : > { %v2533_v3 = vrot.slane %v2512_v36, 7  ;;  %v2882_v6 = vadd.f32 %v2858_v59, %v2809_v57  ;;  %v3018_v42 = vsel %vm2079_vm15, %v3016_v17, %v3017_v21 }
 0x3c9   : > { %v3044_v0 = vadd.f32 %v3018_v42, %v2971_v33 }
 0x3ca   : > { %v6110_v28 = vsel %vm846_vm1, 0.0, %v2533_v3  ;;  %v2557_v51 = vsel %vm846_vm1, %v2533_v3, 0.0 }
 0x3cb   : > { %v2589_v53 = vmul.f32 %v5979_v37, %v6110_v28  ;;  %v2590_v30 = vmul.f32 %v5979_v37, %v2557_v51  ;;  %v2662_v15 = vmul.f32 %v5985_v34, %v6110_v28  ;;  %v2663_v55 = vmul.f32 %v5985_v34, %v2557_v51 }
 0x3cc   : > { %v6121_v46 = vmul.f32 %v5996_v50, %v2557_v51  ;;  %v6124_v56 = vmul.f32 %v6007_v7, %v2557_v51  ;;  %v2567_v48 = vmul.f32 %v5987_v49, %v6110_v28  ;;  %v2912_v47 = vmul.f32 %v6021_v35, %v2557_v51 }
 0x3cd   : > { %v2626_v16 = vrot.slane %v2589_v53, 1  ;;  %v2627_v24 = vrot.slane %v2590_v30, 1  ;;  %v2699_v44 = vrot.slane %v2662_v15, 2  ;;  %v2500_v40 = vpop.f32.mrf.mxu1  ;;  %v2700_v19 = vrot.slane %v2663_v55, 2 }
 0x3ce   : > { %v2985_v32 = vmul.f32 %v6030_v25, %v2557_v51  ;;  %v2787_v14 = vrot.slane %v6121_v46, 1  ;;  %v2513_v8 = vmax.f32 %v2500_v40, 0.0  ;;  %v2891_v61 = vmul.f32 %v6023_v45, %v6110_v28 }
 0x3cf   : > { %v2628_v31 = vsel %vm2005_vm14, %v2626_v16, %v2627_v24  ;;  %v2860_v36 = vrot.slane %v6124_v56, 2  ;;  %v2911_v9 = vmul.f32 %v6021_v35, %v6110_v28  ;;  %v2984_v60 = vmul.f32 %v6030_v25, %v6110_v28 }
 0x3d0   : > { %v2648_v1 = vadd.f32 %v2628_v31, %v2567_v48  ;;  %v2701_v18 = vsel %vm2079_vm15, %v2699_v44, %v2700_v19  ;;  %v2534_v57 = vrot.slane %v2513_v8, 7  ;;  %v2729_v3 = vmul.f32 %v5998_v11, %v6110_v28 }
 0x3d1   : > { %v2947_v12 = vrot.slane %v2912_v47, 1  ;;  %v3020_v21 = vrot.slane %v2985_v32, 2  ;;  %v2899_v58 = vadd.f32 %v2891_v61, %v2882_v6  ;;  %v2946_v59 = vrot.slane %v2911_v9, 1 }
 0x3d2   : > { %v2721_v26 = vadd.f32 %v2701_v18, %v2648_v1  ;;  %v6144_v17 = vsel %vm846_vm1, 0.0, %v2534_v57  ;;  %v2558_v51 = vsel %vm846_vm1, %v2534_v57, 0.0  ;;  %v3019_v53 = vrot.slane %v2984_v60, 2 }
 0x3d3   : > { %v2591_v30 = vmul.f32 %v5979_v37, %v6144_v17  ;;  %v2592_v15 = vmul.f32 %v5979_v37, %v2558_v51  ;;  %v2664_v55 = vmul.f32 %v5985_v34, %v6144_v17  ;;  %v2750_v46 = vmul.f32 %v5996_v50, %v6110_v28 }
 0x3d4   : > { %v2665_v6 = vmul.f32 %v5985_v34, %v2558_v51  ;;  %v2753_v33 = vmul.f32 %v5996_v50, %v2558_v51  ;;  %v3055_v16 = vadd.f32 %v6061_v5, %v3044_v0  ;;  %v2737_v24 = vadd.f32 %v2729_v3, %v2720_v39 }
 0x3d5   : > { %v2568_v44 = vmul.f32 %v5987_v49, %v6144_v17  ;;  %v2629_v40 = vrot.slane %v2591_v30, 1  ;;  %v2630_v42 = vrot.slane %v2592_v15, 1  ;;  %v2702_v48 = vrot.slane %v2664_v55, 2 }
 0x3d6   : > { %v2703_v19 = vrot.slane %v2665_v6, 2  ;;  %v2826_v47 = vmul.f32 %v6007_v7, %v2558_v51  ;;  %v6161_v32 = vmul.f32 %v6021_v35, %v2558_v51  ;;  %v6164_v31 = vmul.f32 %v6030_v25, %v2558_v51 }
 0x3d7   : > { %v2631_v8 = vsel %vm2005_vm14, %v2629_v40, %v2630_v42  ;;  %v2790_v61 = vrot.slane %v2753_v33, 1  ;;  %v2948_v39 = vsel %vm2005_vm14, %v2946_v59, %v2947_v12  ;;  %v3021_v1 = vsel %vm2079_vm15, %v3019_v53, %v3020_v21 }
 0x3d8   : > { %v2649_v9 = vadd.f32 %v2631_v8, %v2568_v44  ;;  %v2704_v60 = vsel %vm2079_vm15, %v2702_v48, %v2703_v19  ;;  %v2972_v57 = vadd.f32 %v2948_v39, %v2899_v58  ;;  %v2730_v0 = vmul.f32 %v5998_v11, %v6144_v17 }
 0x3d9   : > { %v2503_v18 = vpop.f32.mrf.mxu1  ;;  %v2752_v51 = vmul.f32 %v5996_v50, %v6144_v17  ;;  %v2786_v30 = vrot.slane %v2750_v46, 1  ;;  %v2823_v15 = vmul.f32 %v6007_v7, %v6110_v28  ;;  %v2863_v12 = vrot.slane %v2826_v47, 2 }
 0x3da   : > { %v2514_v3 = vmax.f32 %v2503_v18, 0.0  ;;  %v6176_v55 = vadd.f32 %v2704_v60, %v2649_v9  ;;  %v3045_v21 = vadd.f32 %v3021_v1, %v2972_v57  ;;  %v2825_v59 = vmul.f32 %v6007_v7, %v6144_v17 }
 0x3db   : > { %v2788_v6 = vsel %vm2005_vm14, %v2786_v30, %v2787_v14  ;;  %v2789_v33 = vrot.slane %v2752_v51, 1  ;;  %v2738_v40 = vadd.f32 %v2730_v0, %v2721_v26  ;;  %v2859_v42 = vrot.slane %v2823_v15, 2 }
 0x3dc   : > { %v2535_v53 = vrot.slane %v2514_v3, 7  ;;  %v3056_v46 = vadd.f32 %v6061_v5, %v3045_v21  ;;  %v2810_v19 = vadd.f32 %v2788_v6, %v2737_v24  ;;  %v2862_v47 = vrot.slane %v2825_v59, 2 }
 0x3dd   : > { %v2791_v24 = vsel %vm2005_vm14, %v2789_v33, %v2790_v61  ;;  %v2892_v3 = vmul.f32 %v6023_v45, %v6144_v17 }
 0x3de   : > { %v6185_v28 = vsel %vm846_vm1, 0.0, %v2535_v53  ;;  %v2559_v48 = vsel %vm846_vm1, %v2535_v53, 0.0  ;;  %v3062_v60 = vpack.c.bf16 %v3056_v46, %v3055_v16  ;;  %v2864_v33 = vsel %vm2079_vm15, %v2862_v47, %v2863_v12 }
 0x3df   : > { %v2593_v8 = vmul.f32 %v5979_v37, %v6185_v28  ;;  %v2594_v39 = vmul.f32 %v5979_v37, %v2559_v48  ;;  %v2667_v14 = vmul.f32 %v5985_v34, %v2559_v48  ;;  %v6193_v1 = vmul.f32 %v5996_v50, %v2559_v48 }
 0x3e0   : > { %v6196_v26 = vmul.f32 %v6007_v7, %v2559_v48  ;;  %v6199_v9 = vmul.f32 %v6021_v35, %v2559_v48  ;;  %v2861_v37 = vsel %vm2079_vm15, %v2859_v42, %v2860_v36  ;;  %v6209_v15 = vmul.f32 %v6030_v25, %v2559_v48  ;;  %4501 = vmatmul.msk.bf16.gmra.mxu3 %vm1063_vm7, %v3062_v60 }
 0x3e1   : > { %v2632_v18 = vrot.slane %v2593_v8, 1  ;;  %v2633_v57 = vrot.slane %v2594_v39, 1  ;;  %v2505_v0 = vpop.f32.mrf.mxu1  ;;  %v2706_v51 = vrot.slane %v2667_v14, 2  ;;  %v2569_v21 = vmul.f32 %v5987_v49, %v6185_v28 }
 0x3e2   : > { %v2515_v16 = vmax.f32 %v2505_v0, 0.0  ;;  %v2666_v56 = vmul.f32 %v5985_v34, %v6185_v28  ;;  %v2811_v36 = vadd.f32 %v2791_v24, %v2738_v40  ;;  %v2953_v53 = vrot.slane %v6199_v9, 1 }
 0x3e3   : > { %v2634_v61 = vsel %vm2005_vm14, %v2632_v18, %v2633_v57  ;;  %v2883_v48 = vadd.f32 %v2861_v37, %v2810_v19  ;;  %v2893_v8 = vmul.f32 %v6023_v45, %v6185_v28  ;;  %v2913_v40 = vmul.f32 %v6021_v35, %v6144_v17 }
 0x3e4   : > { %v2536_v6 = vrot.slane %v2515_v16, 7  ;;  %v2650_v46 = vadd.f32 %v2634_v61, %v2569_v21  ;;  %v2705_v42 = vrot.slane %v2666_v56, 2  ;;  %v2884_v34 = vadd.f32 %v2864_v33, %v2811_v36  ;;  %v4582_v16 = vld [vmem:[%s708_s14] sm:$0xff] }
 0x3e5   : > { %v2915_v18 = vmul.f32 %v6021_v35, %v6185_v28  ;;  %v3026_v61 = vrot.slane %v6209_v15, 2  ;;  %3155 = vmatpush.bf16.msrb.mxu0 %v4582_v16  ;;  %v2949_v44 = vrot.slane %v2913_v40, 1  ;;  %v2986_v15 = vmul.f32 %v6030_v25, %v6144_v17 }
 0x3e6   : > { %v2552_v39 = vsel %vm846_vm1, 0.0, %v2536_v6  ;;  %v2560_v49 = vsel %vm846_vm1, %v2536_v6, 0.0  ;;  %v2707_v14 = vsel %vm2079_vm15, %v2705_v42, %v2706_v51  ;;  %v2900_v42 = vadd.f32 %v2892_v3, %v2883_v48 }
 0x3e7   : > { %v2732_v9 = vmul.f32 %v5998_v11, %v2552_v39  ;;  %v2756_v12 = vmul.f32 %v5996_v50, %v2552_v39  ;;  %v2757_v19 = vmul.f32 %v5996_v50, %v2560_v49  ;;  %v2723_v47 = vadd.f32 %v2707_v14, %v2650_v46 }
 0x3e8   : > { %v2829_v60 = vmul.f32 %v6007_v7, %v2552_v39  ;;  %v2830_v24 = vmul.f32 %v6007_v7, %v2560_v49  ;;  %v2917_v37 = vmul.f32 %v6021_v35, %v2552_v39  ;;  %v2918_v51 = vmul.f32 %v6021_v35, %v2560_v49 }
 0x3e9   : > { %v2795_v57 = vrot.slane %v2756_v12, 1  ;;  %v2796_v0 = vrot.slane %v2757_v19, 1  ;;  %v2740_v21 = vadd.f32 %v2732_v9, %v2723_v47  ;;  %v2990_v46 = vmul.f32 %v6030_v25, %v2552_v39 }
 0x3ea   : > { %v2868_v56 = vrot.slane %v2829_v60, 2  ;;  %v2869_v36 = vrot.slane %v2830_v24, 2  ;;  %v2955_v33 = vrot.slane %v2917_v37, 1  ;;  %v2956_v12 = vrot.slane %v2918_v51, 1 }
 0x3eb   : > { %v2797_v6 = vsel %vm2005_vm14, %v2795_v57, %v2796_v0  ;;  %v2991_v19 = vmul.f32 %v6030_v25, %v2560_v49  ;;  %v2901_v59 = vadd.f32 %v2893_v8, %v2884_v34  ;;  %v2952_v58 = vrot.slane %v2915_v18, 1 }
 0x3ec   : > { %v2813_v14 = vadd.f32 %v2797_v6, %v2740_v21  ;;  %v2870_v30 = vsel %vm2079_vm15, %v2868_v56, %v2869_v36  ;;  %v2988_v47 = vmul.f32 %v6030_v25, %v6185_v28  ;;  %v2731_v3 = vmul.f32 %v5998_v11, %v6185_v28 }
 0x3ed   : > { %v2754_v48 = vmul.f32 %v5996_v50, %v6185_v28  ;;  %v6863_v49 = vrot.slane %v6161_v32, 1  ;;  %v2954_v34 = vsel %vm2005_vm14, %v2952_v58, %v2953_v53  ;;  %v3022_v40 = vrot.slane %v2986_v15, 2 }
 0x3ee   : > { %v2886_v9 = vadd.f32 %v2870_v30, %v2813_v14  ;;  %v2827_v17 = vmul.f32 %v6007_v7, %v6185_v28  ;;  %v2974_v60 = vadd.f32 %v2954_v34, %v2901_v59  ;;  %v3025_v24 = vrot.slane %v2988_v47, 2 }
 0x3ef   : > { %v2951_v8 = vsel %vm2005_vm14, %v2949_v44, %v6863_v49  ;;  %v2739_v18 = vadd.f32 %v2731_v3, %v6176_v55  ;;  %v6864_v11 = vrot.slane %v6164_v31, 2  ;;  %v2792_v50 = vrot.slane %v2754_v48, 1 }
 0x3f0   : > { %v2973_v30 = vadd.f32 %v2951_v8, %v2900_v42  ;;  %v2865_v0 = vrot.slane %v2827_v17, 2  ;;  %v2895_v32 = vmul.f32 %v6023_v45, %v5548_v20  ;;  %v3027_v58 = vsel %vm2079_vm15, %v3025_v24, %v3026_v61 }
 0x3f1   : > { %v3024_v57 = vsel %vm2079_vm15, %v3022_v40, %v6864_v11  ;;  %v2919_v7 = vmul.f32 %v6021_v35, %v5548_v20  ;;  %v2920_v28 = vmul.f32 %v6021_v35, %v5551_v63  ;;  %v2894_v55 = vmul.f32 %v6023_v45, %v2552_v39 }
 0x3f2   : > { %v3046_v44 = vadd.f32 %v3024_v57, %v2973_v30  ;;  %v3047_v59 = vadd.f32 %v3027_v58, %v2974_v60  ;;  %v6865_v31 = vrot.slane %v6193_v1, 1  ;;  %v2903_v37 = vadd.f32 %v2895_v32, %v2886_v9 }
 0x3f3   : > { %v6866_v61 = vrot.slane %v6196_v26, 2  ;;  %v2958_v56 = vrot.slane %v2919_v7, 1  ;;  %v2959_v6 = vrot.slane %v2920_v28, 1  ;;  %v2992_v35 = vmul.f32 %v6030_v25, %v5548_v20 }
 0x3f4   : > { %v2794_v53 = vsel %vm2005_vm14, %v2792_v50, %v6865_v31  ;;  %v3057_v51 = vadd.f32 %v6061_v5, %v3046_v44  ;;  %v3058_v36 = vadd.f32 %v6061_v5, %v3047_v59  ;;  %v2993_v45 = vmul.f32 %v6030_v25, %v5551_v63  ;;  %v6301_v31 = vld [vmem:[%s711_s18] ss:$0 sm:$0xff]  ;;  %s4767_s18 = smov 12  }
 0x3f5   : > { %v2812_v16 = vadd.f32 %v2794_v53, %v2739_v18  ;;  %v2867_v21 = vsel %vm2079_vm15, %v2865_v0, %v6866_v61  ;;  %v3028_v1 = vrot.slane %v2990_v46, 2  ;;  %v3029_v39 = vrot.slane %v2991_v19, 2 }
 0x3f6   : > { %v2957_v14 = vsel %vm2005_vm14, %v2955_v33, %v2956_v12  ;;  %v3063_v15 = vpack.c.bf16 %v3058_v36, %v3057_v51  ;;  %v2960_v26 = vsel %vm2005_vm14, %v2958_v56, %v2959_v6  ;;  %v3031_v9 = vrot.slane %v2992_v35, 2 }
 0x3f7   : > { %v2885_v42 = vadd.f32 %v2867_v21, %v2812_v16  ;;  %v3032_v47 = vrot.slane %v2993_v45, 2  ;;  %v2976_v48 = vadd.f32 %v2960_v26, %v2903_v37  ;;  %v3030_v63 = vsel %vm2079_vm15, %v3028_v1, %v3029_v39 }
 0x3f8   : > { %4502 = vmatmul.msk.bf16.gmra.mxu3 %vm1063_vm7, %v3063_v15 }
 0x3f9   : > { %v2902_v3 = vadd.f32 %v2894_v55, %v2885_v42  ;;  %v3033_v49 = vsel %vm2079_vm15, %v3031_v9, %v3032_v47 }
 0x3fa   : > { %v3049_v8 = vadd.f32 %v3033_v49, %v2976_v48 }
 0x3fb   : > { %v2975_v20 = vadd.f32 %v2957_v14, %v2902_v3 }
 0x3fc   : > { %v3060_v46 = vadd.f32 %v6061_v5, %v3049_v8 }
 0x3fd   : > { %v3048_v25 = vadd.f32 %v3030_v63, %v2975_v20 }
 0x3ff   : > { %v3059_v33 = vadd.f32 %v6061_v5, %v3048_v25 }
 0x401   : > { %v3064_v12 = vpack.c.bf16 %v3060_v46, %v3059_v33 }
 0x408   : > { %4503 = vmatmul.msk.bf16.gmra.mxu3 %vm1063_vm7, %v3064_v12 }
 0x44a   : > { %v3092_v19 = vpop.f32.mrf.mxu3 }
 0x44b   : > { %v3112_v40 = vmax.f32 %v3092_v19, 0.0 }
 0x452   : > { %v3094_v34 = vpop.f32.mrf.mxu3 }
 0x453   : > { %v3113_v17 = vmax.f32 %v3094_v34, 0.0 }
 0x455   : > { %v3122_v30 = vpack.c.bf16 %v3113_v17, %v3112_v40 }
 0x457   : > { %4508 = vmatmul.msk.bf16.vlgmr.msrb.gmra.mxu0 %vm1063_vm7, %v3122_v30 }
 0x463   : > { %v3097_v60 = vpop.f32.mrf.mxu3 }
 0x464   : > { %v3114_v18 = vmax.f32 %v3097_v60, 0.0 }
 0x46b   : > { %v3099_v24 = vpop.f32.mrf.mxu3 }
 0x46c   : > { %v3115_v11 = vmax.f32 %v3099_v24, 0.0 }
 0x46e   : > { %v3123_v57 = vpack.c.bf16 %v3115_v11, %v3114_v18 }
 0x470   : > { %4509 = vmatmul.msk.bf16.gmra.mxu0 %vm1063_vm7, %v3123_v57 }
 0x47b   : > { %v3102_v50 = vpop.f32.mrf.mxu3 }
 0x47c   : > { %v3116_v0 = vmax.f32 %v3102_v50, 0.0 }
 0x483   : > { %v3104_v5 = vpop.f32.mrf.mxu3 }
 0x484   : > { %v3117_v32 = vmax.f32 %v3104_v5, 0.0 }
 0x486   : > { %v3124_v58 = vpack.c.bf16 %v3117_v32, %v3116_v0 }
 0x488   : > { %4510 = vmatmul.msk.bf16.gmra.mxu0 %vm1063_vm7, %v3124_v58 }
 0x48b   : > { %v3107_v44 = vpop.f32.mrf.mxu3 }
 0x48c   : > { %v3118_v28 = vmax.f32 %v3107_v44, 0.0 }
 0x493   : > { %v3109_v7 = vpop.f32.mrf.mxu3 }
 0x494   : > { %v3119_v55 = vmax.f32 %v3109_v7, 0.0 }
 0x496   : > { %v3125_v59 = vpack.c.bf16 %v3119_v55, %v3118_v28 }
 0x498   : > { %4511 = vmatmul.msk.bf16.gmra.mxu0 %vm1063_vm7, %v3125_v59 }
 0x4d4   : > { %v3157_v53 = vpop.f32.mrf.mxu0 }
 0x4d5   : > { %v3158_v37 = vadd.f32 %v6301_v31, %v3157_v53 }
 0x4d7   : > { %v3177_v51 = vsub.f32 0.0, %v3158_v37 }
 0x4d9   : > { %v3185_v16 = vmul.f32 1.442695, %v3177_v51 }
 0x4db   : > { %4676 = vpow2.f32 %v3185_v16 }
 0x4dc   : > { %v3159_v61 = vpop.f32.mrf.mxu0 }
 0x4dd   : > { %v3160_v21 = vadd.f32 %v6301_v31, %v3159_v61 }
 0x4df   : > { %v3178_v56 = vsub.f32 0.0, %v3160_v21 }
 0x4e1   : > { %v4677_v36 = vpop.eup %4676  ;;  %v3187_v6 = vmul.f32 1.442695, %v3178_v56 }
 0x4e2   : > { %v3201_v35 = vadd.f32 1.0, %v4677_v36 }
 0x4e3   : > { %4678 = vpow2.f32 %v3187_v6 }
 0x4e4   : > { %4680 = vrcp.f32 %v3201_v35 }
 0x4e9   : > { %v4679_v45 = vpop.eup %4678 }
 0x4ea   : > { %v4681_v1 = vpop.eup %4680  ;;  %v3202_v39 = vadd.f32 1.0, %v4679_v45 }
 0x4eb   : > { %v3217_v42 = vmul.f32 0.25, %v4681_v1  ;;  %v3224_v14 = vmul.f32 0.75, %v4681_v1 }
 0x4ec   : > { %4682 = vrcp.f32 %v3202_v39 }
 0x4ed   : > { %v3232_v15 = vadd.f32 %v3224_v14, %v3217_v42  ;;  %v3162_v26 = vpop.f32.mrf.mxu0 }
 0x4ee   : > { %v3163_v9 = vadd.f32 %v6301_v31, %v3162_v26 }
 0x4ef   : > { %v3281_v47 = vrot.slane %v3232_v15, 1  ;;  %v3257_v3 = vrot.slane %v3232_v15, 7  ;;  %v3313_v25 = vmul.f32 0.75, %v3232_v15 }
 0x4f0   : > { %v3179_v48 = vsub.f32 0.0, %v3163_v9 }
 0x4f1   : > { %v3297_v49 = vsel %vm2005_vm14, %v3281_v47, %v3232_v15  ;;  %v3273_v20 = vsel %vm846_vm1, %v3232_v15, %v3257_v3 }
 0x4f2   : > { %v4683_v8 = vpop.eup %4682  ;;  %v3189_v63 = vmul.f32 1.442695, %v3179_v48  ;;  %v3329_v46 = vmul.f32 0.25, %v3297_v49  ;;  %v3305_v33 = vmul.f32 0.25, %v3273_v20 }
 0x4f3   : > { %v3218_v12 = vmul.f32 0.25, %v4683_v8  ;;  %v3225_v19 = vmul.f32 0.75, %v4683_v8 }
 0x4f4   : > { %4684 = vpow2.f32 %v3189_v63  ;;  %v3337_v34 = vadd.f32 %v3329_v46, %v3313_v25  ;;  %v6308_v40 = vadd.f32 %v3313_v25, %v3305_v33 }
 0x4f5   : > { %v3233_v17 = vadd.f32 %v3225_v19, %v3217_v42  ;;  %v3241_v30 = vadd.f32 %v3224_v14, %v3218_v12  ;;  %v3164_v60 = vpop.f32.mrf.mxu0 }
 0x4f6   : > { %v3165_v24 = vadd.f32 %v6301_v31, %v3164_v60  ;;  %3497 = vrot.lane.b32.xlu2 %v3337_v34, %s4766_s25 }
 0x4f7   : > { %v3377_v18 = vrot.slane %v3241_v30, 1  ;;  %v3353_v11 = vrot.slane %v3241_v30, 7  ;;  %v3258_v50 = vrot.slane %v3233_v17, 7  ;;  %v3282_v32 = vrot.slane %v3233_v17, 1 }
 0x4f8   : > { %v3180_v57 = vsub.f32 0.0, %v3165_v24  ;;  %v3409_v7 = vmul.f32 0.75, %v3241_v30  ;;  %v3314_v61 = vmul.f32 0.75, %v3233_v17 }
 0x4f9   : > { %v3393_v5 = vsel %vm2005_vm14, %v3377_v18, %v3241_v30  ;;  %v3369_v0 = vsel %vm846_vm1, %v3241_v30, %v3353_v11  ;;  %v3274_v53 = vsel %vm846_vm1, %v3233_v17, %v3258_v50  ;;  %v3298_v16 = vsel %vm2005_vm14, %v3282_v32, %v3233_v17 }
 0x4fa   : > { %v4685_v58 = vpop.eup %4684  ;;  %v3191_v44 = vmul.f32 1.442695, %v3180_v57  ;;  %v3425_v28 = vmul.f32 0.25, %v3393_v5  ;;  %v3401_v55 = vmul.f32 0.25, %v3369_v0  ;;  %v3306_v21 = vmul.f32 0.25, %v3274_v53 }
 0x4fb   : > { %v3203_v59 = vadd.f32 1.0, %v4685_v58  ;;  %v3330_v36 = vmul.f32 0.25, %v3298_v16 }
 0x4fc   : > { %4686 = vpow2.f32 %v3191_v44  ;;  %v3433_v37 = vadd.f32 %v3425_v28, %v3409_v7  ;;  %v3417_v51 = vadd.f32 %v3409_v7, %v3401_v55  ;;  %v6318_v56 = vadd.f32 %v3314_v61, %v3306_v21 }
 0x4fd   : > { %4688 = vrcp.f32 %v3203_v59  ;;  %v3338_v14 = vadd.f32 %v3330_v36, %v3314_v61 }
 0x4fe   : > { %3537 = vrot.lane.b32.xlu1 %v3433_v37, %s4767_s18  ;;  %3457 = vrot.lane.b32.xlu0 %v3417_v51, %s4768_s22 }
 0x502   : > { %v4687_v6 = vpop.eup %4686 }
 0x503   : > { %v4689_v35 = vpop.eup %4688  ;;  %v3204_v45 = vadd.f32 1.0, %v4687_v6 }
 0x504   : > { %v3219_v1 = vmul.f32 0.25, %v4689_v35  ;;  %v3226_v39 = vmul.f32 0.75, %v4689_v35 }
 0x505   : > { %v3167_v42 = vpop.f32.mrf.mxu0  ;;  %4690 = vrcp.f32 %v3204_v45 }
 0x506   : > { %v3168_v15 = vadd.f32 %v6301_v31, %v3167_v42  ;;  %v3234_v26 = vadd.f32 %v3226_v39, %v3218_v12  ;;  %v3242_v9 = vadd.f32 %v3225_v19, %v3219_v1  ;;  %3499 = vrot.lane.b32.xlu0 %v3338_v14, %s4766_s25 }
 0x508   : > { %v3181_v47 = vsub.f32 0.0, %v3168_v15  ;;  %v3378_v3 = vrot.slane %v3242_v9, 1  ;;  %v3354_v48 = vrot.slane %v3242_v9, 7  ;;  %v3259_v49 = vrot.slane %v3234_v26, 7 }
 0x509   : > { %v3283_v46 = vrot.slane %v3234_v26, 1  ;;  %v3410_v34 = vmul.f32 0.75, %v3242_v9  ;;  %v3315_v18 = vmul.f32 0.75, %v3234_v26 }
 0x50a   : > { %v3193_v20 = vmul.f32 1.442695, %v3181_v47  ;;  %v3394_v8 = vsel %vm2005_vm14, %v3378_v3, %v3242_v9  ;;  %v3370_v63 = vsel %vm846_vm1, %v3242_v9, %v3354_v48  ;;  %v3275_v25 = vsel %vm846_vm1, %v3234_v26, %v3259_v49 }
 0x50b   : > { %v4691_v33 = vpop.eup %4690  ;;  %v3426_v17 = vmul.f32 0.25, %v3394_v8  ;;  %v3402_v12 = vmul.f32 0.25, %v3370_v63  ;;  %v3307_v24 = vmul.f32 0.25, %v3275_v25  ;;  %v3299_v32 = vsel %vm2005_vm14, %v3283_v46, %v3234_v26 }
 0x50c   : > { %4692 = vpow2.f32 %v3193_v20  ;;  %v3220_v19 = vmul.f32 0.25, %v4691_v33  ;;  %v3227_v30 = vmul.f32 0.75, %v4691_v33  ;;  %v3331_v53 = vmul.f32 0.25, %v3299_v32 }
 0x50d   : > { %v3169_v60 = vpop.f32.mrf.mxu0  ;;  %v3434_v57 = vadd.f32 %v3426_v17, %v3410_v34  ;;  %v3418_v50 = vadd.f32 %v3410_v34, %v3402_v12  ;;  %v6327_v58 = vadd.f32 %v3315_v18, %v3307_v24 }
 0x50e   : > { %v3170_v11 = vadd.f32 %v6301_v31, %v3169_v60  ;;  %v3235_v5 = vadd.f32 %v3227_v30, %v3219_v1  ;;  %v3243_v0 = vadd.f32 %v3226_v39, %v3220_v19  ;;  %v3339_v15 = vadd.f32 %v3331_v53, %v3315_v18 }
 0x50f   : > { %3539 = vrot.lane.b32.xlu2 %v3434_v57, %s4767_s18  ;;  %3459 = vrot.lane.b32.xlu1 %v3418_v50, %s4768_s22 }
 0x510   : > { %v3182_v44 = vsub.f32 0.0, %v3170_v11  ;;  %v3379_v7 = vrot.slane %v3243_v0, 1  ;;  %v3355_v28 = vrot.slane %v3243_v0, 7  ;;  %v3260_v37 = vrot.slane %v3235_v5, 7 }
 0x511   : > { %v3284_v21 = vrot.slane %v3235_v5, 1  ;;  %v3411_v36 = vmul.f32 0.75, %v3243_v0  ;;  %v3316_v9 = vmul.f32 0.75, %v3235_v5 }
 0x512   : > { %v4693_v55 = vpop.eup %4692  ;;  %v3195_v59 = vmul.f32 1.442695, %v3182_v44  ;;  %v3395_v16 = vsel %vm2005_vm14, %v3379_v7, %v3243_v0  ;;  %v3371_v61 = vsel %vm846_vm1, %v3243_v0, %v3355_v28  ;;  %v3276_v1 = vsel %vm846_vm1, %v3235_v5, %v3260_v37 }
 0x513   : > { %v3205_v51 = vadd.f32 1.0, %v4693_v55  ;;  %v3427_v6 = vmul.f32 0.25, %v3395_v16  ;;  %v3403_v35 = vmul.f32 0.25, %v3371_v61  ;;  %v3300_v26 = vsel %vm2005_vm14, %v3284_v21, %v3235_v5 }
 0x514   : > { %4694 = vpow2.f32 %v3195_v59  ;;  %v3308_v47 = vmul.f32 0.25, %v3276_v1  ;;  %v3332_v8 = vmul.f32 0.25, %v3300_v26 }
 0x515   : > { %4696 = vrcp.f32 %v3205_v51  ;;  %v3172_v45 = vpop.f32.mrf.mxu0  ;;  %v3435_v42 = vadd.f32 %v3427_v6, %v3411_v36  ;;  %v3419_v14 = vadd.f32 %v3411_v36, %v3403_v35 }
 0x516   : > { %v3173_v39 = vadd.f32 %v6301_v31, %v3172_v45  ;;  %v6339_v48 = vadd.f32 %v3316_v9, %v3308_v47  ;;  %v3340_v24 = vadd.f32 %v3332_v8, %v3316_v9 }
 0x517   : > { %3541 = vrot.lane.b32.xlu0 %v3435_v42, %s4767_s18  ;;  %3461 = vrot.lane.b32.xlu2 %v3419_v14, %s4768_s22 }
 0x518   : > { %v3183_v3 = vsub.f32 0.0, %v3173_v39  ;;  %3501 = vrot.lane.b32.xlu1 %v3339_v15, %s4766_s25 }
 0x51a   : > { %v4695_v49 = vpop.eup %4694  ;;  %v3197_v20 = vmul.f32 1.442695, %v3183_v3 }
 0x51b   : > { %v4697_v63 = vpop.eup %4696  ;;  %v3206_v25 = vadd.f32 1.0, %v4695_v49 }
 0x51c   : > { %v3221_v46 = vmul.f32 0.25, %v4697_v63  ;;  %v3228_v33 = vmul.f32 0.75, %v4697_v63  ;;  %4698 = vpow2.f32 %v3197_v20 }
 0x51d   : > { %4700 = vrcp.f32 %v3206_v25  ;;  %v3174_v34 = vpop.f32.mrf.mxu0 }
 0x51e   : > { %v3236_v17 = vadd.f32 %v3228_v33, %v3220_v19  ;;  %v3244_v12 = vadd.f32 %v3227_v30, %v3221_v46  ;;  %v3175_v60 = vadd.f32 %v6301_v31, %v3174_v34 }
 0x51f   : > { %3503 = vrot.lane.b32.xlu2 %v3340_v24, %s4766_s25 }
 0x520   : > { %v3184_v18 = vsub.f32 0.0, %v3175_v60  ;;  %v3380_v11 = vrot.slane %v3244_v12, 1  ;;  %v3356_v57 = vrot.slane %v3244_v12, 7  ;;  %v3412_v50 = vmul.f32 0.75, %v3244_v12 }
 0x521   : > { %v3261_v5 = vrot.slane %v3236_v17, 7  ;;  %v3285_v28 = vrot.slane %v3236_v17, 1  ;;  %v3317_v51 = vmul.f32 0.75, %v3236_v17 }
 0x522   : > { %v4699_v0 = vpop.eup %4698  ;;  %v3199_v32 = vmul.f32 1.442695, %v3184_v18  ;;  %v3396_v44 = vsel %vm2005_vm14, %v3380_v11, %v3244_v12  ;;  %v3372_v7 = vsel %vm846_vm1, %v3244_v12, %v3356_v57 }
 0x523   : > { %v4701_v55 = vpop.eup %4700  ;;  %v3207_v19 = vadd.f32 1.0, %v4699_v0  ;;  %v3428_v30 = vmul.f32 0.25, %v3396_v44  ;;  %v3404_v59 = vmul.f32 0.25, %v3372_v7  ;;  %v3277_v31 = vsel %vm846_vm1, %v3236_v17, %v3261_v5 }
 0x524   : > { %v3222_v53 = vmul.f32 0.25, %v4701_v55  ;;  %v3229_v37 = vmul.f32 0.75, %v4701_v55  ;;  %4702 = vpow2.f32 %v3199_v32  ;;  %v3309_v21 = vmul.f32 0.25, %v3277_v31 }
 0x525   : > { %4704 = vrcp.f32 %v3207_v19  ;;  %v3436_v16 = vadd.f32 %v3428_v30, %v3412_v50  ;;  %v3420_v61 = vadd.f32 %v3412_v50, %v3404_v59  ;;  %v3301_v35 = vsel %vm2005_vm14, %v3285_v28, %v3236_v17 }
 0x526   : > { %v3237_v36 = vadd.f32 %v3229_v37, %v3221_v46  ;;  %v3245_v6 = vadd.f32 %v3228_v33, %v3222_v53  ;;  %v6349_v45 = vadd.f32 %v3317_v51, %v3309_v21  ;;  %v3333_v9 = vmul.f32 0.25, %v3301_v35 }
 0x527   : > { %3543 = vrot.lane.b32.xlu1 %v3436_v16, %s4767_s18  ;;  %3463 = vrot.lane.b32.xlu0 %v3420_v61, %s4768_s22 }
 0x528   : > { %v3381_v1 = vrot.slane %v3245_v6, 1  ;;  %v3357_v39 = vrot.slane %v3245_v6, 7  ;;  %v3262_v42 = vrot.slane %v3237_v36, 7  ;;  %v3286_v47 = vrot.slane %v3237_v36, 1 }
 0x529   : > { %v3413_v20 = vmul.f32 0.75, %v3245_v6  ;;  %v3318_v33 = vmul.f32 0.75, %v3237_v36  ;;  %v3341_v11 = vadd.f32 %v3333_v9, %v3317_v51 }
 0x52a   : > { %v4703_v14 = vpop.eup %4702  ;;  %v3397_v15 = vsel %vm2005_vm14, %v3381_v1, %v3245_v6  ;;  %v3373_v26 = vsel %vm846_vm1, %v3245_v6, %v3357_v39  ;;  %v3278_v34 = vsel %vm846_vm1, %v3237_v36, %v3262_v42  ;;  %v3302_v57 = vsel %vm2005_vm14, %v3286_v47, %v3237_v36 }
 0x52b   : > { %v4705_v3 = vpop.eup %4704  ;;  %v3208_v49 = vadd.f32 1.0, %v4703_v14  ;;  %v3429_v8 = vmul.f32 0.25, %v3397_v15  ;;  %v3405_v63 = vmul.f32 0.25, %v3373_v26  ;;  %v3310_v60 = vmul.f32 0.25, %v3278_v34 }
 0x52c   : > { %v3223_v25 = vmul.f32 0.25, %v4705_v3  ;;  %v3230_v46 = vmul.f32 0.75, %v4705_v3  ;;  %v3334_v32 = vmul.f32 0.25, %v3302_v57 }
 0x52d   : > { %4706 = vrcp.f32 %v3208_v49  ;;  %v3437_v17 = vadd.f32 %v3429_v8, %v3413_v20  ;;  %v3421_v12 = vadd.f32 %v3413_v20, %v3405_v63  ;;  %v6359_v50 = vadd.f32 %v3318_v33, %v3310_v60 }
 0x52e   : > { %v3238_v24 = vadd.f32 %v3230_v46, %v3222_v53  ;;  %v6354_v18 = vadd.f32 %v3229_v37, %v3223_v25  ;;  %v3342_v51 = vadd.f32 %v3334_v32, %v3318_v33 }
 0x52f   : > { %3545 = vrot.lane.b32.xlu2 %v3437_v17, %s4767_s18  ;;  %3465 = vrot.lane.b32.xlu1 %v3421_v12, %s4768_s22 }
 0x530   : > { %3505 = vrot.lane.b32.xlu0 %v3341_v11, %s4766_s25  ;;  %v3358_v5 = vrot.slane %v6354_v18, 7  ;;  %v3263_v0 = vrot.slane %v3238_v24, 7  ;;  %v3287_v28 = vrot.slane %v3238_v24, 1  ;;  %v3414_v30 = vmul.f32 0.75, %v6354_v18 }
 0x531   : > { %v3319_v31 = vmul.f32 0.75, %v3238_v24 }
 0x532   : > { %v3374_v44 = vsel %vm846_vm1, %v6354_v18, %v3358_v5  ;;  %v3279_v7 = vsel %vm846_vm1, %v3238_v24, %v3263_v0  ;;  %v3303_v35 = vsel %vm2005_vm14, %v3287_v28, %v3238_v24 }
 0x533   : > { %v4707_v55 = vpop.eup %4706  ;;  %v3406_v19 = vmul.f32 0.25, %v3374_v44  ;;  %v3311_v59 = vmul.f32 0.25, %v3279_v7  ;;  %v3335_v14 = vmul.f32 0.25, %v3303_v35  ;;  %v3382_v44 = vrot.slane %v6354_v18, 1 }
 0x534   : > { %v3231_v53 = vmul.f32 0.75, %v4707_v55  ;;  %v3240_v37 = vmul.f32 0.25, %v4707_v55 }
 0x535   : > { %v3422_v16 = vadd.f32 %v3414_v30, %v3406_v19  ;;  %v6367_v61 = vadd.f32 %v3319_v31, %v3311_v59  ;;  %v3343_v12 = vadd.f32 %v3335_v14, %v3319_v31  ;;  %v3398_v19 = vsel %vm2005_vm14, %v3382_v44, %v6354_v18 }
 0x536   : > { %v3239_v21 = vadd.f32 %v3231_v53, %v3223_v25  ;;  %v3247_v36 = vadd.f32 %v3240_v37, %v3230_v46  ;;  %v3248_v6 = vadd.f32 %v3240_v37, %v3231_v53  ;;  %v3430_v59 = vmul.f32 0.25, %v3398_v19 }
 0x537   : > { %3507 = vrot.lane.b32.xlu1 %v3342_v51, %s4766_s25  ;;  %3467 = vrot.lane.b32.xlu2 %v3422_v16, %s4768_s22  ;;  %v3446_v44 = vmul.f32 %v6359_v50, %v5768_v2 }
 0x538   : > { %v3360_v1 = vrot.slane %v3248_v6, 7  ;;  %v3359_v39 = vrot.slane %v3247_v36, 7  ;;  %v3416_v42 = vmul.f32 0.75, %v3248_v6  ;;  %v3383_v15 = vrot.slane %v3247_v36, 1 }
 0x539   : > { %v3288_v47 = vrot.slane %v3239_v21, 1  ;;  %v3264_v3 = vrot.slane %v3239_v21, 7  ;;  %v3415_v8 = vmul.f32 0.75, %v3247_v36  ;;  %v3384_v63 = vrot.slane %v3248_v6, 1 }
 0x53a   : > { %v3376_v26 = vsel %vm846_vm1, %v3248_v6, %v3360_v1  ;;  %v3375_v9 = vsel %vm846_vm1, %v3247_v36, %v3359_v39  ;;  %v3320_v34 = vmul.f32 0.75, %v3239_v21  ;;  %v3399_v60 = vsel %vm2005_vm14, %v3383_v15, %v3247_v36 }
 0x53b   : > { %v3408_v49 = vmul.f32 0.25, %v3376_v26  ;;  %v3407_v20 = vmul.f32 0.25, %v3375_v9  ;;  %v3280_v25 = vsel %vm846_vm1, %v3239_v21, %v3264_v3  ;;  %v3304_v24 = vsel %vm2005_vm14, %v3288_v47, %v3239_v21 }
 0x53c   : > { %v3312_v17 = vmul.f32 0.25, %v3280_v25  ;;  %v3400_v11 = vsel %vm2005_vm14, %v3384_v63, %v3248_v6  ;;  %v3431_v5 = vmul.f32 0.25, %v3399_v60  ;;  %v3336_v0 = vmul.f32 0.25, %v3304_v24  ;;  %v4709_v63 = vld [vmem:[#allocation2 + $0x8] sm:$0xff] }
 0x53d   : > { %v3424_v46 = vadd.f32 %v3416_v42, %v3408_v49  ;;  %v3423_v33 = vadd.f32 %v3415_v8, %v3407_v20  ;;  %v3432_v32 = vmul.f32 0.25, %v3400_v11  ;;  %v3438_v31 = vadd.f32 %v3430_v59, %v3414_v30 }
 0x53e   : > { %v6380_v57 = vadd.f32 %v3320_v34, %v3312_v17  ;;  %v3439_v7 = vadd.f32 %v3431_v5, %v3415_v8  ;;  %v3344_v28 = vadd.f32 %v3336_v0, %v3320_v34  ;;  %v3441_v21 = vmul.f32 %v6308_v40, %v5576_v27  ;;  %v4710_v5 = vld [vmem:[#allocation2 + $0x10] sm:$0xff] }
 0x53f   : > { %3471 = vrot.lane.b32.xlu1 %v3424_v46, %s4768_s22  ;;  %3469 = vrot.lane.b32.xlu0 %v3423_v33, %s4768_s22  ;;  %v3440_v55 = vadd.f32 %v3432_v32, %v3416_v42  ;;  %vm3569_vm1 = vcmask 31744   ;;  %v4708_v42 = vld [vmem:[#allocation2] sm:$0xff]  ;;  %v3442_v9 = vmul.f32 %v6318_v56, %v5597_v41  ;;  %v3443_v34 = vmul.f32 %v6327_v58, %v5634_v23 }
 0x540   : > { %3509 = vrot.lane.b32.xlu2 %v3343_v12, %s4766_s25 }
 0x547   : > { %3549 = vrot.lane.b32.xlu1 %v3439_v7, %s4767_s18  ;;  %3511 = vrot.lane.b32.xlu0 %v3344_v28, %s4766_s25 }
 0x548   : > { %3551 = vrot.lane.b32.xlu2 %v3440_v55, %s4767_s18  ;;  %v3444_v55 = vmul.f32 %v6339_v48, %v5669_v29  ;;  %v3445_v48 = vmul.f32 %v6349_v45, %v5734_v52 }
 0x54f   : > { %3547 = vrot.lane.b32.xlu0 %v3438_v31, %s4767_s18 }
 0x550   : > { %v3498_v53 = vpop.permute.xlu2 %3497 }
 0x551   : > { %v3521_v36 = vmul.f32 %v3498_v53, %v5576_v27 }
 0x569   : > { %v3540_v37 = vpop.permute.xlu2 %3539 }
 0x56a   : > { %v3562_v3 = vmul.f32 %v3540_v37, %v5597_v41 }
 0x570   : > { %v3538_v51 = vpop.permute.xlu1 %3537  ;;  %v3458_v16 = vpop.permute.xlu0 %3457 }
 0x571   : > { %v3481_v18 = vmul.f32 %v3458_v16, %v5576_v27  ;;  %v3561_v6 = vmul.f32 %v3538_v51, %v5576_v27  ;;  %v3462_v35 = vpop.permute.xlu2 %3461  ;;  %v4711_v51 = vld [vmem:[#allocation2 + $0x18] sm:$0xff] }
 0x572   : > { %v3483_v46 = vmul.f32 %v3462_v35, %v5634_v23 }
 0x573   : > { %v3570_v30 = vsel %vm3569_vm1, %v3441_v21, %v3481_v18 }
 0x574   : > { %v3579_v1 = vsel %vm3578_vm0, %v3570_v30, %v3521_v36  ;;  %v3572_v60 = vsel %vm3569_vm1, %v3443_v34, %v3483_v46 }
 0x575   : > { %v3588_v39 = vsel %vm3587_vm2, %v3579_v1, %v3561_v6 }
 0x576   : > { %v6398_v14 = vadd.f32 %v4708_v42, %v3588_v39  ;;  %v4712_v39 = vld [vmem:[#allocation2 + $0x20] sm:$0xff] }
 0x578   : > { %3604 = vst.msk [vmem:[#allocation2] sm:$0xff] %vm1063_vm7, %v6398_v14  ;;  %v3500_v15 = vpop.permute.xlu0 %3499 }
 0x579   : > { %v3504_v40 = vpop.permute.xlu2 %3503  ;;  %v3522_v47 = vmul.f32 %v3500_v15, %v5597_v41 }
 0x57a   : > { %v3524_v59 = vmul.f32 %v3504_v40, %v5669_v29 }
 0x581   : > { %v3460_v26 = vpop.permute.xlu1 %3459 }
 0x582   : > { %v3482_v27 = vmul.f32 %v3460_v26, %v5597_v41 }
 0x584   : > { %v3571_v49 = vsel %vm3569_vm1, %v3442_v9, %v3482_v27  ;;  %v3448_v9 = vmul.f32 %v6380_v57, %v5855_v62 }
 0x585   : > { %v3580_v20 = vsel %vm3578_vm0, %v3571_v49, %v3522_v47 }
 0x586   : > { %v3589_v8 = vsel %vm3587_vm2, %v3580_v20, %v3562_v3 }
 0x587   : > { %v6410_v25 = vadd.f32 %v4709_v63, %v3589_v8 }
 0x589   : > { %v3546_v33 = vpop.permute.xlu2 %3545  ;;  %3605 = vst.msk [vmem:[#allocation2 + $0x8] sm:$0xff] %vm1063_vm7, %v6410_v25  ;;  %v3542_v56 = vpop.permute.xlu0 %3541 }
 0x58a   : > { %v3502_v41 = vpop.permute.xlu1 %3501  ;;  %v3563_v17 = vmul.f32 %v3542_v56, %v5634_v23 }
 0x58b   : > { %v3523_v12 = vmul.f32 %v3502_v41, %v5634_v23 }
 0x58d   : > { %v3581_v24 = vsel %vm3578_vm0, %v3572_v60, %v3523_v12 }
 0x58e   : > { %v3590_v11 = vsel %vm3587_vm2, %v3581_v24, %v3563_v17  ;;  %v4713_v17 = vld [vmem:[#allocation2 + $0x30] sm:$0xff]  ;;  %v4714_v24 = vld [vmem:[#allocation2 + $0x38] sm:$0xff] }
 0x58f   : > { %v6422_v0 = vadd.f32 %v4710_v5, %v3590_v11 }
 0x591   : > { %v3468_v32 = vpop.permute.xlu2 %3467  ;;  %3606 = vst.msk [vmem:[#allocation2 + $0x10] sm:$0xff] %vm1063_vm7, %v6422_v0 }
 0x592   : > { %v3486_v58 = vmul.f32 %v3468_v32, %v5768_v2 }
 0x594   : > { %v3575_v23 = vsel %vm3569_vm1, %v3446_v44, %v3486_v58  ;;  %v4715_v58 = vld [vmem:[#allocation2 + $0x28] sm:$0xff] }
 0x599   : > { %v3544_v7 = vpop.permute.xlu1 %3543  ;;  %v3464_v28 = vpop.permute.xlu0 %3463 }
 0x59a   : > { %v3484_v19 = vmul.f32 %v3464_v28, %v5669_v29  ;;  %v3564_v31 = vmul.f32 %v3544_v7, %v5669_v29  ;;  %v3565_v29 = vmul.f32 %v3546_v33, %v5734_v52  ;;  %v3510_v15 = vpop.permute.xlu2 %3509 }
 0x59b   : > { %v3527_v8 = vmul.f32 %v3510_v15, %v5817_v4 }
 0x59c   : > { %v3573_v50 = vsel %vm3569_vm1, %v3444_v55, %v3484_v19 }
 0x59d   : > { %v3582_v53 = vsel %vm3578_vm0, %v3573_v50, %v3524_v59 }
 0x59e   : > { %v3591_v37 = vsel %vm3587_vm2, %v3582_v53, %v3564_v31 }
 0x59f   : > { %v3599_v16 = vadd.f32 %v4711_v51, %v3591_v37 }
 0x5a1   : > { %3607 = vst.msk [vmem:[#allocation2 + $0x18] sm:$0xff] %vm1063_vm7, %v3599_v16  ;;  %v3466_v21 = vpop.permute.xlu1 %3465 }
 0x5a2   : > { %v3485_v18 = vmul.f32 %v3466_v21, %v5734_v52  ;;  %v3506_v36 = vpop.permute.xlu0 %3505  ;;  %v3552_v20 = vpop.permute.xlu2 %3551 }
 0x5a3   : > { %v3525_v6 = vmul.f32 %v3506_v36, %v5734_v52  ;;  %v3447_v52 = vmul.f32 %v6367_v61, %v5817_v4  ;;  %v3568_v56 = vmul.f32 %v3552_v20, %v5855_v62 }
 0x5a4   : > { %v3574_v30 = vsel %vm3569_vm1, %v3445_v48, %v3485_v18 }
 0x5a5   : > { %v3583_v35 = vsel %vm3578_vm0, %v3574_v30, %v3525_v6 }
 0x5a6   : > { %v3592_v1 = vsel %vm3587_vm2, %v3583_v35, %v3565_v29 }
 0x5a7   : > { %v3600_v42 = vadd.f32 %v4712_v39, %v3592_v1 }
 0x5a9   : > { %3608 = vst.msk [vmem:[#allocation2 + $0x20] sm:$0xff] %vm1063_vm7, %v3600_v42  ;;  %v3508_v40 = vpop.permute.xlu1 %3507 }
 0x5aa   : > { %v3526_v5 = vmul.f32 %v3508_v40, %v5768_v2 }
 0x5ac   : > { %v3584_v32 = vsel %vm3578_vm0, %v3575_v23, %v3526_v5 }
 0x5b1   : > { %v3472_v45 = vpop.permute.xlu1 %3471  ;;  %v3470_v26 = vpop.permute.xlu0 %3469 }
 0x5b2   : > { %v3488_v27 = vmul.f32 %v3472_v45, %v5855_v62  ;;  %v3487_v47 = vmul.f32 %v3470_v26, %v5817_v4 }
 0x5b4   : > { %v3577_v3 = vsel %vm3569_vm1, %v3448_v9, %v3488_v27  ;;  %v3576_v49 = vsel %vm3569_vm1, %v3447_v52, %v3487_v47 }
 0x5b5   : > { %v3585_v34 = vsel %vm3578_vm0, %v3576_v49, %v3527_v8 }
 0x5b9   : > { %v3550_v63 = vpop.permute.xlu1 %3549  ;;  %v3512_v46 = vpop.permute.xlu0 %3511 }
 0x5ba   : > { %v3567_v33 = vmul.f32 %v3550_v63, %v5817_v4  ;;  %v3528_v57 = vmul.f32 %v3512_v46, %v5855_v62 }
 0x5bc   : > { %v3594_v61 = vsel %vm3587_vm2, %v3585_v34, %v3567_v33  ;;  %v3586_v41 = vsel %vm3578_vm0, %v3577_v3, %v3528_v57 }
 0x5bd   : > { %v3602_v12 = vadd.f32 %v4713_v17, %v3594_v61  ;;  %v3595_v60 = vsel %vm3587_vm2, %v3586_v41, %v3568_v56 }
 0x5be   : > { %v6464_v11 = vadd.f32 %v4714_v24, %v3595_v60 }
 0x5bf   : > { %3610 = vst.msk [vmem:[#allocation2 + $0x30] sm:$0xff] %vm1063_vm7, %v3602_v12 }
 0x5c0   : > { %3611 = vst.msk [vmem:[#allocation2 + $0x38] sm:$0xff] %vm1063_vm7, %v6464_v11 }
 0x5c1   : > { %v3548_v4 = vpop.permute.xlu0 %3547 }
 0x5c2   : > { %v3566_v62 = vmul.f32 %v3548_v4, %v5768_v2 }
 0x5c3   : > { %3615 = sbr.rel (%p4512_p8) target bundleno = 1893 (0x765), region = 88 }
 0x5c4   : > { %v3593_v44 = vsel %vm3587_vm2, %v3584_v32, %v3566_v62 }
 0x5c5   : > { %v3601_v7 = vadd.f32 %v4715_v58, %v3593_v44 }
 0x5c7   : > { %3609 = vst.msk [vmem:[#allocation2 + $0x28] sm:$0xff] %vm1063_vm7, %v3601_v7 }
 0x5c8   : > { %v3638_v28 = vpack.c.bf16 %v3599_v16, %v3599_v16  ;;  %v3639_v55 = vpack.c.bf16 %v3600_v42, %v3600_v42  ;;  %v3640_v19 = vpack.c.bf16 %v3601_v7, %v3601_v7  ;;  %v3635_v9 = vpack.c.bf16 %v6398_v14, %v6398_v14  ;;  %v4590_v13 = vld [vmem:[%s6868_s16 + $0x38] sm:$0xff] }
 0x5c9   : > { %v3641_v49 = vpack.c.bf16 %v3602_v12, %v3602_v12  ;;  %v3636_v60 = vpack.c.bf16 %v6410_v25, %v6410_v25  ;;  %4600 = vmatpush.bf16.msra.mxu2 %v4590_v13  ;;  %4109 = vmatpush.bf16.msra.mxu0 %v4590_v13 }
 0x5ca   : > { %v3665_v59 = vshrl.u32 %v3638_v28, 16  ;;  %v3668_v31 = vshll.u32 %v3638_v28, 16  ;;  %v3672_v50 = vshrl.u32 %v3639_v55, 16  ;;  %v3675_v53 = vshll.u32 %v3639_v55, 16 }
 0x5cb   : > { %v3679_v37 = vshrl.u32 %v3640_v19, 16  ;;  %v3682_v2 = vshll.u32 %v3640_v19, 16  ;;  %v3644_v20 = vshrl.u32 %v3635_v9, 16  ;;  %v3686_v8 = vshrl.u32 %v3641_v49, 16 }
 0x5cc   : > { %v3667_v51 = vrot.slane %v3665_v59, 7  ;;  %v3674_v23 = vrot.slane %v3672_v50, 7  ;;  %v3689_v57 = vshll.u32 %v3641_v49, 16  ;;  %v3647_v34 = vshll.u32 %v3635_v9, 16 }
 0x5cd   : > { %v3681_v21 = vrot.slane %v3679_v37, 7  ;;  %v3688_v33 = vrot.slane %v3686_v8, 7  ;;  %v3646_v56 = vrot.slane %v3644_v20, 7  ;;  %v3651_v4 = vshrl.u32 %v3636_v60, 16 }
 0x5ce   : > { %v3670_v48 = vor.u32 %v3668_v31, %v3667_v51  ;;  %v3677_v18 = vor.u32 %v3675_v53, %v3674_v23  ;;  %v3654_v44 = vshll.u32 %v3636_v60, 16  ;;  %v3637_v37 = vpack.c.bf16 %v6422_v0, %v6422_v0  ;;  %v4587_v60 = vld [vmem:[%s6868_s16 + $0x20] sm:$0xff] }
 0x5cf   : > { %v3684_v36 = vor.u32 %v3682_v2, %v3681_v21  ;;  %v3691_v61 = vor.u32 %v3689_v57, %v3688_v33  ;;  %v3649_v17 = vor.u32 %v3647_v34, %v3646_v56  ;;  %v3653_v25 = vrot.slane %v3651_v4, 7  ;;  %v4591_v4 = vld [vmem:[%s6868_s16 + $0x40] sm:$0xff] }
 0x5d0   : > { %v3710_v6 = vsel %vm4969_vm4, 0, %v3670_v48  ;;  %v3711_v16 = vsel %vm4969_vm4, 0, %v3677_v18  ;;  %v3658_v23 = vshrl.u32 %v3637_v37, 16  ;;  %v3661_v18 = vshll.u32 %v3637_v37, 16  ;;  %4608 = vmatpush.bf16.msra.mxu3 %v4591_v4  ;;  %4145 = vmatpush.bf16.msra.mxu1 %v4591_v4 }
 0x5d1   : > { %v6481_v29 = vsel %vm4973_vm6, %v3710_v6, 0  ;;  %v6485_v30 = vsel %vm4973_vm6, %v3711_v16, 0  ;;  %v3712_v42 = vsel %vm4969_vm4, 0, %v3684_v36  ;;  %v3713_v12 = vsel %vm4969_vm4, 0, %v3691_v61 }
 0x5d2   : > { %v6488_v35 = vrot.slane %v6481_v29, 1  ;;  %v3745_v1 = vshrl.u32 %v6481_v29, 16  ;;  %v3747_v39 = vshll.u32 %v6481_v29, 16  ;;  %3823 = vrot.lane.b32.xlu2 %v6485_v30, %s4769_s30  ;;  %v3754_v15 = vshll.u32 %v6485_v30, 16 }
 0x5d3   : > { %v6501_v45 = vsel %vm4973_vm6, %v3712_v42, 0  ;;  %v6508_v27 = vrot.slane %v6485_v30, 1  ;;  %v3752_v52 = vshrl.u32 %v6485_v30, 16  ;;  %v6532_v24 = vsel %vm4973_vm6, %v3713_v12, 0  ;;  %v4588_v12 = vld [vmem:[%s6868_s16 + $0x28] sm:$0xff] }
 0x5d4   : > { %3806 = vrot.lane.b32.xlu1 %v6488_v35, %s4770_s19  ;;  %v3749_v40 = vrot.slane %v3747_v39, 1  ;;  %v3756_v47 = vrot.slane %v3754_v15, 1  ;;  %v3761_v3 = vshll.u32 %v6501_v45, 16  ;;  %v3759_v14 = vshrl.u32 %v6501_v45, 16 }
 0x5d5   : > { %v3707_v5 = vsel %vm4969_vm4, 0, %v3649_v17  ;;  %v3768_v62 = vshll.u32 %v6532_v24, 16  ;;  %v3766_v58 = vshrl.u32 %v6532_v24, 16  ;;  %v6549_v28 = vrot.slane %v6501_v45, 1 }
 0x5d6   : > { %v6503_v26 = vor.u32 %v3749_v40, %v3745_v1  ;;  %v6519_v63 = vor.u32 %v3756_v47, %v3752_v52  ;;  %v3763_v46 = vrot.slane %v3761_v3, 1  ;;  %v6541_v32 = vsel %vm4973_vm6, %v3707_v5, 0 }
 0x5d7   : > { %v3770_v7 = vrot.slane %v3768_v62, 1  ;;  %v3726_v55 = vshll.u32 %v6541_v32, 16  ;;  %v3656_v19 = vor.u32 %v3654_v44, %v3653_v25  ;;  %v3724_v31 = vshrl.u32 %v6541_v32, 16 }
 0x5d8   : > { %3778 = vrot.lane.b32.xlu0 %v6503_v26, %s4771_s0  ;;  %v3764_v41 = vor.u32 %v3763_v46, %v3759_v14  ;;  %v3660_v48 = vrot.slane %v3658_v23, 7  ;;  %v3793_v0 = vrot.slane %v6541_v32, 1  ;;  %v3642_v47 = vpack.c.bf16 %v6464_v11, %v6464_v11 }
 0x5d9   : > { %v3771_v59 = vor.u32 %v3770_v7, %v3766_v58  ;;  %v3728_v50 = vrot.slane %v3726_v55, 1  ;;  %v3708_v53 = vsel %vm4969_vm4, 0, %v3656_v19  ;;  %v6600_v14 = vrot.slane %v6532_v24, 1  ;;  %v4586_v58 = vld [vmem:[%s6868_s16 + $0x18] sm:$0xff]  ;;  %v4585_v55 = vld [vmem:[%s6868_s16 + $0x10] sm:$0xff] }
 0x5da   : > { %3825 = vrot.lane.b32.xlu2 %v6501_v45, %s4769_s30  ;;  %v6563_v51 = vsel %vm4973_vm6, %v3708_v53, 0  ;;  %v3663_v16 = vor.u32 %v3661_v18, %v3660_v48  ;;  %v3693_v49 = vshrl.u32 %v3642_v47, 16  ;;  %v3696_v8 = vshll.u32 %v3642_v47, 16 }
 0x5db   : > { %v3729_v2 = vor.u32 %v3728_v50, %v3724_v31  ;;  %v3733_v21 = vshll.u32 %v6563_v51, 16  ;;  %v3731_v36 = vshrl.u32 %v6563_v51, 16  ;;  %v6589_v15 = vrot.slane %v6563_v51, 1  ;;  %v4583_v31 = vld [vmem:[%s6868_s16] sm:$0xff] }
 0x5dc   : > { %3808 = vrot.lane.b32.xlu1 %v6508_v27, %s4770_s19  ;;  %v3709_v39 = vsel %vm4969_vm4, 0, %v3663_v16  ;;  %v3695_v20 = vrot.slane %v3693_v49, 7  ;;  %v4018_v25 = vunpack.c.l.b16 %v6488_v35  ;;  %v4020_v44 = vunpack.c.l.b16 %v6508_v27 }
 0x5dd   : > { %v3735_v6 = vrot.slane %v3733_v21, 1  ;;  %v6580_v42 = vsel %vm4973_vm6, %v3709_v39, 0  ;;  %v4022_v53 = vunpack.c.l.b16 %v6549_v28  ;;  %v4024_v37 = vunpack.c.l.b16 %v6600_v14 }
 0x5de   : > { %v3740_v40 = vshll.u32 %v6580_v42, 16  ;;  %v3738_v9 = vshrl.u32 %v6580_v42, 16  ;;  %v3698_v46 = vor.u32 %v3696_v8, %v3695_v20  ;;  %v6646_v5 = vrot.slane %v6580_v42, 1 }
 0x5df   : > { %v3736_v1 = vor.u32 %v3735_v6, %v3731_v36  ;;  %v4034_v7 = vpack.c.b16 %v4020_v44, %v4018_v25  ;;  %v4014_v13 = vunpack.c.l.b16 %v6589_v15 }
 0x5e0   : > { %3780 = vrot.lane.b32.xlu0 %v6519_v63, %s4771_s0  ;;  %v3742_v52 = vrot.slane %v3740_v40, 1  ;;  %v3714_v11 = vsel %vm4969_vm4, 0, %v3698_v46 }
 0x5e1   : > { %v6611_v33 = vsel %vm4973_vm6, %v3714_v11, 0  ;;  %4550 = vmatmul.msk.bf16.vlgmr.msra.gmra.mxu3 %vm1063_vm7, %v4034_v7 }
 0x5e2   : > { %3863 = vrot.lane.b32.xlu2 %v6508_v27, %s4772_s3  ;;  %v3743_v3 = vor.u32 %v3742_v52, %v3738_v9  ;;  %v3834_v57 = vshll.u32 %v6611_v33, 16  ;;  %v3854_v56 = vrot.slane %v6611_v33, 1  ;;  %v3832_v10 = vshrl.u32 %v6611_v33, 16  ;;  %v4584_v27 = vld [vmem:[%s6868_s16 + $0x8] sm:$0xff] }
 0x5e4   : > { %3848 = vrot.lane.b32.xlu1 %v3764_v41, %s4773_s4  ;;  %v3836_v34 = vrot.slane %v3834_v57, 1 }
 0x5e6   : > { %v3837_v61 = vor.u32 %v3836_v34, %v3832_v10 }
 0x5e8   : > { %3846 = vrot.lane.b32.xlu0 %v6519_v63, %s4773_s4 }
 0x5ea   : > { %3881 = vrot.lane.b32.xlu2 %v6532_v24, %s4774_s5 }
 0x5ec   : > { %3879 = vrot.lane.b32.xlu1 %v6501_v45, %s4774_s5 }
 0x5f0   : > { %3865 = vrot.lane.b32.xlu0 %v6549_v28, %s4772_s3 }
 0x5f2   : > { %3895 = vrot.lane.b32.xlu2 %v3771_v59, %s4775_s21 }
 0x5f4   : > { %3893 = vrot.lane.b32.xlu1 %v3764_v41, %s4775_s21 }
 0x5f8   : > { %3772 = vrot.lane.b32.xlu0 %v3729_v2, %s4771_s0 }
 0x5fa   : > { %3817 = vrot.lane.b32.xlu2 %v6563_v51, %s4769_s30 }
 0x5fc   : > { %3815 = vrot.lane.b32.xlu1 %v6541_v32, %s4769_s30 }
 0x600   : > { %3800 = vrot.lane.b32.xlu0 %v3793_v0, %s4770_s19 }
 0x602   : > { %3855 = vrot.lane.b32.xlu2 %v3793_v0, %s4772_s3 }
 0x604   : > { %3840 = vrot.lane.b32.xlu1 %v3736_v1, %s4773_s4 }
 0x608   : > { %3838 = vrot.lane.b32.xlu0 %v3729_v2, %s4773_s4  ;;  %v4036_v2 = vpack.c.b16 %v4024_v37, %v4022_v53 }
 0x60a   : > { %3873 = vrot.lane.b32.xlu2 %v6580_v42, %s4774_s5  ;;  %4551 = vmatmul.msk.bf16.gmra.mxu3 %vm1063_vm7, %v4036_v2 }
 0x60c   : > { %3871 = vrot.lane.b32.xlu1 %v6563_v51, %s4774_s5 }
 0x610   : > { %3857 = vrot.lane.b32.xlu0 %v6589_v15, %s4772_s3 }
 0x612   : > { %3782 = vrot.lane.b32.xlu2 %v3764_v41, %s4771_s0  ;;  %v4589_v41 = vld [vmem:[%s6868_s16 + $0x30] sm:$0xff] }
 0x613   : > { %4601 = vmatpush.bf16.msra.mxu2 %v4589_v41  ;;  %4110 = vmatpush.bf16.msra.mxu0 %v4589_v41 }
 0x614   : > { %3887 = vrot.lane.b32.xlu1 %v3743_v3, %s4775_s21 }
 0x617   : > { %4602 = vmatpush.bf16.msra.mxu2 %v4588_v12  ;;  %4111 = vmatpush.bf16.msra.mxu0 %v4588_v12 }
 0x618   : > { %3885 = vrot.lane.b32.xlu0 %v3736_v1, %s4775_s21 }
 0x61a   : > { %3812 = vrot.lane.b32.xlu2 %v6600_v14, %s4770_s19 }
 0x61b   : > { %4603 = vmatpush.bf16.msra.mxu2 %v4587_v60  ;;  %4112 = vmatpush.bf16.msra.mxu0 %v4587_v60 }
 0x61c   : > { %3810 = vrot.lane.b32.xlu1 %v6549_v28, %s4770_s19 }
 0x61f   : > { %4604 = vmatpush.bf16.msra.mxu2 %v4586_v58  ;;  %4113 = vmatpush.bf16.msra.mxu0 %v4586_v58 }
 0x620   : > { %3784 = vrot.lane.b32.xlu0 %v3771_v59, %s4771_s0 }
 0x622   : > { %3850 = vrot.lane.b32.xlu2 %v3771_v59, %s4773_s4 }
 0x623   : > { %4605 = vmatpush.bf16.msra.mxu2 %v4585_v55  ;;  %4114 = vmatpush.bf16.msra.mxu0 %v4585_v55 }
 0x624   : > { %3829 = vrot.lane.b32.xlu1 %v6611_v33, %s4769_s30 }
 0x627   : > { %4606 = vmatpush.bf16.msra.mxu2 %v4584_v27  ;;  %4115 = vmatpush.bf16.msra.mxu0 %v4584_v27 }
 0x628   : > { %3827 = vrot.lane.b32.xlu0 %v6532_v24, %s4769_s30 }
 0x62a   : > { %3869 = vrot.lane.b32.xlu2 %v3854_v56, %s4772_s3 }
 0x62b   : > { %4607 = vmatpush.bf16.msra.mxu2 %v4583_v31  ;;  %4116 = vmatpush.bf16.msra.mxu0 %v4583_v31 }
 0x62c   : > { %3867 = vrot.lane.b32.xlu1 %v6600_v14, %s4772_s3  ;;  %v6633_v17 = vpop.permute.xlu2 %3823 }
 0x630   : > { %3852 = vrot.lane.b32.xlu0 %v3837_v61, %s4773_s4 }
 0x632   : > { %3776 = vrot.lane.b32.xlu2 %v3743_v3, %s4771_s0 }
 0x634   : > { %3774 = vrot.lane.b32.xlu1 %v3736_v1, %s4771_s0  ;;  %v3826_v62 = vpop.permute.xlu2 %3825 }
 0x638   : > { %3883 = vrot.lane.b32.xlu0 %v6611_v33, %s4774_s5 }
 0x63a   : > { %3804 = vrot.lane.b32.xlu2 %v6646_v5, %s4770_s19 }
 0x63c   : > { %3802 = vrot.lane.b32.xlu1 %v6589_v15, %s4770_s19  ;;  %v3864_v19 = vpop.permute.xlu2 %3863 }
 0x640   : > { %3897 = vrot.lane.b32.xlu0 %v3837_v61, %s4775_s21  ;;  %v4016_v61 = vunpack.c.l.b16 %v6646_v5 }
 0x642   : > { %3842 = vrot.lane.b32.xlu2 %v3743_v3, %s4773_s4  ;;  %v4032_v41 = vpack.c.b16 %v4016_v61, %v4014_v13 }
 0x644   : > { %3821 = vrot.lane.b32.xlu1 %v6481_v29, %s4769_s30  ;;  %v3882_v21 = vpop.permute.xlu2 %3881  ;;  %4549 = vmatmul.msk.bf16.vlgmr.msra.gmra.mxu1 %vm1063_vm7, %v4032_v41 }
 0x646   : > { %v3807_v59 = vpop.permute.xlu1 %3806 }
 0x648   : > { %3819 = vrot.lane.b32.xlu0 %v6580_v42, %s4769_s30  ;;  %s6869_s30 = sld [smem:[#allocation9_spill]] }
 0x64a   : > { %v3779_v50 = vpop.permute.xlu0 %3778  ;;  %3861 = vrot.lane.b32.xlu2 %v6488_v35, %s4772_s3 }
 0x64b   : > { %v3906_v36 = vsel %vm1063_vm7, %v6481_v29, %v3779_v50 }
 0x64c   : > { %3859 = vrot.lane.b32.xlu1 %v6646_v5, %s4772_s3  ;;  %v3896_v28 = vpop.permute.xlu2 %3895  ;;  %v3920_v16 = vsel %vm1080_vm8, %v3906_v36, %v3807_v59  ;;  %v4026_v36 = vunpack.c.l.b16 %v3854_v56 }
 0x64d   : > { %v3936_v40 = vsel %vm1097_vm9, %v3920_v16, %v6633_v17 }
 0x64e   : > { %v3809_v23 = vpop.permute.xlu1 %3808 }
 0x650   : > { %3844 = vrot.lane.b32.xlu0 %v6503_v26, %s4773_s4 }
 0x652   : > { %v3781_v48 = vpop.permute.xlu0 %3780  ;;  %3889 = vrot.lane.b32.xlu2 %v6503_v26, %s4775_s21 }
 0x653   : > { %v3908_v18 = vsel %vm1063_vm7, %v6485_v30, %v3781_v48 }
 0x654   : > { %3877 = vrot.lane.b32.xlu1 %v6485_v30, %s4774_s5  ;;  %v3922_v6 = vsel %vm1080_vm8, %v3908_v18, %v3809_v23  ;;  %v3818_v39 = vpop.permute.xlu2 %3817 }
 0x655   : > { %v3938_v1 = vsel %vm1097_vm9, %v3922_v6, %v3826_v62  ;;  %v4038_v6 = vpack.c.b16 %v5242_v22, %v4026_v36 }
 0x656   : > { %v3849_v35 = vpop.permute.xlu1 %3848 }
 0x657   : > { %v3954_v30 = vsel %vm1114_vm10, %v3938_v1, %v3849_v35  ;;  %4552 = vmatmul.msk.bf16.gmra.mxu3 %vm1063_vm7, %v4038_v6 }
 0x658   : > { %3875 = vrot.lane.b32.xlu0 %v6481_v29, %s4774_s5  ;;  %s6870_s5 = sld [smem:[#allocation17_spill]] }
 0x65a   : > { %v3847_v0 = vpop.permute.xlu0 %3846 }
 0x65b   : > { %v3952_v9 = vsel %vm1114_vm10, %v3936_v40, %v3847_v0 }
 0x65c   : > { %v3968_v3 = vsel %vm1131_vm11, %v3952_v9, %v3864_v19  ;;  %v3856_v10 = vpop.permute.xlu2 %3855 }
 0x65e   : > { %v3880_v26 = vpop.permute.xlu1 %3879 }
 0x65f   : > { %v3984_v20 = vsel %vm1148_vm13, %v3968_v3, %v3880_v26 }
 0x660   : > { %3891 = vrot.lane.b32.xlu0 %v6519_v63, %s4775_s21 }
 0x662   : > { %v3866_v52 = vpop.permute.xlu0 %3865 }
 0x663   : > { %v3970_v29 = vsel %vm1131_vm11, %v3954_v30, %v3866_v52 }
 0x664   : > { %v3986_v47 = vsel %vm1148_vm13, %v3970_v29, %v3882_v21  ;;  %v3874_v12 = vpop.permute.xlu2 %3873 }
 0x665   : > { %v4001_v49 = vsel %vm1165_vm12, %v3986_v47, %v3896_v28 }
 0x666   : > { %v3894_v63 = vpop.permute.xlu1 %3893  ;;  %v4023_v14 = vunpack.c.l.b16 %v4001_v49 }
 0x667   : > { %v3999_v8 = vsel %vm1165_vm12, %v3984_v20, %v3894_v63 }
 0x668   : > { %v4021_v46 = vunpack.c.l.b16 %v3999_v8 }
 0x66a   : > { %v3773_v11 = vpop.permute.xlu0 %3772  ;;  %v4035_v57 = vpack.c.b16 %v4023_v14, %v4021_v46 }
 0x66b   : > { %v3900_v44 = vsel %vm1063_vm7, %v6541_v32, %v3773_v11 }
 0x66c   : > { %4127 = vmatmul.bf16.vlgmr.msra.gmra.mxu2 %v4035_v57  ;;  %v3783_v25 = vpop.permute.xlu2 %3782 }
 0x66d   : > { %v3910_v22 = vsel %vm1063_vm7, %v6501_v45, %v3783_v25 }
 0x66e   : > { %v3816_v34 = vpop.permute.xlu1 %3815 }
 0x66f   : > { %v3928_v15 = vsel %vm1097_vm9, %v5185_v43, %v3816_v34 }
 0x672   : > { %v3801_v17 = vpop.permute.xlu0 %3800 }
 0x673   : > { %v3914_v58 = vsel %vm1080_vm8, %v3900_v44, %v3801_v17 }
 0x674   : > { %v3930_v5 = vsel %vm1097_vm9, %v3914_v58, %v3818_v39  ;;  %v3813_v50 = vpop.permute.xlu2 %3812 }
 0x676   : > { %v3841_v60 = vpop.permute.xlu1 %3840 }
 0x677   : > { %v3946_v55 = vsel %vm1114_vm10, %v3930_v5, %v3841_v60 }
 0x67a   : > { %v3839_v4 = vpop.permute.xlu0 %3838 }
 0x67b   : > { %v3944_v19 = vsel %vm1114_vm10, %v3928_v15, %v3839_v4 }
 0x67c   : > { %v3960_v32 = vsel %vm1131_vm11, %v3944_v19, %v3856_v10  ;;  %v3851_v18 = vpop.permute.xlu2 %3850 }
 0x67e   : > { %v3872_v62 = vpop.permute.xlu1 %3871 }
 0x67f   : > { %v3976_v37 = vsel %vm1148_vm13, %v3960_v32, %v3872_v62 }
 0x682   : > { %v3858_v7 = vpop.permute.xlu0 %3857 }
 0x683   : > { %v3962_v27 = vsel %vm1131_vm11, %v3946_v55, %v3858_v7 }
 0x684   : > { %v3978_v31 = vsel %vm1148_vm13, %v3962_v27, %v3874_v12  ;;  %v3870_v26 = vpop.permute.xlu2 %3869 }
 0x686   : > { %v3888_v59 = vpop.permute.xlu1 %3887 }
 0x687   : > { %v3993_v53 = vsel %vm1165_vm12, %v3978_v31, %v3888_v59 }
 0x688   : > { %v4015_v23 = vunpack.c.l.b16 %v3993_v53 }
 0x68a   : > { %v3886_v2 = vpop.permute.xlu0 %3885 }
 0x68b   : > { %v3991_v43 = vsel %vm1165_vm12, %v3976_v37, %v3886_v2 }
 0x68c   : > { %v4013_v21 = vunpack.c.l.b16 %v3991_v43  ;;  %v3777_v9 = vpop.permute.xlu2 %3776  ;;  %v4152_v43 = vpop.f32.mrf.mxu3 }
 0x68d   : > { %v3904_v62 = vsel %vm1063_vm7, %v6580_v42, %v3777_v9 }
 0x68e   : > { %v3811_v48 = vpop.permute.xlu1 %3810  ;;  %v4031_v35 = vpack.c.b16 %v4015_v23, %v4013_v21  ;;  %v4716_v21 = vld [vmem:[%s6870_s5] ss:$0 sm:$0xff] }
 0x68f   : > { %v3924_v3 = vsel %vm1080_vm8, %v3910_v22, %v3811_v48 }
 0x690   : > { %4117 = vmatmul.bf16.vlgmr.msra.gmra.mxu0 %v4031_v35 }
 0x692   : > { %v3785_v28 = vpop.permute.xlu0 %3784 }
 0x693   : > { %v3912_v40 = vsel %vm1063_vm7, %v6532_v24, %v3785_v28 }
 0x694   : > { %v3926_v30 = vsel %vm1080_vm8, %v3912_v40, %v3813_v50  ;;  %v3805_v63 = vpop.permute.xlu2 %3804  ;;  %v4154_v23 = vpop.f32.mrf.mxu3 }
 0x695   : > { %v3918_v58 = vsel %vm1080_vm8, %v3904_v62, %v3805_v63 }
 0x696   : > { %v3830_v0 = vpop.permute.xlu1 %3829 }
 0x697   : > { %v3942_v52 = vsel %vm1097_vm9, %v3926_v30, %v3830_v0 }
 0x69a   : > { %v3828_v16 = vpop.permute.xlu0 %3827 }
 0x69b   : > { %v3940_v49 = vsel %vm1097_vm9, %v3924_v3, %v3828_v16 }
 0x69c   : > { %v3956_v20 = vsel %vm1114_vm10, %v3940_v49, %v3851_v18  ;;  %v4157_v48 = vpop.f32.mrf.mxu3  ;;  %v4171_v18 = vld [vmem:[%s6869_s30 + $0x20] sm:$0xff]  ;;  %v4168_v49 = vld [vmem:[%s6869_s30 + $0x8] sm:$0xff] }
 0x69e   : > { %v3868_v1 = vpop.permute.xlu1 %3867 }
 0x69f   : > { %v3972_v8 = vsel %vm1131_vm11, %v3956_v20, %v3868_v1  ;;  %v4172_v1 = vld [vmem:[%s6869_s30 + $0x28] sm:$0xff] }
 0x6a2   : > { %v3853_v39 = vpop.permute.xlu0 %3852 }
 0x6a3   : > { %v3958_v33 = vsel %vm1114_vm10, %v3942_v52, %v3853_v39 }
 0x6a4   : > { %v3974_v47 = vsel %vm1131_vm11, %v3958_v33, %v3870_v26  ;;  %v4159_v16 = vpop.f32.mrf.mxu3 }
 0x6a5   : > { %v3989_v24 = vsel %vm1148_vm13, %v3974_v47, %v5257_v54  ;;  %v3843_v54 = vpop.permute.xlu2 %3842 }
 0x6a6   : > { %v3775_v29 = vpop.permute.xlu1 %3774  ;;  %v4004_v14 = vsel %vm1165_vm12, %v3989_v24, %v5264_v38 }
 0x6a7   : > { %v4027_v10 = vunpack.c.l.b16 %v4004_v14  ;;  %v3902_v60 = vsel %vm1063_vm7, %v6563_v51, %v3775_v29  ;;  %v4167_v29 = vld [vmem:[%s6869_s30] sm:$0xff] }
 0x6aa   : > { %v3884_v56 = vpop.permute.xlu0 %3883 }
 0x6ab   : > { %v3988_v45 = vsel %vm1148_vm13, %v3972_v8, %v3884_v56 }
 0x6ad   : > { %v3862_v12 = vpop.permute.xlu2 %3861 }
 0x6ae   : > { %v3803_v46 = vpop.permute.xlu1 %3802 }
 0x6af   : > { %v3916_v38 = vsel %vm1080_vm8, %v3902_v60, %v3803_v46  ;;  %v4173_v46 = vld [vmem:[%s6869_s30 + $0x30] sm:$0xff] }
 0x6b2   : > { %v3898_v11 = vpop.permute.xlu0 %3897 }
 0x6b3   : > { %v4003_v57 = vsel %vm1165_vm12, %v3988_v45, %v3898_v11 }
 0x6b4   : > { %v4025_v34 = vunpack.c.l.b16 %v4003_v57 }
 0x6b5   : > { %v3890_v27 = vpop.permute.xlu2 %3889 }
 0x6b6   : > { %v4037_v13 = vpack.c.b16 %v4027_v10, %v4025_v34  ;;  %v3822_v41 = vpop.permute.xlu1 %3821 }
 0x6b7   : > { %v3934_v15 = vsel %vm1097_vm9, %v3918_v58, %v3822_v41 }
 0x6b8   : > { %4132 = vmatmul.bf16.gmra.mxu2 %v4037_v13  ;;  %v4174_v13 = vld [vmem:[%s6869_s30 + $0x38] sm:$0xff] }
 0x6ba   : > { %v3820_v61 = vpop.permute.xlu0 %3819 }
 0x6bb   : > { %v3932_v25 = vsel %vm1097_vm9, %v3916_v38, %v3820_v61 }
 0x6bc   : > { %v3948_v7 = vsel %vm1114_vm10, %v3932_v25, %v3843_v54  ;;  %v4170_v25 = vld [vmem:[%s6869_s30 + $0x18] sm:$0xff] }
 0x6be   : > { %v3860_v4 = vpop.permute.xlu1 %3859 }
 0x6bf   : > { %v3964_v5 = vsel %vm1131_vm11, %v3948_v7, %v3860_v4 }
 0x6c1   : > { %v4147_v30 = vpop.f32.mrf.mxu1 }
 0x6c2   : > { %v3845_v17 = vpop.permute.xlu0 %3844 }
 0x6c3   : > { %v3950_v55 = vsel %vm1114_vm10, %v3934_v15, %v3845_v17 }
 0x6c4   : > { %v3966_v42 = vsel %vm1131_vm11, %v3950_v55, %v3862_v12  ;;  %v4169_v12 = vld [vmem:[%s6869_s30 + $0x10] sm:$0xff] }
 0x6c6   : > { %v3878_v19 = vpop.permute.xlu1 %3877 }
 0x6c7   : > { %v3982_v31 = vsel %vm1148_vm13, %v3966_v42, %v3878_v19 }
 0x6c9   : > { %v4149_v47 = vpop.f32.mrf.mxu1 }
 0x6ca   : > { %v3876_v44 = vpop.permute.xlu0 %3875 }
 0x6cb   : > { %v3980_v51 = vsel %vm1148_vm13, %v3964_v5, %v3876_v44 }
 0x6cc   : > { %v3995_v59 = vsel %vm1165_vm12, %v3980_v51, %v3890_v27 }
 0x6cd   : > { %v4017_v53 = vunpack.c.l.b16 %v3995_v59 }
 0x6d2   : > { %v3892_v50 = vpop.permute.xlu0 %3891 }
 0x6d3   : > { %v3997_v32 = vsel %vm1165_vm12, %v3982_v31, %v3892_v50 }
 0x6d4   : > { %v4019_v37 = vunpack.c.l.b16 %v3997_v32 }
 0x6d6   : > { %v4033_v2 = vpack.c.b16 %v4019_v37, %v4017_v53 }
 0x6d8   : > { %4122 = vmatmul.bf16.gmra.mxu0 %v4033_v2 }
 0x6da   : > { %v4162_v63 = vpop.f32.mrf.mxu3 }
 0x6e2   : > { %v4164_v10 = vpop.f32.mrf.mxu3 }
 0x6ef   : > { %v4128_v35 = vpop.f32.mrf.mxu2 }
 0x6f0   : > { %v4129_v28 = vadd.f32 %v4716_v21, %v4128_v35 }
 0x6f2   : > { %v4158_v0 = vadd.f32 %v4157_v48, %v4129_v28 }
 0x6f4   : > { %v4179_v36 = vadd.f32 %v4171_v18, %v4158_v0 }
 0x6f6   : > { %4187 = vst.msk [vmem:[%s4957_s28 + $0x20] sm:$0xff] %vm1063_vm7, %v4179_v36 }
 0x6f7   : > { %v4130_v6 = vpop.f32.mrf.mxu2 }
 0x6f8   : > { %v4131_v26 = vadd.f32 %v4716_v21, %v4130_v6 }
 0x6fa   : > { %v4160_v39 = vadd.f32 %v4159_v16, %v4131_v26 }
 0x6fc   : > { %v4180_v40 = vadd.f32 %v4172_v1, %v4160_v39 }
 0x6fe   : > { %4188 = vst.msk [vmem:[%s4957_s28 + $0x28] sm:$0xff] %vm1063_vm7, %v4180_v40 }
 0x70d   : > { %v4118_v9 = vpop.f32.mrf.mxu0 }
 0x70e   : > { %v4119_v52 = vadd.f32 %v4716_v21, %v4118_v9 }
 0x710   : > { %v4148_v33 = vadd.f32 %v4147_v30, %v4119_v52 }
 0x712   : > { %v4175_v22 = vadd.f32 %v4167_v29, %v4148_v33 }
 0x714   : > { %4183 = vst.msk [vmem:[%s4957_s28] sm:$0xff] %vm1063_vm7, %v4175_v22 }
 0x715   : > { %v4120_v56 = vpop.f32.mrf.mxu0 }
 0x716   : > { %v4121_v3 = vadd.f32 %v4716_v21, %v4120_v56 }
 0x718   : > { %v4150_v24 = vadd.f32 %v4149_v47, %v4121_v3 }
 0x71a   : > { %v4176_v20 = vadd.f32 %v4168_v49, %v4150_v24 }
 0x71c   : > { %4184 = vst.msk [vmem:[%s4957_s28 + $0x8] sm:$0xff] %vm1063_vm7, %v4176_v20 }
 0x73b   : > { %v4133_v8 = vpop.f32.mrf.mxu2 }
 0x73c   : > { %v4134_v14 = vadd.f32 %v4716_v21, %v4133_v8 }
 0x73e   : > { %v4163_v45 = vadd.f32 %v4162_v63, %v4134_v14 }
 0x740   : > { %v4181_v11 = vadd.f32 %v4173_v46, %v4163_v45 }
 0x742   : > { %4189 = vst.msk [vmem:[%s4957_s28 + $0x30] sm:$0xff] %vm1063_vm7, %v4181_v11 }
 0x743   : > { %v4135_v57 = vpop.f32.mrf.mxu2 }
 0x744   : > { %v4136_v34 = vadd.f32 %v4716_v21, %v4135_v57 }
 0x746   : > { %v4165_v61 = vadd.f32 %v4164_v10, %v4136_v34 }
 0x748   : > { %v4182_v54 = vadd.f32 %v4174_v13, %v4165_v61 }
 0x74a   : > { %4190 = vst.msk [vmem:[%s4957_s28 + $0x38] sm:$0xff] %vm1063_vm7, %v4182_v54 }
 0x755   : > { %v4123_v41 = vpop.f32.mrf.mxu0 }
 0x756   : > { %v4124_v17 = vadd.f32 %v4716_v21, %v4123_v41 }
 0x758   : > { %v4153_v60 = vadd.f32 %v4152_v43, %v4124_v17 }
 0x75a   : > { %v4177_v4 = vadd.f32 %v4169_v12, %v4153_v60 }
 0x75c   : > { %4185 = vst.msk [vmem:[%s4957_s28 + $0x10] sm:$0xff] %vm1063_vm7, %v4177_v4 }
 0x75d   : > { %v4125_v38 = vpop.f32.mrf.mxu0 }
 0x75e   : > { %v4126_v62 = vadd.f32 %v4716_v21, %v4125_v38 }
 0x760   : > { %v4155_v44 = vadd.f32 %v4154_v23, %v4126_v62 }
 0x762   : > { %v4178_v58 = vadd.f32 %v4170_v25, %v4155_v44 }
 0x764   : > { %4186 = vst.msk [vmem:[%s4957_s28 + $0x18] sm:$0xff] %vm1063_vm7, %v4178_v58 }
 0x765 PF: > { %s6871_s21 = sld [smem:[#allocation6_spill]] }
 0x766   : > { %s6872_s18 = sld [smem:[#allocation4_spill]] }
 0x767   : > { %s6873_s19 = sld [smem:[#allocation5_spill]] }
 0x768   : > { %s6874_s20 = sld [smem:[#allocation7_spill]] }
 0x76b   : > { %s25_s22 = sadd.s32 1, %s6871_s21   ;;  %s6875_s21 = sld [smem:[#allocation8_spill]] }
 0x76c   : > { %p22_p9 = scmp.ge.s32.totalorder %s25_s22, 6  }
 0x76e   :  { %24 = sbr.rel (!%p22_p9) target bundleno = 9 (0x9), region = 154 }

</bundles_post_ra>
